<compile_context>
chip_gen: v6e
topology: v6e:2x2x1
jax: 0.10.0
libtpu: 0.0.40
codegen_flags: <defaults>
</compile_context>

<pallas_src>
import functools

import jax
import jax.numpy as jnp
from jax.experimental import pallas as pl
from jax.experimental.pallas import tpu as pltpu

EPS = 1e-5


# ---------------------------------------------------------------------------
# in-kernel helpers: every activation is a 2-D (channels, K_block) slab with
# voxels on the lane axis; the point axis T is a short static Python loop.
# ---------------------------------------------------------------------------
def _z1_slabs(x_ref, w1_ref):
    """Linear(F -> u1) per point.  x_ref block is (T, F, BK)."""
    w1 = w1_ref[...].astype(jnp.float32)                           # (u1, F)
    return [jnp.dot(w1, x_ref[t].astype(jnp.float32),
                    preferred_element_type=jnp.float32)            # (u1, BK)
            for t in range(x_ref.shape[0])]


def _mask_slabs(x_ref):
    """mask_t = (max over features of x != 0) as float, per point -> (1, BK)."""
    return [(jnp.max(x_ref[t].astype(jnp.float32), axis=0, keepdims=True)
             != 0.0).astype(jnp.float32)
            for t in range(x_ref.shape[0])]


def _bn_relu_and_max(z_slabs, scale_ref, shift_ref):
    """Folded train-mode BN + ReLU, plus the (unmasked) max over points."""
    scale = scale_ref[...]                                         # (u, 1)
    shift = shift_ref[...]
    pwf = [jnp.maximum(z * scale + shift, 0.0) for z in z_slabs]
    laf = pwf[0]
    for t in range(1, len(pwf)):
        laf = jnp.maximum(laf, pwf[t])
    return pwf, laf


def _z2_slabs(pwf1, laf1, mask, w2a_ref, w2b_ref):
    """Linear(2*u1 -> u2); the aggregate half is hoisted out of the T loop."""
    w2a = w2a_ref[...].astype(jnp.float32)                         # (u2, u1)
    w2b = w2b_ref[...].astype(jnp.float32)
    hoisted = jnp.dot(w2b, laf1, preferred_element_type=jnp.float32)  # once / tile
    return [jnp.dot(w2a, pwf1[t] * mask[t], preferred_element_type=jnp.float32)
            + hoisted * mask[t]
            for t in range(len(pwf1))]


def _partial_sums(z_slabs):
    """Per-channel [sum, sum-of-squares] over (T, BK) -> (u, 2)."""
    s = z_slabs[0]
    q = z_slabs[0] * z_slabs[0]
    for z in z_slabs[1:]:
        s = s + z
        q = q + z * z
    return jnp.concatenate([jnp.sum(s, axis=1, keepdims=True),
                            jnp.sum(q, axis=1, keepdims=True)], axis=1)


# ---------------------------------------------------------------------------
# kernels (one sweep over the K grid each)
# ---------------------------------------------------------------------------
def _stats1_kernel(x_ref, w1_ref, st_ref):
    st_ref[...] = _partial_sums(_z1_slabs(x_ref, w1_ref))[None]        # (1,u1,2)


def _stats2_kernel(x_ref, w1_ref, sc1_ref, sh1_ref, w2a_ref, w2b_ref, st_ref):
    z1 = _z1_slabs(x_ref, w1_ref)
    mask = _mask_slabs(x_ref)
    pwf1, laf1 = _bn_relu_and_max(z1, sc1_ref, sh1_ref)
    z2 = _z2_slabs(pwf1, laf1, mask, w2a_ref, w2b_ref)
    st_ref[...] = _partial_sums(z2)[None]                              # (1,u2,2)


def _logits_kernel(x_ref, w1_ref, sc1_ref, sh1_ref, w2a_ref, w2b_ref,
                   sc2_ref, sh2_ref, wfa_ref, wfb_ref, zf_ref, st_ref):
    z1 = _z1_slabs(x_ref, w1_ref)
    mask = _mask_slabs(x_ref)
    pwf1, laf1 = _bn_relu_and_max(z1, sc1_ref, sh1_ref)
    z2 = _z2_slabs(pwf1, laf1, mask, w2a_ref, w2b_ref)
    pwf2, laf2 = _bn_relu_and_max(z2, sc2_ref, sh2_ref)

    # max over points of the masked features; the aggregate half collapses to
    # laf2 * any(mask) because pwf2 >= 0 after ReLU and mask is {0,1}.
    agg_a = pwf2[0] * mask[0]
    any_m = mask[0]
    for t in range(1, len(pwf2)):
        agg_a = jnp.maximum(agg_a, pwf2[t] * mask[t])
        any_m = jnp.maximum(any_m, mask[t])
    agg_b = laf2 * any_m

    zf = (jnp.dot(wfa_ref[...].astype(jnp.float32), agg_a,
                  preferred_element_type=jnp.float32)
          + jnp.dot(wfb_ref[...].astype(jnp.float32), agg_b,
                    preferred_element_type=jnp.float32))               # (2, BK)
    zf_ref[...] = zf
    st_ref[...] = jnp.concatenate([jnp.sum(zf, axis=1, keepdims=True),
                                   jnp.sum(zf * zf, axis=1, keepdims=True)],
                                  axis=1)[None]                        # (1,2,2)


def _head_kernel(zf_ref, scf_ref, shf_ref, out_ref):
    y = jnp.maximum(zf_ref[...] * scf_ref[...] + shf_ref[...], 0.0)    # (2, BK)
    y = y - jnp.max(y, axis=0, keepdims=True)                          # 2-class softmax
    e = jnp.exp(y)
    out_ref[...] = e / jnp.sum(e, axis=0, keepdims=True)


# ---------------------------------------------------------------------------
# host-side glue
# ---------------------------------------------------------------------------
def prepare_params(params):
    """One-time glue (outside the per-call path): split / cast weights into the
    kernel layout and drop the linear biases, which are exactly cancelled by
    train-mode BatchNorm's mean subtraction."""
    def col(v):
        return jnp.asarray(v, jnp.float32).reshape(-1, 1)

    w1, _b1, g1, be1 = params["vfe1"]
    w2, _b2, g2, be2 = params["vfe2"]
    wf, _bf, gf, bef = params["fcf"]
    u1 = w1.shape[0]
    u2 = w2.shape[0]
    return dict(
        w1=jnp.asarray(w1, jnp.float32),            # (u1, F)
        g1=col(g1), be1=col(be1),
        w2a=jnp.asarray(w2[:, :u1], jnp.float32),   # (u2, u1) point-wise half
        w2b=jnp.asarray(w2[:, u1:], jnp.float32),   # (u2, u1) aggregate half
        g2=col(g2), be2=col(be2),
        wfa=jnp.asarray(wf[:, :u2], jnp.float32),   # (2, u2)
        wfb=jnp.asarray(wf[:, u2:], jnp.float32),
        gf=col(gf), bef=col(bef),
    )


def _pick_block_k(k):
    for bk in (512, 256, 128):
        if k % bk == 0:
            return bk
    return k                      # single full-K tile (legal for any K)


def _full_spec(shape):
    return pl.BlockSpec(shape, lambda i: (0,) * len(shape))


def _finalize_bn(parts, gamma, beta, count):
    """Per-tile partial [sum, sumsq] -> folded (scale, shift) for train-mode BN."""
    s = jnp.sum(parts[:, :, 0:1], axis=0)           # (u, 1)
    q = jnp.sum(parts[:, :, 1:2], axis=0)
    mean = s / count
    var = q / count - mean * mean
    scale = gamma * jax.lax.rsqrt(var + EPS)
    shift = beta - mean * scale
    return scale, shift


def smokenet_no_conv(x, prep, *, block_k=None):
    """Forward pass of SmokeNetNoConv (train-mode BatchNorm semantics).

    x: (K, T, F) in its native dtype (bf16 supported; compute is f32 in-kernel).
    prep: output of prepare_params(params).
    """
    K, T, F = x.shape
    u1 = prep["w1"].shape[0]
    u2 = prep["w2a"].shape[0]
    bk = _pick_block_k(K) if block_k is None else block_k
    assert K % bk == 0, (K, bk)
    nt = K // bk

    # K becomes the lane axis; features/points move to sublanes / a short
    # leading axis.  Producers that can emit x as (T, F, K) directly avoid
    # this one transpose.
    xt = jnp.transpose(x, (1, 2, 0))                # (T, F, K), native dtype

    x_spec = pl.BlockSpec((T, F, bk), lambda i: (0, 0, i))
    par = pltpu.CompilerParams(dimension_semantics=("parallel",))

    def _stats_out(u):
        return (jax.ShapeDtypeStruct((nt, u, 2), jnp.float32),
                pl.BlockSpec((1, u, 2), lambda i: (i, 0, 0)))

    # ---- sweep 1: BN1 batch statistics --------------------------------------
    shp1, osp1 = _stats_out(u1)
    st1 = pl.pallas_call(
        _stats1_kernel, grid=(nt,),
        in_specs=[x_spec, _full_spec(prep["w1"].shape)],
        out_specs=osp1, out_shape=shp1, compiler_params=par,
    )(xt, prep["w1"])
    sc1, sh1 = _finalize_bn(st1, prep["g1"], prep["be1"], float(K * T))

    # ---- sweep 2: BN2 batch statistics --------------------------------------
    shp2, osp2 = _stats_out(u2)
    st2 = pl.pallas_call(
        _stats2_kernel, grid=(nt,),
        in_specs=[x_spec, _full_spec(prep["w1"].shape),
                  _full_spec((u1, 1)), _full_spec((u1, 1)),
                  _full_spec(prep["w2a"].shape), _full_spec(prep["w2b"].shape)],
        out_specs=osp2, out_shape=shp2, compiler_params=par,
    )(xt, prep["w1"], sc1, sh1, prep["w2a"], prep["w2b"])
    sc2, sh2 = _finalize_bn(st2, prep["g2"], prep["be2"], float(K * T))

    # ---- sweep 3: per-voxel logits + final-BN statistics ---------------------
    shpf, ospf = _stats_out(2)
    zf, stf = pl.pallas_call(
        _logits_kernel, grid=(nt,),
        in_specs=[x_spec, _full_spec(prep["w1"].shape),
                  _full_spec((u1, 1)), _full_spec((u1, 1)),
                  _full_spec(prep["w2a"].shape), _full_spec(prep["w2b"].shape),
                  _full_spec((u2, 1)), _full_spec((u2, 1)),
                  _full_spec(prep["wfa"].shape), _full_spec(prep["wfb"].shape)],
        out_specs=(pl.BlockSpec((2, bk), lambda i: (0, i)), ospf),
        out_shape=(jax.ShapeDtypeStruct((2, K), jnp.float32), shpf),
        compiler_params=par,
    )(xt, prep["w1"], sc1, sh1, prep["w2a"], prep["w2b"],
      sc2, sh2, prep["wfa"], prep["wfb"])
    scf, shf = _finalize_bn(stf, prep["gf"], prep["bef"], float(K))

    # ---- sweep 4 (tiny): final BN + ReLU + 2-class softmax -------------------
    probs = pl.pallas_call(
        _head_kernel, grid=(nt,),
        in_specs=[pl.BlockSpec((2, bk), lambda i: (0, i)),
                  _full_spec((2, 1)), _full_spec((2, 1))],
        out_specs=pl.BlockSpec((2, bk), lambda i: (0, i)),
        out_shape=jax.ShapeDtypeStruct((2, K), jnp.float32),
        compiler_params=par,
    )(zf, scf, shf)

    return probs.T                                  # (K, 2)


# ---------------------------------------------------------------------------
# pure-JAX reference (mirrors the PyTorch forward, biases included) for a check
# ---------------------------------------------------------------------------
def _fcn_ref(x2d, w, b, g, be):
    y = x2d @ w.T + b
    mean = jnp.mean(y, axis=0, keepdims=True)
    var = jnp.mean((y - mean) ** 2, axis=0, keepdims=True)
    y = (y - mean) / jnp.sqrt(var + EPS) * g + be
    return jnp.maximum(y, 0.0)


def _vfe_ref(x, mask, w, b, g, be):
    K, T, _ = x.shape
    units = w.shape[0]
    pwf = _fcn_ref(x.reshape(K * T, -1), w, b, g, be).reshape(K, T, units)
    laf = jnp.broadcast_to(jnp.max(pwf, axis=1, keepdims=True), pwf.shape)
    pwcf = jnp.concatenate([pwf, laf], axis=2)
    return pwcf * mask[:, :, None]


def smokenet_ref(x, params):
    mask = (jnp.max(x, axis=2) != 0.0).astype(jnp.float32)
    K = x.shape[0]
    h = _vfe_ref(x, mask, *params["vfe1"])
    h = _vfe_ref(h, mask, *params["vfe2"])
    h = jnp.max(h, axis=1, keepdims=True)           # (K, 1, VFE2_OUT)
    y = _fcn_ref(h.reshape(K, -1), *params["fcf"])  # (K, 2)
    return jax.nn.softmax(y, axis=1)


# ---------------------------------------------------------------------------
if __name__ == "__main__":
    FEATURES = 8      # model_config['features_size']
    VFE1_OUT = 16     # model_config['VFE1_OUT']  (even)
    VFE2_OUT = 32     # model_config['VFE2_OUT']  (even)
    T = 8             # map_config['voxel_pt_count']
    K = 512           # number of voxels (batch); tiled over the grid in 128-blocks

    key = jax.random.PRNGKey(0)
    ks = jax.random.split(key, 6)

    def linear_params(k, cin, cout):
        kw, kb = jax.random.split(k)
        w = jax.random.normal(kw, (cout, cin), jnp.float32) * 0.2
        b = jax.random.normal(kb, (cout,), jnp.float32) * 0.05
        return w, b

    def fcn_params(k, cin, cout):
        w, b = linear_params(k, cin, cout)
        return (w, b, jnp.ones((cout,), jnp.float32), jnp.zeros((cout,), jnp.float32))

    params = {
        "vfe1": fcn_params(ks[0], FEATURES, VFE1_OUT // 2),
        "vfe2": fcn_params(ks[1], VFE1_OUT, VFE2_OUT // 2),
        "fcf":  fcn_params(ks[2], VFE2_OUT, 2),
    }
    # TODO(synk): the module also defines self.fcn (VFE2_OUT -> VFE2_OUT), but
    # forward() never calls it, so it is intentionally not instantiated.

    x = jax.random.normal(ks[3], (K, T, FEATURES), jnp.float32)
    zero_rows = jax.random.bernoulli(ks[4], 0.3, (K, T))     # empty points -> mask 0
    x = jnp.where(zero_rows[:, :, None], 0.0, x)

    prep = prepare_params(params)            # one-time, outside the per-call path
    fwd = jax.jit(functools.partial(smokenet_no_conv, block_k=128))   # 4 K-tiles

    out = jax.block_until_ready(fwd(x, prep))
    ref = smokenet_ref(x, params)

    assert out.shape == (K, 2)
    assert bool(jnp.allclose(out, ref, atol=5e-4, rtol=1e-3)), (
        float(jnp.max(jnp.abs(out - ref))))
    print("KERNEL_OK")
</pallas_src>

<mosaic_0001>
module attributes {stable_mosaic.version = 11 : i64} {
  func.func @_stats1_kernel(%arg0: i32, %arg1: memref<8x8x128xf32, #tpu.memory_space<vmem>>, %arg2: memref<8x8xf32, #tpu.memory_space<vmem>>, %arg3: memref<1x8x2xf32, #tpu.memory_space<vmem>>) attributes {dimension_semantics = [#tpu.dimension_semantics<parallel>], iteration_bounds = array<i64: 4>, scalar_prefetch = 0 : i64, scratch_operands = 0 : i64, tpu.core_type = #tpu.core_type<tc>, window_params = [{transform_indices = @transform_0, window_bounds = array<i64: 8, 8, 128>}, {pipeline_mode = #tpu.pipeline_mode<synchronous>, transform_indices = @transform_1, window_bounds = array<i64: 8, 8>}, {transform_indices = @transform_2, window_bounds = array<i64: 1, 8, 2>}]} {
    %c0 = arith.constant 0 : index
    %c0_0 = arith.constant 0 : index
    %0 = vector.load %arg2[%c0, %c0_0] : memref<8x8xf32, #tpu.memory_space<vmem>>, vector<8x8xf32>
    %c0_1 = arith.constant 0 : index
    %c0_2 = arith.constant 0 : index
    %c0_3 = arith.constant 0 : index
    %1 = vector.load %arg1[%c0_1, %c0_2, %c0_3] : memref<8x8x128xf32, #tpu.memory_space<vmem>>, vector<1x8x128xf32>
    %2 = vector.shape_cast %1 : vector<1x8x128xf32> to vector<8x128xf32>
    %cst = arith.constant dense<0.000000e+00> : vector<8x128xf32>
    %3 = tpu.matmul %0, %2, %cst {dimension_numbers = #tpu.dot_dimension_numbers<[1], [0], [0], [1], [0, 0, 1, 1], [], []>} : vector<8x8xf32>, vector<8x128xf32>, vector<8x128xf32> -> vector<8x128xf32>
    %c1 = arith.constant 1 : index
    %c0_4 = arith.constant 0 : index
    %c0_5 = arith.constant 0 : index
    %4 = vector.load %arg1[%c1, %c0_4, %c0_5] : memref<8x8x128xf32, #tpu.memory_space<vmem>>, vector<1x8x128xf32>
    %5 = vector.shape_cast %4 : vector<1x8x128xf32> to vector<8x128xf32>
    %cst_6 = arith.constant dense<0.000000e+00> : vector<8x128xf32>
    %6 = tpu.matmul %0, %5, %cst_6 {dimension_numbers = #tpu.dot_dimension_numbers<[1], [0], [0], [1], [0, 0, 1, 1], [], []>} : vector<8x8xf32>, vector<8x128xf32>, vector<8x128xf32> -> vector<8x128xf32>
    %c2 = arith.constant 2 : index
    %c0_7 = arith.constant 0 : index
    %c0_8 = arith.constant 0 : index
    %7 = vector.load %arg1[%c2, %c0_7, %c0_8] : memref<8x8x128xf32, #tpu.memory_space<vmem>>, vector<1x8x128xf32>
    %8 = vector.shape_cast %7 : vector<1x8x128xf32> to vector<8x128xf32>
    %cst_9 = arith.constant dense<0.000000e+00> : vector<8x128xf32>
    %9 = tpu.matmul %0, %8, %cst_9 {dimension_numbers = #tpu.dot_dimension_numbers<[1], [0], [0], [1], [0, 0, 1, 1], [], []>} : vector<8x8xf32>, vector<8x128xf32>, vector<8x128xf32> -> vector<8x128xf32>
    %c3 = arith.constant 3 : index
    %c0_10 = arith.constant 0 : index
    %c0_11 = arith.constant 0 : index
    %10 = vector.load %arg1[%c3, %c0_10, %c0_11] : memref<8x8x128xf32, #tpu.memory_space<vmem>>, vector<1x8x128xf32>
    %11 = vector.shape_cast %10 : vector<1x8x128xf32> to vector<8x128xf32>
    %cst_12 = arith.constant dense<0.000000e+00> : vector<8x128xf32>
    %12 = tpu.matmul %0, %11, %cst_12 {dimension_numbers = #tpu.dot_dimension_numbers<[1], [0], [0], [1], [0, 0, 1, 1], [], []>} : vector<8x8xf32>, vector<8x128xf32>, vector<8x128xf32> -> vector<8x128xf32>
    %c4 = arith.constant 4 : index
    %c0_13 = arith.constant 0 : index
    %c0_14 = arith.constant 0 : index
    %13 = vector.load %arg1[%c4, %c0_13, %c0_14] : memref<8x8x128xf32, #tpu.memory_space<vmem>>, vector<1x8x128xf32>
    %14 = vector.shape_cast %13 : vector<1x8x128xf32> to vector<8x128xf32>
    %cst_15 = arith.constant dense<0.000000e+00> : vector<8x128xf32>
    %15 = tpu.matmul %0, %14, %cst_15 {dimension_numbers = #tpu.dot_dimension_numbers<[1], [0], [0], [1], [0, 0, 1, 1], [], []>} : vector<8x8xf32>, vector<8x128xf32>, vector<8x128xf32> -> vector<8x128xf32>
    %c5 = arith.constant 5 : index
    %c0_16 = arith.constant 0 : index
    %c0_17 = arith.constant 0 : index
    %16 = vector.load %arg1[%c5, %c0_16, %c0_17] : memref<8x8x128xf32, #tpu.memory_space<vmem>>, vector<1x8x128xf32>
    %17 = vector.shape_cast %16 : vector<1x8x128xf32> to vector<8x128xf32>
    %cst_18 = arith.constant dense<0.000000e+00> : vector<8x128xf32>
    %18 = tpu.matmul %0, %17, %cst_18 {dimension_numbers = #tpu.dot_dimension_numbers<[1], [0], [0], [1], [0, 0, 1, 1], [], []>} : vector<8x8xf32>, vector<8x128xf32>, vector<8x128xf32> -> vector<8x128xf32>
    %c6 = arith.constant 6 : index
    %c0_19 = arith.constant 0 : index
    %c0_20 = arith.constant 0 : index
    %19 = vector.load %arg1[%c6, %c0_19, %c0_20] : memref<8x8x128xf32, #tpu.memory_space<vmem>>, vector<1x8x128xf32>
    %20 = vector.shape_cast %19 : vector<1x8x128xf32> to vector<8x128xf32>
    %cst_21 = arith.constant dense<0.000000e+00> : vector<8x128xf32>
    %21 = tpu.matmul %0, %20, %cst_21 {dimension_numbers = #tpu.dot_dimension_numbers<[1], [0], [0], [1], [0, 0, 1, 1], [], []>} : vector<8x8xf32>, vector<8x128xf32>, vector<8x128xf32> -> vector<8x128xf32>
    %c7 = arith.constant 7 : index
    %c0_22 = arith.constant 0 : index
    %c0_23 = arith.constant 0 : index
    %22 = vector.load %arg1[%c7, %c0_22, %c0_23] : memref<8x8x128xf32, #tpu.memory_space<vmem>>, vector<1x8x128xf32>
    %23 = vector.shape_cast %22 : vector<1x8x128xf32> to vector<8x128xf32>
    %cst_24 = arith.constant dense<0.000000e+00> : vector<8x128xf32>
    %24 = tpu.matmul %0, %23, %cst_24 {dimension_numbers = #tpu.dot_dimension_numbers<[1], [0], [0], [1], [0, 0, 1, 1], [], []>} : vector<8x8xf32>, vector<8x128xf32>, vector<8x128xf32> -> vector<8x128xf32>
    %25 = arith.mulf %3, %3 : vector<8x128xf32>
    %26 = arith.addf %3, %6 : vector<8x128xf32>
    %27 = arith.mulf %6, %6 : vector<8x128xf32>
    %28 = arith.addf %25, %27 : vector<8x128xf32>
    %29 = arith.addf %26, %9 : vector<8x128xf32>
    %30 = arith.mulf %9, %9 : vector<8x128xf32>
    %31 = arith.addf %28, %30 : vector<8x128xf32>
    %32 = arith.addf %29, %12 : vector<8x128xf32>
    %33 = arith.mulf %12, %12 : vector<8x128xf32>
    %34 = arith.addf %31, %33 : vector<8x128xf32>
    %35 = arith.addf %32, %15 : vector<8x128xf32>
    %36 = arith.mulf %15, %15 : vector<8x128xf32>
    %37 = arith.addf %34, %36 : vector<8x128xf32>
    %38 = arith.addf %35, %18 : vector<8x128xf32>
    %39 = arith.mulf %18, %18 : vector<8x128xf32>
    %40 = arith.addf %37, %39 : vector<8x128xf32>
    %41 = arith.addf %38, %21 : vector<8x128xf32>
    %42 = arith.mulf %21, %21 : vector<8x128xf32>
    %43 = arith.addf %40, %42 : vector<8x128xf32>
    %44 = arith.addf %41, %24 : vector<8x128xf32>
    %45 = arith.mulf %24, %24 : vector<8x128xf32>
    %46 = arith.addf %43, %45 : vector<8x128xf32>
    %cst_25 = arith.constant dense<0.000000e+00> : vector<8xf32>
    %47 = vector.multi_reduction <add>, %44, %cst_25 [1] : vector<8x128xf32> to vector<8xf32>
    %48 = vector.shape_cast %47 : vector<8xf32> to vector<8x1xf32>
    %cst_26 = arith.constant dense<0.000000e+00> : vector<8xf32>
    %49 = vector.multi_reduction <add>, %46, %cst_26 [1] : vector<8x128xf32> to vector<8xf32>
    %50 = vector.shape_cast %49 : vector<8xf32> to vector<8x1xf32>
    %51 = tpu.concatenate %48, %50 in 1 : vector<8x1xf32>, vector<8x1xf32> -> vector<8x2xf32>
    %52 = vector.shape_cast %51 : vector<8x2xf32> to vector<1x8x2xf32>
    %c0_27 = arith.constant 0 : index
    %c0_28 = arith.constant 0 : index
    %c0_29 = arith.constant 0 : index
    %53 = vector.load %arg3[%c0_27, %c0_28, %c0_29] : memref<1x8x2xf32, #tpu.memory_space<vmem>>, vector<1x8x2xf32>
    tpu.vector_store %arg3[%c0_27, %c0_28, %c0_29], %52 {strides = array<i32>} : memref<1x8x2xf32, #tpu.memory_space<vmem>>, vector<1x8x2xf32>,
    return
  }
  func.func @transform_0(%arg0: i32) -> (i32, i32, i32) {
    %c0_i32 = arith.constant 0 : i32
    %c0_i32_0 = arith.constant 0 : i32
    %c0_i32_1 = arith.constant 0 : i32
    return %c0_i32, %c0_i32_0, %arg0 : i32, i32, i32
  }
  func.func @transform_1(%arg0: i32) -> (i32, i32) {
    %c0_i32 = arith.constant 0 : i32
    %c0_i32_0 = arith.constant 0 : i32
    %c0_i32_1 = arith.constant 0 : i32
    return %c0_i32, %c0_i32_0 : i32, i32
  }
  func.func @transform_2(%arg0: i32) -> (i32, i32, i32) {
    %c0_i32 = arith.constant 0 : i32
    %c0_i32_0 = arith.constant 0 : i32
    %c0_i32_1 = arith.constant 0 : i32
    return %arg0, %c0_i32, %c0_i32_0 : i32, i32, i32
  }
}

module attributes {stable_mosaic.version = 11 : i64} {
  func.func @_stats2_kernel(%arg0: i32, %arg1: memref<8x8x128xf32, #tpu.memory_space<vmem>>, %arg2: memref<8x8xf32, #tpu.memory_space<vmem>>, %arg3: memref<8x1xf32, #tpu.memory_space<vmem>>, %arg4: memref<8x1xf32, #tpu.memory_space<vmem>>, %arg5: memref<16x8xf32, #tpu.memory_space<vmem>>, %arg6: memref<16x8xf32, #tpu.memory_space<vmem>>, %arg7: memref<1x16x2xf32, #tpu.memory_space<vmem>>) attributes {dimension_semantics = [#tpu.dimension_semantics<parallel>], iteration_bounds = array<i64: 4>, scalar_prefetch = 0 : i64, scratch_operands = 0 : i64, tpu.core_type = #tpu.core_type<tc>, window_params = [{transform_indices = @transform_0, window_bounds = array<i64: 8, 8, 128>}, {pipeline_mode = #tpu.pipeline_mode<synchronous>, transform_indices = @transform_1, window_bounds = array<i64: 8, 8>}, {pipeline_mode = #tpu.pipeline_mode<synchronous>, transform_indices = @transform_2, window_bounds = array<i64: 8, 1>}, {pipeline_mode = #tpu.pipeline_mode<synchronous>, transform_indices = @transform_3, window_bounds = array<i64: 8, 1>}, {pipeline_mode = #tpu.pipeline_mode<synchronous>, transform_indices = @transform_4, window_bounds = array<i64: 16, 8>}, {pipeline_mode = #tpu.pipeline_mode<synchronous>, transform_indices = @transform_5, window_bounds = array<i64: 16, 8>}, {transform_indices = @transform_6, window_bounds = array<i64: 1, 16, 2>}]} {
    %c0 = arith.constant 0 : index
    %c0_0 = arith.constant 0 : index
    %0 = vector.load %arg2[%c0, %c0_0] : memref<8x8xf32, #tpu.memory_space<vmem>>, vector<8x8xf32>
    %c0_1 = arith.constant 0 : index
    %c0_2 = arith.constant 0 : index
    %c0_3 = arith.constant 0 : index
    %1 = vector.load %arg1[%c0_1, %c0_2, %c0_3] : memref<8x8x128xf32, #tpu.memory_space<vmem>>, vector<1x8x128xf32>
    %2 = vector.shape_cast %1 : vector<1x8x128xf32> to vector<8x128xf32>
    %cst = arith.constant dense<0.000000e+00> : vector<8x128xf32>
    %3 = tpu.matmul %0, %2, %cst {dimension_numbers = #tpu.dot_dimension_numbers<[1], [0], [0], [1], [0, 0, 1, 1], [], []>} : vector<8x8xf32>, vector<8x128xf32>, vector<8x128xf32> -> vector<8x128xf32>
    %c1 = arith.constant 1 : index
    %c0_4 = arith.constant 0 : index
    %c0_5 = arith.constant 0 : index
    %4 = vector.load %arg1[%c1, %c0_4, %c0_5] : memref<8x8x128xf32, #tpu.memory_space<vmem>>, vector<1x8x128xf32>
    %5 = vector.shape_cast %4 : vector<1x8x128xf32> to vector<8x128xf32>
    %cst_6 = arith.constant dense<0.000000e+00> : vector<8x128xf32>
    %6 = tpu.matmul %0, %5, %cst_6 {dimension_numbers = #tpu.dot_dimension_numbers<[1], [0], [0], [1], [0, 0, 1, 1], [], []>} : vector<8x8xf32>, vector<8x128xf32>, vector<8x128xf32> -> vector<8x128xf32>
    %c2 = arith.constant 2 : index
    %c0_7 = arith.constant 0 : index
    %c0_8 = arith.constant 0 : index
    %7 = vector.load %arg1[%c2, %c0_7, %c0_8] : memref<8x8x128xf32, #tpu.memory_space<vmem>>, vector<1x8x128xf32>
    %8 = vector.shape_cast %7 : vector<1x8x128xf32> to vector<8x128xf32>
    %cst_9 = arith.constant dense<0.000000e+00> : vector<8x128xf32>
    %9 = tpu.matmul %0, %8, %cst_9 {dimension_numbers = #tpu.dot_dimension_numbers<[1], [0], [0], [1], [0, 0, 1, 1], [], []>} : vector<8x8xf32>, vector<8x128xf32>, vector<8x128xf32> -> vector<8x128xf32>
    %c3 = arith.constant 3 : index
    %c0_10 = arith.constant 0 : index
    %c0_11 = arith.constant 0 : index
    %10 = vector.load %arg1[%c3, %c0_10, %c0_11] : memref<8x8x128xf32, #tpu.memory_space<vmem>>, vector<1x8x128xf32>
    %11 = vector.shape_cast %10 : vector<1x8x128xf32> to vector<8x128xf32>
    %cst_12 = arith.constant dense<0.000000e+00> : vector<8x128xf32>
    %12 = tpu.matmul %0, %11, %cst_12 {dimension_numbers = #tpu.dot_dimension_numbers<[1], [0], [0], [1], [0, 0, 1, 1], [], []>} : vector<8x8xf32>, vector<8x128xf32>, vector<8x128xf32> -> vector<8x128xf32>
    %c4 = arith.constant 4 : index
    %c0_13 = arith.constant 0 : index
    %c0_14 = arith.constant 0 : index
    %13 = vector.load %arg1[%c4, %c0_13, %c0_14] : memref<8x8x128xf32, #tpu.memory_space<vmem>>, vector<1x8x128xf32>
    %14 = vector.shape_cast %13 : vector<1x8x128xf32> to vector<8x128xf32>
    %cst_15 = arith.constant dense<0.000000e+00> : vector<8x128xf32>
    %15 = tpu.matmul %0, %14, %cst_15 {dimension_numbers = #tpu.dot_dimension_numbers<[1], [0], [0], [1], [0, 0, 1, 1], [], []>} : vector<8x8xf32>, vector<8x128xf32>, vector<8x128xf32> -> vector<8x128xf32>
    %c5 = arith.constant 5 : index
    %c0_16 = arith.constant 0 : index
    %c0_17 = arith.constant 0 : index
    %16 = vector.load %arg1[%c5, %c0_16, %c0_17] : memref<8x8x128xf32, #tpu.memory_space<vmem>>, vector<1x8x128xf32>
    %17 = vector.shape_cast %16 : vector<1x8x128xf32> to vector<8x128xf32>
    %cst_18 = arith.constant dense<0.000000e+00> : vector<8x128xf32>
    %18 = tpu.matmul %0, %17, %cst_18 {dimension_numbers = #tpu.dot_dimension_numbers<[1], [0], [0], [1], [0, 0, 1, 1], [], []>} : vector<8x8xf32>, vector<8x128xf32>, vector<8x128xf32> -> vector<8x128xf32>
    %c6 = arith.constant 6 : index
    %c0_19 = arith.constant 0 : index
    %c0_20 = arith.constant 0 : index
    %19 = vector.load %arg1[%c6, %c0_19, %c0_20] : memref<8x8x128xf32, #tpu.memory_space<vmem>>, vector<1x8x128xf32>
    %20 = vector.shape_cast %19 : vector<1x8x128xf32> to vector<8x128xf32>
    %cst_21 = arith.constant dense<0.000000e+00> : vector<8x128xf32>
    %21 = tpu.matmul %0, %20, %cst_21 {dimension_numbers = #tpu.dot_dimension_numbers<[1], [0], [0], [1], [0, 0, 1, 1], [], []>} : vector<8x8xf32>, vector<8x128xf32>, vector<8x128xf32> -> vector<8x128xf32>
    %c7 = arith.constant 7 : index
    %c0_22 = arith.constant 0 : index
    %c0_23 = arith.constant 0 : index
    %22 = vector.load %arg1[%c7, %c0_22, %c0_23] : memref<8x8x128xf32, #tpu.memory_space<vmem>>, vector<1x8x128xf32>
    %23 = vector.shape_cast %22 : vector<1x8x128xf32> to vector<8x128xf32>
    %cst_24 = arith.constant dense<0.000000e+00> : vector<8x128xf32>
    %24 = tpu.matmul %0, %23, %cst_24 {dimension_numbers = #tpu.dot_dimension_numbers<[1], [0], [0], [1], [0, 0, 1, 1], [], []>} : vector<8x8xf32>, vector<8x128xf32>, vector<8x128xf32> -> vector<8x128xf32>
    %c0_25 = arith.constant 0 : index
    %c0_26 = arith.constant 0 : index
    %c0_27 = arith.constant 0 : index
    %25 = vector.load %arg1[%c0_25, %c0_26, %c0_27] : memref<8x8x128xf32, #tpu.memory_space<vmem>>, vector<1x8x128xf32>
    %26 = vector.shape_cast %25 : vector<1x8x128xf32> to vector<8x128xf32>
    %cst_28 = arith.constant dense<0xFF800000> : vector<128xf32>
    %27 = vector.multi_reduction <maximumf>, %26, %cst_28 [0] : vector<8x128xf32> to vector<128xf32>
    %28 = vector.shape_cast %27 : vector<128xf32> to vector<1x128xf32>
    %cst_29 = arith.constant 0.000000e+00 : f32
    %29 = vector.broadcast %cst_29 : f32 to vector<1x128xf32>
    %30 = arith.cmpf one, %28, %29 : vector<1x128xf32>
    %31 = arith.extui %30 : vector<1x128xi1> to vector<1x128xi32>
    %32 = arith.sitofp %31 : vector<1x128xi32> to vector<1x128xf32>
    %c1_30 = arith.constant 1 : index
    %c0_31 = arith.constant 0 : index
    %c0_32 = arith.constant 0 : index
    %33 = vector.load %arg1[%c1_30, %c0_31, %c0_32] : memref<8x8x128xf32, #tpu.memory_space<vmem>>, vector<1x8x128xf32>
    %34 = vector.shape_cast %33 : vector<1x8x128xf32> to vector<8x128xf32>
    %cst_33 = arith.constant dense<0xFF800000> : vector<128xf32>
    %35 = vector.multi_reduction <maximumf>, %34, %cst_33 [0] : vector<8x128xf32> to vector<128xf32>
    %36 = vector.shape_cast %35 : vector<128xf32> to vector<1x128xf32>
    %cst_34 = arith.constant 0.000000e+00 : f32
    %37 = vector.broadcast %cst_34 : f32 to vector<1x128xf32>
    %38 = arith.cmpf one, %36, %37 : vector<1x128xf32>
    %39 = arith.extui %38 : vector<1x128xi1> to vector<1x128xi32>
    %40 = arith.sitofp %39 : vector<1x128xi32> to vector<1x128xf32>
    %c2_35 = arith.constant 2 : index
    %c0_36 = arith.constant 0 : index
    %c0_37 = arith.constant 0 : index
    %41 = vector.load %arg1[%c2_35, %c0_36, %c0_37] : memref<8x8x128xf32, #tpu.memory_space<vmem>>, vector<1x8x128xf32>
    %42 = vector.shape_cast %41 : vector<1x8x128xf32> to vector<8x128xf32>
    %cst_38 = arith.constant dense<0xFF800000> : vector<128xf32>
    %43 = vector.multi_reduction <maximumf>, %42, %cst_38 [0] : vector<8x128xf32> to vector<128xf32>
    %44 = vector.shape_cast %43 : vector<128xf32> to vector<1x128xf32>
    %cst_39 = arith.constant 0.000000e+00 : f32
    %45 = vector.broadcast %cst_39 : f32 to vector<1x128xf32>
    %46 = arith.cmpf one, %44, %45 : vector<1x128xf32>
    %47 = arith.extui %46 : vector<1x128xi1> to vector<1x128xi32>
    %48 = arith.sitofp %47 : vector<1x128xi32> to vector<1x128xf32>
    %c3_40 = arith.constant 3 : index
    %c0_41 = arith.constant 0 : index
    %c0_42 = arith.constant 0 : index
    %49 = vector.load %arg1[%c3_40, %c0_41, %c0_42] : memref<8x8x128xf32, #tpu.memory_space<vmem>>, vector<1x8x128xf32>
    %50 = vector.shape_cast %49 : vector<1x8x128xf32> to vector<8x128xf32>
    %cst_43 = arith.constant dense<0xFF800000> : vector<128xf32>
    %51 = vector.multi_reduction <maximumf>, %50, %cst_43 [0] : vector<8x128xf32> to vector<128xf32>
    %52 = vector.shape_cast %51 : vector<128xf32> to vector<1x128xf32>
    %cst_44 = arith.constant 0.000000e+00 : f32
    %53 = vector.broadcast %cst_44 : f32 to vector<1x128xf32>
    %54 = arith.cmpf one, %52, %53 : vector<1x128xf32>
    %55 = arith.extui %54 : vector<1x128xi1> to vector<1x128xi32>
    %56 = arith.sitofp %55 : vector<1x128xi32> to vector<1x128xf32>
    %c4_45 = arith.constant 4 : index
    %c0_46 = arith.constant 0 : index
    %c0_47 = arith.constant 0 : index
    %57 = vector.load %arg1[%c4_45, %c0_46, %c0_47] : memref<8x8x128xf32, #tpu.memory_space<vmem>>, vector<1x8x128xf32>
    %58 = vector.shape_cast %57 : vector<1x8x128xf32> to vector<8x128xf32>
    %cst_48 = arith.constant dense<0xFF800000> : vector<128xf32>
    %59 = vector.multi_reduction <maximumf>, %58, %cst_48 [0] : vector<8x128xf32> to vector<128xf32>
    %60 = vector.shape_cast %59 : vector<128xf32> to vector<1x128xf32>
    %cst_49 = arith.constant 0.000000e+00 : f32
    %61 = vector.broadcast %cst_49 : f32 to vector<1x128xf32>
    %62 = arith.cmpf one, %60, %61 : vector<1x128xf32>
    %63 = arith.extui %62 : vector<1x128xi1> to vector<1x128xi32>
    %64 = arith.sitofp %63 : vector<1x128xi32> to vector<1x128xf32>
    %c5_50 = arith.constant 5 : index
    %c0_51 = arith.constant 0 : index
    %c0_52 = arith.constant 0 : index
    %65 = vector.load %arg1[%c5_50, %c0_51, %c0_52] : memref<8x8x128xf32, #tpu.memory_space<vmem>>, vector<1x8x128xf32>
    %66 = vector.shape_cast %65 : vector<1x8x128xf32> to vector<8x128xf32>
    %cst_53 = arith.constant dense<0xFF800000> : vector<128xf32>
    %67 = vector.multi_reduction <maximumf>, %66, %cst_53 [0] : vector<8x128xf32> to vector<128xf32>
    %68 = vector.shape_cast %67 : vector<128xf32> to vector<1x128xf32>
    %cst_54 = arith.constant 0.000000e+00 : f32
    %69 = vector.broadcast %cst_54 : f32 to vector<1x128xf32>
    %70 = arith.cmpf one, %68, %69 : vector<1x128xf32>
    %71 = arith.extui %70 : vector<1x128xi1> to vector<1x128xi32>
    %72 = arith.sitofp %71 : vector<1x128xi32> to vector<1x128xf32>
    %c6_55 = arith.constant 6 : index
    %c0_56 = arith.constant 0 : index
    %c0_57 = arith.constant 0 : index
    %73 = vector.load %arg1[%c6_55, %c0_56, %c0_57] : memref<8x8x128xf32, #tpu.memory_space<vmem>>, vector<1x8x128xf32>
    %74 = vector.shape_cast %73 : vector<1x8x128xf32> to vector<8x128xf32>
    %cst_58 = arith.constant dense<0xFF800000> : vector<128xf32>
    %75 = vector.multi_reduction <maximumf>, %74, %cst_58 [0] : vector<8x128xf32> to vector<128xf32>
    %76 = vector.shape_cast %75 : vector<128xf32> to vector<1x128xf32>
    %cst_59 = arith.constant 0.000000e+00 : f32
    %77 = vector.broadcast %cst_59 : f32 to vector<1x128xf32>
    %78 = arith.cmpf one, %76, %77 : vector<1x128xf32>
    %79 = arith.extui %78 : vector<1x128xi1> to vector<1x128xi32>
    %80 = arith.sitofp %79 : vector<1x128xi32> to vector<1x128xf32>
    %c7_60 = arith.constant 7 : index
    %c0_61 = arith.constant 0 : index
    %c0_62 = arith.constant 0 : index
    %81 = vector.load %arg1[%c7_60, %c0_61, %c0_62] : memref<8x8x128xf32, #tpu.memory_space<vmem>>, vector<1x8x128xf32>
    %82 = vector.shape_cast %81 : vector<1x8x128xf32> to vector<8x128xf32>
    %cst_63 = arith.constant dense<0xFF800000> : vector<128xf32>
    %83 = vector.multi_reduction <maximumf>, %82, %cst_63 [0] : vector<8x128xf32> to vector<128xf32>
    %84 = vector.shape_cast %83 : vector<128xf32> to vector<1x128xf32>
    %cst_64 = arith.constant 0.000000e+00 : f32
    %85 = vector.broadcast %cst_64 : f32 to vector<1x128xf32>
    %86 = arith.cmpf one, %84, %85 : vector<1x128xf32>
    %87 = arith.extui %86 : vector<1x128xi1> to vector<1x128xi32>
    %88 = arith.sitofp %87 : vector<1x128xi32> to vector<1x128xf32>
    %c0_65 = arith.constant 0 : index
    %c0_66 = arith.constant 0 : index
    %89 = vector.load %arg3[%c0_65, %c0_66] : memref<8x1xf32, #tpu.memory_space<vmem>>, vector<8x1xf32>
    %c0_67 = arith.constant 0 : index
    %c0_68 = arith.constant 0 : index
    %90 = vector.load %arg4[%c0_67, %c0_68] : memref<8x1xf32, #tpu.memory_space<vmem>>, vector<8x1xf32>
    %91 = vector.broadcast %89 : vector<8x1xf32> to vector<8x128xf32>
    %92 = arith.mulf %3, %91 : vector<8x128xf32>
    %93 = vector.broadcast %90 : vector<8x1xf32> to vector<8x128xf32>
    %94 = arith.addf %92, %93 : vector<8x128xf32>
    %cst_69 = arith.constant 0.000000e+00 : f32
    %95 = vector.broadcast %cst_69 : f32 to vector<8x128xf32>
    %96 = arith.maximumf %94, %95 : vector<8x128xf32>
    %97 = vector.broadcast %89 : vector<8x1xf32> to vector<8x128xf32>
    %98 = arith.mulf %6, %97 : vector<8x128xf32>
    %99 = vector.broadcast %90 : vector<8x1xf32> to vector<8x128xf32>
    %100 = arith.addf %98, %99 : vector<8x128xf32>
    %cst_70 = arith.constant 0.000000e+00 : f32
    %101 = vector.broadcast %cst_70 : f32 to vector<8x128xf32>
    %102 = arith.maximumf %100, %101 : vector<8x128xf32>
    %103 = vector.broadcast %89 : vector<8x1xf32> to vector<8x128xf32>
    %104 = arith.mulf %9, %103 : vector<8x128xf32>
    %105 = vector.broadcast %90 : vector<8x1xf32> to vector<8x128xf32>
    %106 = arith.addf %104, %105 : vector<8x128xf32>
    %cst_71 = arith.constant 0.000000e+00 : f32
    %107 = vector.broadcast %cst_71 : f32 to vector<8x128xf32>
    %108 = arith.maximumf %106, %107 : vector<8x128xf32>
    %109 = vector.broadcast %89 : vector<8x1xf32> to vector<8x128xf32>
    %110 = arith.mulf %12, %109 : vector<8x128xf32>
    %111 = vector.broadcast %90 : vector<8x1xf32> to vector<8x128xf32>
    %112 = arith.addf %110, %111 : vector<8x128xf32>
    %cst_72 = arith.constant 0.000000e+00 : f32
    %113 = vector.broadcast %cst_72 : f32 to vector<8x128xf32>
    %114 = arith.maximumf %112, %113 : vector<8x128xf32>
    %115 = vector.broadcast %89 : vector<8x1xf32> to vector<8x128xf32>
    %116 = arith.mulf %15, %115 : vector<8x128xf32>
    %117 = vector.broadcast %90 : vector<8x1xf32> to vector<8x128xf32>
    %118 = arith.addf %116, %117 : vector<8x128xf32>
    %cst_73 = arith.constant 0.000000e+00 : f32
    %119 = vector.broadcast %cst_73 : f32 to vector<8x128xf32>
    %120 = arith.maximumf %118, %119 : vector<8x128xf32>
    %121 = vector.broadcast %89 : vector<8x1xf32> to vector<8x128xf32>
    %122 = arith.mulf %18, %121 : vector<8x128xf32>
    %123 = vector.broadcast %90 : vector<8x1xf32> to vector<8x128xf32>
    %124 = arith.addf %122, %123 : vector<8x128xf32>
    %cst_74 = arith.constant 0.000000e+00 : f32
    %125 = vector.broadcast %cst_74 : f32 to vector<8x128xf32>
    %126 = arith.maximumf %124, %125 : vector<8x128xf32>
    %127 = vector.broadcast %89 : vector<8x1xf32> to vector<8x128xf32>
    %128 = arith.mulf %21, %127 : vector<8x128xf32>
    %129 = vector.broadcast %90 : vector<8x1xf32> to vector<8x128xf32>
    %130 = arith.addf %128, %129 : vector<8x128xf32>
    %cst_75 = arith.constant 0.000000e+00 : f32
    %131 = vector.broadcast %cst_75 : f32 to vector<8x128xf32>
    %132 = arith.maximumf %130, %131 : vector<8x128xf32>
    %133 = vector.broadcast %89 : vector<8x1xf32> to vector<8x128xf32>
    %134 = arith.mulf %24, %133 : vector<8x128xf32>
    %135 = vector.broadcast %90 : vector<8x1xf32> to vector<8x128xf32>
    %136 = arith.addf %134, %135 : vector<8x128xf32>
    %cst_76 = arith.constant 0.000000e+00 : f32
    %137 = vector.broadcast %cst_76 : f32 to vector<8x128xf32>
    %138 = arith.maximumf %136, %137 : vector<8x128xf32>
    %139 = arith.maximumf %96, %102 : vector<8x128xf32>
    %140 = arith.maximumf %139, %108 : vector<8x128xf32>
    %141 = arith.maximumf %140, %114 : vector<8x128xf32>
    %142 = arith.maximumf %141, %120 : vector<8x128xf32>
    %143 = arith.maximumf %142, %126 : vector<8x128xf32>
    %144 = arith.maximumf %143, %132 : vector<8x128xf32>
    %145 = arith.maximumf %144, %138 : vector<8x128xf32>
    %c0_77 = arith.constant 0 : index
    %c0_78 = arith.constant 0 : index
    %146 = vector.load %arg5[%c0_77, %c0_78] : memref<16x8xf32, #tpu.memory_space<vmem>>, vector<16x8xf32>
    %c0_79 = arith.constant 0 : index
    %c0_80 = arith.constant 0 : index
    %147 = vector.load %arg6[%c0_79, %c0_80] : memref<16x8xf32, #tpu.memory_space<vmem>>, vector<16x8xf32>
    %cst_81 = arith.constant dense<0.000000e+00> : vector<16x128xf32>
    %148 = tpu.matmul %147, %145, %cst_81 {dimension_numbers = #tpu.dot_dimension_numbers<[1], [0], [0], [1], [0, 0, 1, 1], [], []>} : vector<16x8xf32>, vector<8x128xf32>, vector<16x128xf32> -> vector<16x128xf32>
    %149 = vector.broadcast %32 : vector<1x128xf32> to vector<8x128xf32>
    %150 = arith.mulf %96, %149 : vector<8x128xf32>
    %cst_82 = arith.constant dense<0.000000e+00> : vector<16x128xf32>
    %151 = tpu.matmul %146, %150, %cst_82 {dimension_numbers = #tpu.dot_dimension_numbers<[1], [0], [0], [1], [0, 0, 1, 1], [], []>} : vector<16x8xf32>, vector<8x128xf32>, vector<16x128xf32> -> vector<16x128xf32>
    %152 = vector.broadcast %32 : vector<1x128xf32> to vector<16x128xf32>
    %153 = arith.mulf %148, %152 : vector<16x128xf32>
    %154 = arith.addf %151, %153 : vector<16x128xf32>
    %155 = vector.broadcast %40 : vector<1x128xf32> to vector<8x128xf32>
    %156 = arith.mulf %102, %155 : vector<8x128xf32>
    %cst_83 = arith.constant dense<0.000000e+00> : vector<16x128xf32>
    %157 = tpu.matmul %146, %156, %cst_83 {dimension_numbers = #tpu.dot_dimension_numbers<[1], [0], [0], [1], [0, 0, 1, 1], [], []>} : vector<16x8xf32>, vector<8x128xf32>, vector<16x128xf32> -> vector<16x128xf32>
    %158 = vector.broadcast %40 : vector<1x128xf32> to vector<16x128xf32>
    %159 = arith.mulf %148, %158 : vector<16x128xf32>
    %160 = arith.addf %157, %159 : vector<16x128xf32>
    %161 = vector.broadcast %48 : vector<1x128xf32> to vector<8x128xf32>
    %162 = arith.mulf %108, %161 : vector<8x128xf32>
    %cst_84 = arith.constant dense<0.000000e+00> : vector<16x128xf32>
    %163 = tpu.matmul %146, %162, %cst_84 {dimension_numbers = #tpu.dot_dimension_numbers<[1], [0], [0], [1], [0, 0, 1, 1], [], []>} : vector<16x8xf32>, vector<8x128xf32>, vector<16x128xf32> -> vector<16x128xf32>
    %164 = vector.broadcast %48 : vector<1x128xf32> to vector<16x128xf32>
    %165 = arith.mulf %148, %164 : vector<16x128xf32>
    %166 = arith.addf %163, %165 : vector<16x128xf32>
    %167 = vector.broadcast %56 : vector<1x128xf32> to vector<8x128xf32>
    %168 = arith.mulf %114, %167 : vector<8x128xf32>
    %cst_85 = arith.constant dense<0.000000e+00> : vector<16x128xf32>
    %169 = tpu.matmul %146, %168, %cst_85 {dimension_numbers = #tpu.dot_dimension_numbers<[1], [0], [0], [1], [0, 0, 1, 1], [], []>} : vector<16x8xf32>, vector<8x128xf32>, vector<16x128xf32> -> vector<16x128xf32>
    %170 = vector.broadcast %56 : vector<1x128xf32> to vector<16x128xf32>
    %171 = arith.mulf %148, %170 : vector<16x128xf32>
    %172 = arith.addf %169, %171 : vector<16x128xf32>
    %173 = vector.broadcast %64 : vector<1x128xf32> to vector<8x128xf32>
    %174 = arith.mulf %120, %173 : vector<8x128xf32>
    %cst_86 = arith.constant dense<0.000000e+00> : vector<16x128xf32>
    %175 = tpu.matmul %146, %174, %cst_86 {dimension_numbers = #tpu.dot_dimension_numbers<[1], [0], [0], [1], [0, 0, 1, 1], [], []>} : vector<16x8xf32>, vector<8x128xf32>, vector<16x128xf32> -> vector<16x128xf32>
    %176 = vector.broadcast %64 : vector<1x128xf32> to vector<16x128xf32>
    %177 = arith.mulf %148, %176 : vector<16x128xf32>
    %178 = arith.addf %175, %177 : vector<16x128xf32>
    %179 = vector.broadcast %72 : vector<1x128xf32> to vector<8x128xf32>
    %180 = arith.mulf %126, %179 : vector<8x128xf32>
    %cst_87 = arith.constant dense<0.000000e+00> : vector<16x128xf32>
    %181 = tpu.matmul %146, %180, %cst_87 {dimension_numbers = #tpu.dot_dimension_numbers<[1], [0], [0], [1], [0, 0, 1, 1], [], []>} : vector<16x8xf32>, vector<8x128xf32>, vector<16x128xf32> -> vector<16x128xf32>
    %182 = vector.broadcast %72 : vector<1x128xf32> to vector<16x128xf32>
    %183 = arith.mulf %148, %182 : vector<16x128xf32>
    %184 = arith.addf %181, %183 : vector<16x128xf32>
    %185 = vector.broadcast %80 : vector<1x128xf32> to vector<8x128xf32>
    %186 = arith.mulf %132, %185 : vector<8x128xf32>
    %cst_88 = arith.constant dense<0.000000e+00> : vector<16x128xf32>
    %187 = tpu.matmul %146, %186, %cst_88 {dimension_numbers = #tpu.dot_dimension_numbers<[1], [0], [0], [1], [0, 0, 1, 1], [], []>} : vector<16x8xf32>, vector<8x128xf32>, vector<16x128xf32> -> vector<16x128xf32>
    %188 = vector.broadcast %80 : vector<1x128xf32> to vector<16x128xf32>
    %189 = arith.mulf %148, %188 : vector<16x128xf32>
    %190 = arith.addf %187, %189 : vector<16x128xf32>
    %191 = vector.broadcast %88 : vector<1x128xf32> to vector<8x128xf32>
    %192 = arith.mulf %138, %191 : vector<8x128xf32>
    %cst_89 = arith.constant dense<0.000000e+00> : vector<16x128xf32>
    %193 = tpu.matmul %146, %192, %cst_89 {dimension_numbers = #tpu.dot_dimension_numbers<[1], [0], [0], [1], [0, 0, 1, 1], [], []>} : vector<16x8xf32>, vector<8x128xf32>, vector<16x128xf32> -> vector<16x128xf32>
    %194 = vector.broadcast %88 : vector<1x128xf32> to vector<16x128xf32>
    %195 = arith.mulf %148, %194 : vector<16x128xf32>
    %196 = arith.addf %193, %195 : vector<16x128xf32>
    %197 = arith.mulf %154, %154 : vector<16x128xf32>
    %198 = arith.addf %154, %160 : vector<16x128xf32>
    %199 = arith.mulf %160, %160 : vector<16x128xf32>
    %200 = arith.addf %197, %199 : vector<16x128xf32>
    %201 = arith.addf %198, %166 : vector<16x128xf32>
    %202 = arith.mulf %166, %166 : vector<16x128xf32>
    %203 = arith.addf %200, %202 : vector<16x128xf32>
    %204 = arith.addf %201, %172 : vector<16x128xf32>
    %205 = arith.mulf %172, %172 : vector<16x128xf32>
    %206 = arith.addf %203, %205 : vector<16x128xf32>
    %207 = arith.addf %204, %178 : vector<16x128xf32>
    %208 = arith.mulf %178, %178 : vector<16x128xf32>
    %209 = arith.addf %206, %208 : vector<16x128xf32>
    %210 = arith.addf %207, %184 : vector<16x128xf32>
    %211 = arith.mulf %184, %184 : vector<16x128xf32>
    %212 = arith.addf %209, %211 : vector<16x128xf32>
    %213 = arith.addf %210, %190 : vector<16x128xf32>
    %214 = arith.mulf %190, %190 : vector<16x128xf32>
    %215 = arith.addf %212, %214 : vector<16x128xf32>
    %216 = arith.addf %213, %196 : vector<16x128xf32>
    %217 = arith.mulf %196, %196 : vector<16x128xf32>
    %218 = arith.addf %215, %217 : vector<16x128xf32>
    %cst_90 = arith.constant dense<0.000000e+00> : vector<16xf32>
    %219 = vector.multi_reduction <add>, %216, %cst_90 [1] : vector<16x128xf32> to vector<16xf32>
    %220 = vector.shape_cast %219 : vector<16xf32> to vector<16x1xf32>
    %cst_91 = arith.constant dense<0.000000e+00> : vector<16xf32>
    %221 = vector.multi_reduction <add>, %218, %cst_91 [1] : vector<16x128xf32> to vector<16xf32>
    %222 = vector.shape_cast %221 : vector<16xf32> to vector<16x1xf32>
    %223 = tpu.concatenate %220, %222 in 1 : vector<16x1xf32>, vector<16x1xf32> -> vector<16x2xf32>
    %224 = vector.shape_cast %223 : vector<16x2xf32> to vector<1x16x2xf32>
    %c0_92 = arith.constant 0 : index
    %c0_93 = arith.constant 0 : index
    %c0_94 = arith.constant 0 : index
    %225 = vector.load %arg7[%c0_92, %c0_93, %c0_94] : memref<1x16x2xf32, #tpu.memory_space<vmem>>, vector<1x16x2xf32>
    tpu.vector_store %arg7[%c0_92, %c0_93, %c0_94], %224 {strides = array<i32>} : memref<1x16x2xf32, #tpu.memory_space<vmem>>, vector<1x16x2xf32>,
    return
  }
  func.func @transform_0(%arg0: i32) -> (i32, i32, i32) {
    %c0_i32 = arith.constant 0 : i32
    %c0_i32_0 = arith.constant 0 : i32
    %c0_i32_1 = arith.constant 0 : i32
    return %c0_i32, %c0_i32_0, %arg0 : i32, i32, i32
  }
  func.func @transform_1(%arg0: i32) -> (i32, i32) {
    %c0_i32 = arith.constant 0 : i32
    %c0_i32_0 = arith.constant 0 : i32
    %c0_i32_1 = arith.constant 0 : i32
    return %c0_i32, %c0_i32_0 : i32, i32
  }
  func.func @transform_2(%arg0: i32) -> (i32, i32) {
    %c0_i32 = arith.constant 0 : i32
    %c0_i32_0 = arith.constant 0 : i32
    %c0_i32_1 = arith.constant 0 : i32
    return %c0_i32, %c0_i32_0 : i32, i32
  }
  func.func @transform_3(%arg0: i32) -> (i32, i32) {
    %c0_i32 = arith.constant 0 : i32
    %c0_i32_0 = arith.constant 0 : i32
    %c0_i32_1 = arith.constant 0 : i32
    return %c0_i32, %c0_i32_0 : i32, i32
  }
  func.func @transform_4(%arg0: i32) -> (i32, i32) {
    %c0_i32 = arith.constant 0 : i32
    %c0_i32_0 = arith.constant 0 : i32
    %c0_i32_1 = arith.constant 0 : i32
    return %c0_i32, %c0_i32_0 : i32, i32
  }
  func.func @transform_5(%arg0: i32) -> (i32, i32) {
    %c0_i32 = arith.constant 0 : i32
    %c0_i32_0 = arith.constant 0 : i32
    %c0_i32_1 = arith.constant 0 : i32
    return %c0_i32, %c0_i32_0 : i32, i32
  }
  func.func @transform_6(%arg0: i32) -> (i32, i32, i32) {
    %c0_i32 = arith.constant 0 : i32
    %c0_i32_0 = arith.constant 0 : i32
    %c0_i32_1 = arith.constant 0 : i32
    return %arg0, %c0_i32, %c0_i32_0 : i32, i32, i32
  }
}

module attributes {stable_mosaic.version = 11 : i64} {
  func.func @_logits_kernel(%arg0: i32, %arg1: memref<8x8x128xf32, #tpu.memory_space<vmem>>, %arg2: memref<8x8xf32, #tpu.memory_space<vmem>>, %arg3: memref<8x1xf32, #tpu.memory_space<vmem>>, %arg4: memref<8x1xf32, #tpu.memory_space<vmem>>, %arg5: memref<16x8xf32, #tpu.memory_space<vmem>>, %arg6: memref<16x8xf32, #tpu.memory_space<vmem>>, %arg7: memref<16x1xf32, #tpu.memory_space<vmem>>, %arg8: memref<16x1xf32, #tpu.memory_space<vmem>>, %arg9: memref<2x16xf32, #tpu.memory_space<vmem>>, %arg10: memref<2x16xf32, #tpu.memory_space<vmem>>, %arg11: memref<2x128xf32, #tpu.memory_space<vmem>>, %arg12: memref<1x2x2xf32, #tpu.memory_space<vmem>>) attributes {dimension_semantics = [#tpu.dimension_semantics<parallel>], iteration_bounds = array<i64: 4>, scalar_prefetch = 0 : i64, scratch_operands = 0 : i64, tpu.core_type = #tpu.core_type<tc>, window_params = [{transform_indices = @transform_0, window_bounds = array<i64: 8, 8, 128>}, {pipeline_mode = #tpu.pipeline_mode<synchronous>, transform_indices = @transform_1, window_bounds = array<i64: 8, 8>}, {pipeline_mode = #tpu.pipeline_mode<synchronous>, transform_indices = @transform_2, window_bounds = array<i64: 8, 1>}, {pipeline_mode = #tpu.pipeline_mode<synchronous>, transform_indices = @transform_3, window_bounds = array<i64: 8, 1>}, {pipeline_mode = #tpu.pipeline_mode<synchronous>, transform_indices = @transform_4, window_bounds = array<i64: 16, 8>}, {pipeline_mode = #tpu.pipeline_mode<synchronous>, transform_indices = @transform_5, window_bounds = array<i64: 16, 8>}, {pipeline_mode = #tpu.pipeline_mode<synchronous>, transform_indices = @transform_6, window_bounds = array<i64: 16, 1>}, {pipeline_mode = #tpu.pipeline_mode<synchronous>, transform_indices = @transform_7, window_bounds = array<i64: 16, 1>}, {pipeline_mode = #tpu.pipeline_mode<synchronous>, transform_indices = @transform_8, window_bounds = array<i64: 2, 16>}, {pipeline_mode = #tpu.pipeline_mode<synchronous>, transform_indices = @transform_9, window_bounds = array<i64: 2, 16>}, {transform_indices = @transform_10, window_bounds = array<i64: 2, 128>}, {transform_indices = @transform_11, window_bounds = array<i64: 1, 2, 2>}]} {
    %c0 = arith.constant 0 : index
    %c0_0 = arith.constant 0 : index
    %0 = vector.load %arg2[%c0, %c0_0] : memref<8x8xf32, #tpu.memory_space<vmem>>, vector<8x8xf32>
    %c0_1 = arith.constant 0 : index
    %c0_2 = arith.constant 0 : index
    %c0_3 = arith.constant 0 : index
    %1 = vector.load %arg1[%c0_1, %c0_2, %c0_3] : memref<8x8x128xf32, #tpu.memory_space<vmem>>, vector<1x8x128xf32>
    %2 = vector.shape_cast %1 : vector<1x8x128xf32> to vector<8x128xf32>
    %cst = arith.constant dense<0.000000e+00> : vector<8x128xf32>
    %3 = tpu.matmul %0, %2, %cst {dimension_numbers = #tpu.dot_dimension_numbers<[1], [0], [0], [1], [0, 0, 1, 1], [], []>} : vector<8x8xf32>, vector<8x128xf32>, vector<8x128xf32> -> vector<8x128xf32>
    %c1 = arith.constant 1 : index
    %c0_4 = arith.constant 0 : index
    %c0_5 = arith.constant 0 : index
    %4 = vector.load %arg1[%c1, %c0_4, %c0_5] : memref<8x8x128xf32, #tpu.memory_space<vmem>>, vector<1x8x128xf32>
    %5 = vector.shape_cast %4 : vector<1x8x128xf32> to vector<8x128xf32>
    %cst_6 = arith.constant dense<0.000000e+00> : vector<8x128xf32>
    %6 = tpu.matmul %0, %5, %cst_6 {dimension_numbers = #tpu.dot_dimension_numbers<[1], [0], [0], [1], [0, 0, 1, 1], [], []>} : vector<8x8xf32>, vector<8x128xf32>, vector<8x128xf32> -> vector<8x128xf32>
    %c2 = arith.constant 2 : index
    %c0_7 = arith.constant 0 : index
    %c0_8 = arith.constant 0 : index
    %7 = vector.load %arg1[%c2, %c0_7, %c0_8] : memref<8x8x128xf32, #tpu.memory_space<vmem>>, vector<1x8x128xf32>
    %8 = vector.shape_cast %7 : vector<1x8x128xf32> to vector<8x128xf32>
    %cst_9 = arith.constant dense<0.000000e+00> : vector<8x128xf32>
    %9 = tpu.matmul %0, %8, %cst_9 {dimension_numbers = #tpu.dot_dimension_numbers<[1], [0], [0], [1], [0, 0, 1, 1], [], []>} : vector<8x8xf32>, vector<8x128xf32>, vector<8x128xf32> -> vector<8x128xf32>
    %c3 = arith.constant 3 : index
    %c0_10 = arith.constant 0 : index
    %c0_11 = arith.constant 0 : index
    %10 = vector.load %arg1[%c3, %c0_10, %c0_11] : memref<8x8x128xf32, #tpu.memory_space<vmem>>, vector<1x8x128xf32>
    %11 = vector.shape_cast %10 : vector<1x8x128xf32> to vector<8x128xf32>
    %cst_12 = arith.constant dense<0.000000e+00> : vector<8x128xf32>
    %12 = tpu.matmul %0, %11, %cst_12 {dimension_numbers = #tpu.dot_dimension_numbers<[1], [0], [0], [1], [0, 0, 1, 1], [], []>} : vector<8x8xf32>, vector<8x128xf32>, vector<8x128xf32> -> vector<8x128xf32>
    %c4 = arith.constant 4 : index
    %c0_13 = arith.constant 0 : index
    %c0_14 = arith.constant 0 : index
    %13 = vector.load %arg1[%c4, %c0_13, %c0_14] : memref<8x8x128xf32, #tpu.memory_space<vmem>>, vector<1x8x128xf32>
    %14 = vector.shape_cast %13 : vector<1x8x128xf32> to vector<8x128xf32>
    %cst_15 = arith.constant dense<0.000000e+00> : vector<8x128xf32>
    %15 = tpu.matmul %0, %14, %cst_15 {dimension_numbers = #tpu.dot_dimension_numbers<[1], [0], [0], [1], [0, 0, 1, 1], [], []>} : vector<8x8xf32>, vector<8x128xf32>, vector<8x128xf32> -> vector<8x128xf32>
    %c5 = arith.constant 5 : index
    %c0_16 = arith.constant 0 : index
    %c0_17 = arith.constant 0 : index
    %16 = vector.load %arg1[%c5, %c0_16, %c0_17] : memref<8x8x128xf32, #tpu.memory_space<vmem>>, vector<1x8x128xf32>
    %17 = vector.shape_cast %16 : vector<1x8x128xf32> to vector<8x128xf32>
    %cst_18 = arith.constant dense<0.000000e+00> : vector<8x128xf32>
    %18 = tpu.matmul %0, %17, %cst_18 {dimension_numbers = #tpu.dot_dimension_numbers<[1], [0], [0], [1], [0, 0, 1, 1], [], []>} : vector<8x8xf32>, vector<8x128xf32>, vector<8x128xf32> -> vector<8x128xf32>
    %c6 = arith.constant 6 : index
    %c0_19 = arith.constant 0 : index
    %c0_20 = arith.constant 0 : index
    %19 = vector.load %arg1[%c6, %c0_19, %c0_20] : memref<8x8x128xf32, #tpu.memory_space<vmem>>, vector<1x8x128xf32>
    %20 = vector.shape_cast %19 : vector<1x8x128xf32> to vector<8x128xf32>
    %cst_21 = arith.constant dense<0.000000e+00> : vector<8x128xf32>
    %21 = tpu.matmul %0, %20, %cst_21 {dimension_numbers = #tpu.dot_dimension_numbers<[1], [0], [0], [1], [0, 0, 1, 1], [], []>} : vector<8x8xf32>, vector<8x128xf32>, vector<8x128xf32> -> vector<8x128xf32>
    %c7 = arith.constant 7 : index
    %c0_22 = arith.constant 0 : index
    %c0_23 = arith.constant 0 : index
    %22 = vector.load %arg1[%c7, %c0_22, %c0_23] : memref<8x8x128xf32, #tpu.memory_space<vmem>>, vector<1x8x128xf32>
    %23 = vector.shape_cast %22 : vector<1x8x128xf32> to vector<8x128xf32>
    %cst_24 = arith.constant dense<0.000000e+00> : vector<8x128xf32>
    %24 = tpu.matmul %0, %23, %cst_24 {dimension_numbers = #tpu.dot_dimension_numbers<[1], [0], [0], [1], [0, 0, 1, 1], [], []>} : vector<8x8xf32>, vector<8x128xf32>, vector<8x128xf32> -> vector<8x128xf32>
    %c0_25 = arith.constant 0 : index
    %c0_26 = arith.constant 0 : index
    %c0_27 = arith.constant 0 : index
    %25 = vector.load %arg1[%c0_25, %c0_26, %c0_27] : memref<8x8x128xf32, #tpu.memory_space<vmem>>, vector<1x8x128xf32>
    %26 = vector.shape_cast %25 : vector<1x8x128xf32> to vector<8x128xf32>
    %cst_28 = arith.constant dense<0xFF800000> : vector<128xf32>
    %27 = vector.multi_reduction <maximumf>, %26, %cst_28 [0] : vector<8x128xf32> to vector<128xf32>
    %28 = vector.shape_cast %27 : vector<128xf32> to vector<1x128xf32>
    %cst_29 = arith.constant 0.000000e+00 : f32
    %29 = vector.broadcast %cst_29 : f32 to vector<1x128xf32>
    %30 = arith.cmpf one, %28, %29 : vector<1x128xf32>
    %31 = arith.extui %30 : vector<1x128xi1> to vector<1x128xi32>
    %32 = arith.sitofp %31 : vector<1x128xi32> to vector<1x128xf32>
    %c1_30 = arith.constant 1 : index
    %c0_31 = arith.constant 0 : index
    %c0_32 = arith.constant 0 : index
    %33 = vector.load %arg1[%c1_30, %c0_31, %c0_32] : memref<8x8x128xf32, #tpu.memory_space<vmem>>, vector<1x8x128xf32>
    %34 = vector.shape_cast %33 : vector<1x8x128xf32> to vector<8x128xf32>
    %cst_33 = arith.constant dense<0xFF800000> : vector<128xf32>
    %35 = vector.multi_reduction <maximumf>, %34, %cst_33 [0] : vector<8x128xf32> to vector<128xf32>
    %36 = vector.shape_cast %35 : vector<128xf32> to vector<1x128xf32>
    %cst_34 = arith.constant 0.000000e+00 : f32
    %37 = vector.broadcast %cst_34 : f32 to vector<1x128xf32>
    %38 = arith.cmpf one, %36, %37 : vector<1x128xf32>
    %39 = arith.extui %38 : vector<1x128xi1> to vector<1x128xi32>
    %40 = arith.sitofp %39 : vector<1x128xi32> to vector<1x128xf32>
    %c2_35 = arith.constant 2 : index
    %c0_36 = arith.constant 0 : index
    %c0_37 = arith.constant 0 : index
    %41 = vector.load %arg1[%c2_35, %c0_36, %c0_37] : memref<8x8x128xf32, #tpu.memory_space<vmem>>, vector<1x8x128xf32>
    %42 = vector.shape_cast %41 : vector<1x8x128xf32> to vector<8x128xf32>
    %cst_38 = arith.constant dense<0xFF800000> : vector<128xf32>
    %43 = vector.multi_reduction <maximumf>, %42, %cst_38 [0] : vector<8x128xf32> to vector<128xf32>
    %44 = vector.shape_cast %43 : vector<128xf32> to vector<1x128xf32>
    %cst_39 = arith.constant 0.000000e+00 : f32
    %45 = vector.broadcast %cst_39 : f32 to vector<1x128xf32>
    %46 = arith.cmpf one, %44, %45 : vector<1x128xf32>
    %47 = arith.extui %46 : vector<1x128xi1> to vector<1x128xi32>
    %48 = arith.sitofp %47 : vector<1x128xi32> to vector<1x128xf32>
    %c3_40 = arith.constant 3 : index
    %c0_41 = arith.constant 0 : index
    %c0_42 = arith.constant 0 : index
    %49 = vector.load %arg1[%c3_40, %c0_41, %c0_42] : memref<8x8x128xf32, #tpu.memory_space<vmem>>, vector<1x8x128xf32>
    %50 = vector.shape_cast %49 : vector<1x8x128xf32> to vector<8x128xf32>
    %cst_43 = arith.constant dense<0xFF800000> : vector<128xf32>
    %51 = vector.multi_reduction <maximumf>, %50, %cst_43 [0] : vector<8x128xf32> to vector<128xf32>
    %52 = vector.shape_cast %51 : vector<128xf32> to vector<1x128xf32>
    %cst_44 = arith.constant 0.000000e+00 : f32
    %53 = vector.broadcast %cst_44 : f32 to vector<1x128xf32>
    %54 = arith.cmpf one, %52, %53 : vector<1x128xf32>
    %55 = arith.extui %54 : vector<1x128xi1> to vector<1x128xi32>
    %56 = arith.sitofp %55 : vector<1x128xi32> to vector<1x128xf32>
    %c4_45 = arith.constant 4 : index
    %c0_46 = arith.constant 0 : index
    %c0_47 = arith.constant 0 : index
    %57 = vector.load %arg1[%c4_45, %c0_46, %c0_47] : memref<8x8x128xf32, #tpu.memory_space<vmem>>, vector<1x8x128xf32>
    %58 = vector.shape_cast %57 : vector<1x8x128xf32> to vector<8x128xf32>
    %cst_48 = arith.constant dense<0xFF800000> : vector<128xf32>
    %59 = vector.multi_reduction <maximumf>, %58, %cst_48 [0] : vector<8x128xf32> to vector<128xf32>
    %60 = vector.shape_cast %59 : vector<128xf32> to vector<1x128xf32>
    %cst_49 = arith.constant 0.000000e+00 : f32
    %61 = vector.broadcast %cst_49 : f32 to vector<1x128xf32>
    %62 = arith.cmpf one, %60, %61 : vector<1x128xf32>
    %63 = arith.extui %62 : vector<1x128xi1> to vector<1x128xi32>
    %64 = arith.sitofp %63 : vector<1x128xi32> to vector<1x128xf32>
    %c5_50 = arith.constant 5 : index
    %c0_51 = arith.constant 0 : index
    %c0_52 = arith.constant 0 : index
    %65 = vector.load %arg1[%c5_50, %c0_51, %c0_52] : memref<8x8x128xf32, #tpu.memory_space<vmem>>, vector<1x8x128xf32>
    %66 = vector.shape_cast %65 : vector<1x8x128xf32> to vector<8x128xf32>
    %cst_53 = arith.constant dense<0xFF800000> : vector<128xf32>
    %67 = vector.multi_reduction <maximumf>, %66, %cst_53 [0] : vector<8x128xf32> to vector<128xf32>
    %68 = vector.shape_cast %67 : vector<128xf32> to vector<1x128xf32>
    %cst_54 = arith.constant 0.000000e+00 : f32
    %69 = vector.broadcast %cst_54 : f32 to vector<1x128xf32>
    %70 = arith.cmpf one, %68, %69 : vector<1x128xf32>
    %71 = arith.extui %70 : vector<1x128xi1> to vector<1x128xi32>
    %72 = arith.sitofp %71 : vector<1x128xi32> to vector<1x128xf32>
    %c6_55 = arith.constant 6 : index
    %c0_56 = arith.constant 0 : index
    %c0_57 = arith.constant 0 : index
    %73 = vector.load %arg1[%c6_55, %c0_56, %c0_57] : memref<8x8x128xf32, #tpu.memory_space<vmem>>, vector<1x8x128xf32>
    %74 = vector.shape_cast %73 : vector<1x8x128xf32> to vector<8x128xf32>
    %cst_58 = arith.constant dense<0xFF800000> : vector<128xf32>
    %75 = vector.multi_reduction <maximumf>, %74, %cst_58 [0] : vector<8x128xf32> to vector<128xf32>
    %76 = vector.shape_cast %75 : vector<128xf32> to vector<1x128xf32>
    %cst_59 = arith.constant 0.000000e+00 : f32
    %77 = vector.broadcast %cst_59 : f32 to vector<1x128xf32>
    %78 = arith.cmpf one, %76, %77 : vector<1x128xf32>
    %79 = arith.extui %78 : vector<1x128xi1> to vector<1x128xi32>
    %80 = arith.sitofp %79 : vector<1x128xi32> to vector<1x128xf32>
    %c7_60 = arith.constant 7 : index
    %c0_61 = arith.constant 0 : index
    %c0_62 = arith.constant 0 : index
    %81 = vector.load %arg1[%c7_60, %c0_61, %c0_62] : memref<8x8x128xf32, #tpu.memory_space<vmem>>, vector<1x8x128xf32>
    %82 = vector.shape_cast %81 : vector<1x8x128xf32> to vector<8x128xf32>
    %cst_63 = arith.constant dense<0xFF800000> : vector<128xf32>
    %83 = vector.multi_reduction <maximumf>, %82, %cst_63 [0] : vector<8x128xf32> to vector<128xf32>
    %84 = vector.shape_cast %83 : vector<128xf32> to vector<1x128xf32>
    %cst_64 = arith.constant 0.000000e+00 : f32
    %85 = vector.broadcast %cst_64 : f32 to vector<1x128xf32>
    %86 = arith.cmpf one, %84, %85 : vector<1x128xf32>
    %87 = arith.extui %86 : vector<1x128xi1> to vector<1x128xi32>
    %88 = arith.sitofp %87 : vector<1x128xi32> to vector<1x128xf32>
    %c0_65 = arith.constant 0 : index
    %c0_66 = arith.constant 0 : index
    %89 = vector.load %arg3[%c0_65, %c0_66] : memref<8x1xf32, #tpu.memory_space<vmem>>, vector<8x1xf32>
    %c0_67 = arith.constant 0 : index
    %c0_68 = arith.constant 0 : index
    %90 = vector.load %arg4[%c0_67, %c0_68] : memref<8x1xf32, #tpu.memory_space<vmem>>, vector<8x1xf32>
    %91 = vector.broadcast %89 : vector<8x1xf32> to vector<8x128xf32>
    %92 = arith.mulf %3, %91 : vector<8x128xf32>
    %93 = vector.broadcast %90 : vector<8x1xf32> to vector<8x128xf32>
    %94 = arith.addf %92, %93 : vector<8x128xf32>
    %cst_69 = arith.constant 0.000000e+00 : f32
    %95 = vector.broadcast %cst_69 : f32 to vector<8x128xf32>
    %96 = arith.maximumf %94, %95 : vector<8x128xf32>
    %97 = vector.broadcast %89 : vector<8x1xf32> to vector<8x128xf32>
    %98 = arith.mulf %6, %97 : vector<8x128xf32>
    %99 = vector.broadcast %90 : vector<8x1xf32> to vector<8x128xf32>
    %100 = arith.addf %98, %99 : vector<8x128xf32>
    %cst_70 = arith.constant 0.000000e+00 : f32
    %101 = vector.broadcast %cst_70 : f32 to vector<8x128xf32>
    %102 = arith.maximumf %100, %101 : vector<8x128xf32>
    %103 = vector.broadcast %89 : vector<8x1xf32> to vector<8x128xf32>
    %104 = arith.mulf %9, %103 : vector<8x128xf32>
    %105 = vector.broadcast %90 : vector<8x1xf32> to vector<8x128xf32>
    %106 = arith.addf %104, %105 : vector<8x128xf32>
    %cst_71 = arith.constant 0.000000e+00 : f32
    %107 = vector.broadcast %cst_71 : f32 to vector<8x128xf32>
    %108 = arith.maximumf %106, %107 : vector<8x128xf32>
    %109 = vector.broadcast %89 : vector<8x1xf32> to vector<8x128xf32>
    %110 = arith.mulf %12, %109 : vector<8x128xf32>
    %111 = vector.broadcast %90 : vector<8x1xf32> to vector<8x128xf32>
    %112 = arith.addf %110, %111 : vector<8x128xf32>
    %cst_72 = arith.constant 0.000000e+00 : f32
    %113 = vector.broadcast %cst_72 : f32 to vector<8x128xf32>
    %114 = arith.maximumf %112, %113 : vector<8x128xf32>
    %115 = vector.broadcast %89 : vector<8x1xf32> to vector<8x128xf32>
    %116 = arith.mulf %15, %115 : vector<8x128xf32>
    %117 = vector.broadcast %90 : vector<8x1xf32> to vector<8x128xf32>
    %118 = arith.addf %116, %117 : vector<8x128xf32>
    %cst_73 = arith.constant 0.000000e+00 : f32
    %119 = vector.broadcast %cst_73 : f32 to vector<8x128xf32>
    %120 = arith.maximumf %118, %119 : vector<8x128xf32>
    %121 = vector.broadcast %89 : vector<8x1xf32> to vector<8x128xf32>
    %122 = arith.mulf %18, %121 : vector<8x128xf32>
    %123 = vector.broadcast %90 : vector<8x1xf32> to vector<8x128xf32>
    %124 = arith.addf %122, %123 : vector<8x128xf32>
    %cst_74 = arith.constant 0.000000e+00 : f32
    %125 = vector.broadcast %cst_74 : f32 to vector<8x128xf32>
    %126 = arith.maximumf %124, %125 : vector<8x128xf32>
    %127 = vector.broadcast %89 : vector<8x1xf32> to vector<8x128xf32>
    %128 = arith.mulf %21, %127 : vector<8x128xf32>
    %129 = vector.broadcast %90 : vector<8x1xf32> to vector<8x128xf32>
    %130 = arith.addf %128, %129 : vector<8x128xf32>
    %cst_75 = arith.constant 0.000000e+00 : f32
    %131 = vector.broadcast %cst_75 : f32 to vector<8x128xf32>
    %132 = arith.maximumf %130, %131 : vector<8x128xf32>
    %133 = vector.broadcast %89 : vector<8x1xf32> to vector<8x128xf32>
    %134 = arith.mulf %24, %133 : vector<8x128xf32>
    %135 = vector.broadcast %90 : vector<8x1xf32> to vector<8x128xf32>
    %136 = arith.addf %134, %135 : vector<8x128xf32>
    %cst_76 = arith.constant 0.000000e+00 : f32
    %137 = vector.broadcast %cst_76 : f32 to vector<8x128xf32>
    %138 = arith.maximumf %136, %137 : vector<8x128xf32>
    %139 = arith.maximumf %96, %102 : vector<8x128xf32>
    %140 = arith.maximumf %139, %108 : vector<8x128xf32>
    %141 = arith.maximumf %140, %114 : vector<8x128xf32>
    %142 = arith.maximumf %141, %120 : vector<8x128xf32>
    %143 = arith.maximumf %142, %126 : vector<8x128xf32>
    %144 = arith.maximumf %143, %132 : vector<8x128xf32>
    %145 = arith.maximumf %144, %138 : vector<8x128xf32>
    %c0_77 = arith.constant 0 : index
    %c0_78 = arith.constant 0 : index
    %146 = vector.load %arg5[%c0_77, %c0_78] : memref<16x8xf32, #tpu.memory_space<vmem>>, vector<16x8xf32>
    %c0_79 = arith.constant 0 : index
    %c0_80 = arith.constant 0 : index
    %147 = vector.load %arg6[%c0_79, %c0_80] : memref<16x8xf32, #tpu.memory_space<vmem>>, vector<16x8xf32>
    %cst_81 = arith.constant dense<0.000000e+00> : vector<16x128xf32>
    %148 = tpu.matmul %147, %145, %cst_81 {dimension_numbers = #tpu.dot_dimension_numbers<[1], [0], [0], [1], [0, 0, 1, 1], [], []>} : vector<16x8xf32>, vector<8x128xf32>, vector<16x128xf32> -> vector<16x128xf32>
    %149 = vector.broadcast %32 : vector<1x128xf32> to vector<8x128xf32>
    %150 = arith.mulf %96, %149 : vector<8x128xf32>
    %cst_82 = arith.constant dense<0.000000e+00> : vector<16x128xf32>
    %151 = tpu.matmul %146, %150, %cst_82 {dimension_numbers = #tpu.dot_dimension_numbers<[1], [0], [0], [1], [0, 0, 1, 1], [], []>} : vector<16x8xf32>, vector<8x128xf32>, vector<16x128xf32> -> vector<16x128xf32>
    %152 = vector.broadcast %32 : vector<1x128xf32> to vector<16x128xf32>
    %153 = arith.mulf %148, %152 : vector<16x128xf32>
    %154 = arith.addf %151, %153 : vector<16x128xf32>
    %155 = vector.broadcast %40 : vector<1x128xf32> to vector<8x128xf32>
    %156 = arith.mulf %102, %155 : vector<8x128xf32>
    %cst_83 = arith.constant dense<0.000000e+00> : vector<16x128xf32>
    %157 = tpu.matmul %146, %156, %cst_83 {dimension_numbers = #tpu.dot_dimension_numbers<[1], [0], [0], [1], [0, 0, 1, 1], [], []>} : vector<16x8xf32>, vector<8x128xf32>, vector<16x128xf32> -> vector<16x128xf32>
    %158 = vector.broadcast %40 : vector<1x128xf32> to vector<16x128xf32>
    %159 = arith.mulf %148, %158 : vector<16x128xf32>
    %160 = arith.addf %157, %159 : vector<16x128xf32>
    %161 = vector.broadcast %48 : vector<1x128xf32> to vector<8x128xf32>
    %162 = arith.mulf %108, %161 : vector<8x128xf32>
    %cst_84 = arith.constant dense<0.000000e+00> : vector<16x128xf32>
    %163 = tpu.matmul %146, %162, %cst_84 {dimension_numbers = #tpu.dot_dimension_numbers<[1], [0], [0], [1], [0, 0, 1, 1], [], []>} : vector<16x8xf32>, vector<8x128xf32>, vector<16x128xf32> -> vector<16x128xf32>
    %164 = vector.broadcast %48 : vector<1x128xf32> to vector<16x128xf32>
    %165 = arith.mulf %148, %164 : vector<16x128xf32>
    %166 = arith.addf %163, %165 : vector<16x128xf32>
    %167 = vector.broadcast %56 : vector<1x128xf32> to vector<8x128xf32>
    %168 = arith.mulf %114, %167 : vector<8x128xf32>
    %cst_85 = arith.constant dense<0.000000e+00> : vector<16x128xf32>
    %169 = tpu.matmul %146, %168, %cst_85 {dimension_numbers = #tpu.dot_dimension_numbers<[1], [0], [0], [1], [0, 0, 1, 1], [], []>} : vector<16x8xf32>, vector<8x128xf32>, vector<16x128xf32> -> vector<16x128xf32>
    %170 = vector.broadcast %56 : vector<1x128xf32> to vector<16x128xf32>
    %171 = arith.mulf %148, %170 : vector<16x128xf32>
    %172 = arith.addf %169, %171 : vector<16x128xf32>
    %173 = vector.broadcast %64 : vector<1x128xf32> to vector<8x128xf32>
    %174 = arith.mulf %120, %173 : vector<8x128xf32>
    %cst_86 = arith.constant dense<0.000000e+00> : vector<16x128xf32>
    %175 = tpu.matmul %146, %174, %cst_86 {dimension_numbers = #tpu.dot_dimension_numbers<[1], [0], [0], [1], [0, 0, 1, 1], [], []>} : vector<16x8xf32>, vector<8x128xf32>, vector<16x128xf32> -> vector<16x128xf32>
    %176 = vector.broadcast %64 : vector<1x128xf32> to vector<16x128xf32>
    %177 = arith.mulf %148, %176 : vector<16x128xf32>
    %178 = arith.addf %175, %177 : vector<16x128xf32>
    %179 = vector.broadcast %72 : vector<1x128xf32> to vector<8x128xf32>
    %180 = arith.mulf %126, %179 : vector<8x128xf32>
    %cst_87 = arith.constant dense<0.000000e+00> : vector<16x128xf32>
    %181 = tpu.matmul %146, %180, %cst_87 {dimension_numbers = #tpu.dot_dimension_numbers<[1], [0], [0], [1], [0, 0, 1, 1], [], []>} : vector<16x8xf32>, vector<8x128xf32>, vector<16x128xf32> -> vector<16x128xf32>
    %182 = vector.broadcast %72 : vector<1x128xf32> to vector<16x128xf32>
    %183 = arith.mulf %148, %182 : vector<16x128xf32>
    %184 = arith.addf %181, %183 : vector<16x128xf32>
    %185 = vector.broadcast %80 : vector<1x128xf32> to vector<8x128xf32>
    %186 = arith.mulf %132, %185 : vector<8x128xf32>
    %cst_88 = arith.constant dense<0.000000e+00> : vector<16x128xf32>
    %187 = tpu.matmul %146, %186, %cst_88 {dimension_numbers = #tpu.dot_dimension_numbers<[1], [0], [0], [1], [0, 0, 1, 1], [], []>} : vector<16x8xf32>, vector<8x128xf32>, vector<16x128xf32> -> vector<16x128xf32>
    %188 = vector.broadcast %80 : vector<1x128xf32> to vector<16x128xf32>
    %189 = arith.mulf %148, %188 : vector<16x128xf32>
    %190 = arith.addf %187, %189 : vector<16x128xf32>
    %191 = vector.broadcast %88 : vector<1x128xf32> to vector<8x128xf32>
    %192 = arith.mulf %138, %191 : vector<8x128xf32>
    %cst_89 = arith.constant dense<0.000000e+00> : vector<16x128xf32>
    %193 = tpu.matmul %146, %192, %cst_89 {dimension_numbers = #tpu.dot_dimension_numbers<[1], [0], [0], [1], [0, 0, 1, 1], [], []>} : vector<16x8xf32>, vector<8x128xf32>, vector<16x128xf32> -> vector<16x128xf32>
    %194 = vector.broadcast %88 : vector<1x128xf32> to vector<16x128xf32>
    %195 = arith.mulf %148, %194 : vector<16x128xf32>
    %196 = arith.addf %193, %195 : vector<16x128xf32>
    %c0_90 = arith.constant 0 : index
    %c0_91 = arith.constant 0 : index
    %197 = vector.load %arg7[%c0_90, %c0_91] : memref<16x1xf32, #tpu.memory_space<vmem>>, vector<16x1xf32>
    %c0_92 = arith.constant 0 : index
    %c0_93 = arith.constant 0 : index
    %198 = vector.load %arg8[%c0_92, %c0_93] : memref<16x1xf32, #tpu.memory_space<vmem>>, vector<16x1xf32>
    %199 = vector.broadcast %197 : vector<16x1xf32> to vector<16x128xf32>
    %200 = arith.mulf %154, %199 : vector<16x128xf32>
    %201 = vector.broadcast %198 : vector<16x1xf32> to vector<16x128xf32>
    %202 = arith.addf %200, %201 : vector<16x128xf32>
    %cst_94 = arith.constant 0.000000e+00 : f32
    %203 = vector.broadcast %cst_94 : f32 to vector<16x128xf32>
    %204 = arith.maximumf %202, %203 : vector<16x128xf32>
    %205 = vector.broadcast %197 : vector<16x1xf32> to vector<16x128xf32>
    %206 = arith.mulf %160, %205 : vector<16x128xf32>
    %207 = vector.broadcast %198 : vector<16x1xf32> to vector<16x128xf32>
    %208 = arith.addf %206, %207 : vector<16x128xf32>
    %cst_95 = arith.constant 0.000000e+00 : f32
    %209 = vector.broadcast %cst_95 : f32 to vector<16x128xf32>
    %210 = arith.maximumf %208, %209 : vector<16x128xf32>
    %211 = vector.broadcast %197 : vector<16x1xf32> to vector<16x128xf32>
    %212 = arith.mulf %166, %211 : vector<16x128xf32>
    %213 = vector.broadcast %198 : vector<16x1xf32> to vector<16x128xf32>
    %214 = arith.addf %212, %213 : vector<16x128xf32>
    %cst_96 = arith.constant 0.000000e+00 : f32
    %215 = vector.broadcast %cst_96 : f32 to vector<16x128xf32>
    %216 = arith.maximumf %214, %215 : vector<16x128xf32>
    %217 = vector.broadcast %197 : vector<16x1xf32> to vector<16x128xf32>
    %218 = arith.mulf %172, %217 : vector<16x128xf32>
    %219 = vector.broadcast %198 : vector<16x1xf32> to vector<16x128xf32>
    %220 = arith.addf %218, %219 : vector<16x128xf32>
    %cst_97 = arith.constant 0.000000e+00 : f32
    %221 = vector.broadcast %cst_97 : f32 to vector<16x128xf32>
    %222 = arith.maximumf %220, %221 : vector<16x128xf32>
    %223 = vector.broadcast %197 : vector<16x1xf32> to vector<16x128xf32>
    %224 = arith.mulf %178, %223 : vector<16x128xf32>
    %225 = vector.broadcast %198 : vector<16x1xf32> to vector<16x128xf32>
    %226 = arith.addf %224, %225 : vector<16x128xf32>
    %cst_98 = arith.constant 0.000000e+00 : f32
    %227 = vector.broadcast %cst_98 : f32 to vector<16x128xf32>
    %228 = arith.maximumf %226, %227 : vector<16x128xf32>
    %229 = vector.broadcast %197 : vector<16x1xf32> to vector<16x128xf32>
    %230 = arith.mulf %184, %229 : vector<16x128xf32>
    %231 = vector.broadcast %198 : vector<16x1xf32> to vector<16x128xf32>
    %232 = arith.addf %230, %231 : vector<16x128xf32>
    %cst_99 = arith.constant 0.000000e+00 : f32
    %233 = vector.broadcast %cst_99 : f32 to vector<16x128xf32>
    %234 = arith.maximumf %232, %233 : vector<16x128xf32>
    %235 = vector.broadcast %197 : vector<16x1xf32> to vector<16x128xf32>
    %236 = arith.mulf %190, %235 : vector<16x128xf32>
    %237 = vector.broadcast %198 : vector<16x1xf32> to vector<16x128xf32>
    %238 = arith.addf %236, %237 : vector<16x128xf32>
    %cst_100 = arith.constant 0.000000e+00 : f32
    %239 = vector.broadcast %cst_100 : f32 to vector<16x128xf32>
    %240 = arith.maximumf %238, %239 : vector<16x128xf32>
    %241 = vector.broadcast %197 : vector<16x1xf32> to vector<16x128xf32>
    %242 = arith.mulf %196, %241 : vector<16x128xf32>
    %243 = vector.broadcast %198 : vector<16x1xf32> to vector<16x128xf32>
    %244 = arith.addf %242, %243 : vector<16x128xf32>
    %cst_101 = arith.constant 0.000000e+00 : f32
    %245 = vector.broadcast %cst_101 : f32 to vector<16x128xf32>
    %246 = arith.maximumf %244, %245 : vector<16x128xf32>
    %247 = arith.maximumf %204, %210 : vector<16x128xf32>
    %248 = arith.maximumf %247, %216 : vector<16x128xf32>
    %249 = arith.maximumf %248, %222 : vector<16x128xf32>
    %250 = arith.maximumf %249, %228 : vector<16x128xf32>
    %251 = arith.maximumf %250, %234 : vector<16x128xf32>
    %252 = arith.maximumf %251, %240 : vector<16x128xf32>
    %253 = arith.maximumf %252, %246 : vector<16x128xf32>
    %254 = vector.broadcast %32 : vector<1x128xf32> to vector<16x128xf32>
    %255 = arith.mulf %204, %254 : vector<16x128xf32>
    %256 = vector.broadcast %40 : vector<1x128xf32> to vector<16x128xf32>
    %257 = arith.mulf %210, %256 : vector<16x128xf32>
    %258 = arith.maximumf %255, %257 : vector<16x128xf32>
    %259 = arith.maximumf %32, %40 : vector<1x128xf32>
    %260 = vector.broadcast %48 : vector<1x128xf32> to vector<16x128xf32>
    %261 = arith.mulf %216, %260 : vector<16x128xf32>
    %262 = arith.maximumf %258, %261 : vector<16x128xf32>
    %263 = arith.maximumf %259, %48 : vector<1x128xf32>
    %264 = vector.broadcast %56 : vector<1x128xf32> to vector<16x128xf32>
    %265 = arith.mulf %222, %264 : vector<16x128xf32>
    %266 = arith.maximumf %262, %265 : vector<16x128xf32>
    %267 = arith.maximumf %263, %56 : vector<1x128xf32>
    %268 = vector.broadcast %64 : vector<1x128xf32> to vector<16x128xf32>
    %269 = arith.mulf %228, %268 : vector<16x128xf32>
    %270 = arith.maximumf %266, %269 : vector<16x128xf32>
    %271 = arith.maximumf %267, %64 : vector<1x128xf32>
    %272 = vector.broadcast %72 : vector<1x128xf32> to vector<16x128xf32>
    %273 = arith.mulf %234, %272 : vector<16x128xf32>
    %274 = arith.maximumf %270, %273 : vector<16x128xf32>
    %275 = arith.maximumf %271, %72 : vector<1x128xf32>
    %276 = vector.broadcast %80 : vector<1x128xf32> to vector<16x128xf32>
    %277 = arith.mulf %240, %276 : vector<16x128xf32>
    %278 = arith.maximumf %274, %277 : vector<16x128xf32>
    %279 = arith.maximumf %275, %80 : vector<1x128xf32>
    %280 = vector.broadcast %88 : vector<1x128xf32> to vector<16x128xf32>
    %281 = arith.mulf %246, %280 : vector<16x128xf32>
    %282 = arith.maximumf %278, %281 : vector<16x128xf32>
    %283 = arith.maximumf %279, %88 : vector<1x128xf32>
    %284 = vector.broadcast %283 : vector<1x128xf32> to vector<16x128xf32>
    %285 = arith.mulf %253, %284 : vector<16x128xf32>
    %c0_102 = arith.constant 0 : index
    %c0_103 = arith.constant 0 : index
    %286 = vector.load %arg9[%c0_102, %c0_103] : memref<2x16xf32, #tpu.memory_space<vmem>>, vector<2x16xf32>
    %cst_104 = arith.constant dense<0.000000e+00> : vector<2x128xf32>
    %287 = tpu.matmul %286, %282, %cst_104 {dimension_numbers = #tpu.dot_dimension_numbers<[1], [0], [0], [1], [0, 0, 1, 1], [], []>} : vector<2x16xf32>, vector<16x128xf32>, vector<2x128xf32> -> vector<2x128xf32>
    %c0_105 = arith.constant 0 : index
    %c0_106 = arith.constant 0 : index
    %288 = vector.load %arg10[%c0_105, %c0_106] : memref<2x16xf32, #tpu.memory_space<vmem>>, vector<2x16xf32>
    %cst_107 = arith.constant dense<0.000000e+00> : vector<2x128xf32>
    %289 = tpu.matmul %288, %285, %cst_107 {dimension_numbers = #tpu.dot_dimension_numbers<[1], [0], [0], [1], [0, 0, 1, 1], [], []>} : vector<2x16xf32>, vector<16x128xf32>, vector<2x128xf32> -> vector<2x128xf32>
    %290 = arith.addf %287, %289 : vector<2x128xf32>
    %c0_108 = arith.constant 0 : index
    %c0_109 = arith.constant 0 : index
    %291 = vector.load %arg11[%c0_108, %c0_109] : memref<2x128xf32, #tpu.memory_space<vmem>>, vector<2x128xf32>
    tpu.vector_store %arg11[%c0_108, %c0_109], %290 {strides = array<i32>} : memref<2x128xf32, #tpu.memory_space<vmem>>, vector<2x128xf32>,
    %cst_110 = arith.constant dense<0.000000e+00> : vector<2xf32>
    %292 = vector.multi_reduction <add>, %290, %cst_110 [1] : vector<2x128xf32> to vector<2xf32>
    %293 = vector.shape_cast %292 : vector<2xf32> to vector<2x1xf32>
    %294 = arith.mulf %290, %290 : vector<2x128xf32>
    %cst_111 = arith.constant dense<0.000000e+00> : vector<2xf32>
    %295 = vector.multi_reduction <add>, %294, %cst_111 [1] : vector<2x128xf32> to vector<2xf32>
    %296 = vector.shape_cast %295 : vector<2xf32> to vector<2x1xf32>
    %297 = tpu.concatenate %293, %296 in 1 : vector<2x1xf32>, vector<2x1xf32> -> vector<2x2xf32>
    %298 = vector.shape_cast %297 : vector<2x2xf32> to vector<1x2x2xf32>
    %c0_112 = arith.constant 0 : index
    %c0_113 = arith.constant 0 : index
    %c0_114 = arith.constant 0 : index
    %299 = vector.load %arg12[%c0_112, %c0_113, %c0_114] : memref<1x2x2xf32, #tpu.memory_space<vmem>>, vector<1x2x2xf32>
    tpu.vector_store %arg12[%c0_112, %c0_113, %c0_114], %298 {strides = array<i32>} : memref<1x2x2xf32, #tpu.memory_space<vmem>>, vector<1x2x2xf32>,
    return
  }
  func.func @transform_0(%arg0: i32) -> (i32, i32, i32) {
    %c0_i32 = arith.constant 0 : i32
    %c0_i32_0 = arith.constant 0 : i32
    %c0_i32_1 = arith.constant 0 : i32
    return %c0_i32, %c0_i32_0, %arg0 : i32, i32, i32
  }
  func.func @transform_1(%arg0: i32) -> (i32, i32) {
    %c0_i32 = arith.constant 0 : i32
    %c0_i32_0 = arith.constant 0 : i32
    %c0_i32_1 = arith.constant 0 : i32
    return %c0_i32, %c0_i32_0 : i32, i32
  }
  func.func @transform_2(%arg0: i32) -> (i32, i32) {
    %c0_i32 = arith.constant 0 : i32
    %c0_i32_0 = arith.constant 0 : i32
    %c0_i32_1 = arith.constant 0 : i32
    return %c0_i32, %c0_i32_0 : i32, i32
  }
  func.func @transform_3(%arg0: i32) -> (i32, i32) {
    %c0_i32 = arith.constant 0 : i32
    %c0_i32_0 = arith.constant 0 : i32
    %c0_i32_1 = arith.constant 0 : i32
    return %c0_i32, %c0_i32_0 : i32, i32
  }
  func.func @transform_4(%arg0: i32) -> (i32, i32) {
    %c0_i32 = arith.constant 0 : i32
    %c0_i32_0 = arith.constant 0 : i32
    %c0_i32_1 = arith.constant 0 : i32
    return %c0_i32, %c0_i32_0 : i32, i32
  }
  func.func @transform_5(%arg0: i32) -> (i32, i32) {
    %c0_i32 = arith.constant 0 : i32
    %c0_i32_0 = arith.constant 0 : i32
    %c0_i32_1 = arith.constant 0 : i32
    return %c0_i32, %c0_i32_0 : i32, i32
  }
  func.func @transform_6(%arg0: i32) -> (i32, i32) {
    %c0_i32 = arith.constant 0 : i32
    %c0_i32_0 = arith.constant 0 : i32
    %c0_i32_1 = arith.constant 0 : i32
    return %c0_i32, %c0_i32_0 : i32, i32
  }
  func.func @transform_7(%arg0: i32) -> (i32, i32) {
    %c0_i32 = arith.constant 0 : i32
    %c0_i32_0 = arith.constant 0 : i32
    %c0_i32_1 = arith.constant 0 : i32
    return %c0_i32, %c0_i32_0 : i32, i32
  }
  func.func @transform_8(%arg0: i32) -> (i32, i32) {
    %c0_i32 = arith.constant 0 : i32
    %c0_i32_0 = arith.constant 0 : i32
    %c0_i32_1 = arith.constant 0 : i32
    return %c0_i32, %c0_i32_0 : i32, i32
  }
  func.func @transform_9(%arg0: i32) -> (i32, i32) {
    %c0_i32 = arith.constant 0 : i32
    %c0_i32_0 = arith.constant 0 : i32
    %c0_i32_1 = arith.constant 0 : i32
    return %c0_i32, %c0_i32_0 : i32, i32
  }
  func.func @transform_10(%arg0: i32) -> (i32, i32) {
    %c0_i32 = arith.constant 0 : i32
    %c0_i32_0 = arith.constant 0 : i32
    return %c0_i32, %arg0 : i32, i32
  }
  func.func @transform_11(%arg0: i32) -> (i32, i32, i32) {
    %c0_i32 = arith.constant 0 : i32
    %c0_i32_0 = arith.constant 0 : i32
    %c0_i32_1 = arith.constant 0 : i32
    return %arg0, %c0_i32, %c0_i32_0 : i32, i32, i32
  }
}

module attributes {stable_mosaic.version = 11 : i64} {
  func.func @_head_kernel(%arg0: i32, %arg1: memref<2x128xf32, #tpu.memory_space<vmem>>, %arg2: memref<2x1xf32, #tpu.memory_space<vmem>>, %arg3: memref<2x1xf32, #tpu.memory_space<vmem>>, %arg4: memref<2x128xf32, #tpu.memory_space<vmem>>) attributes {dimension_semantics = [#tpu.dimension_semantics<parallel>], iteration_bounds = array<i64: 4>, scalar_prefetch = 0 : i64, scratch_operands = 0 : i64, tpu.core_type = #tpu.core_type<tc>, window_params = [{transform_indices = @transform_0, window_bounds = array<i64: 2, 128>}, {pipeline_mode = #tpu.pipeline_mode<synchronous>, transform_indices = @transform_1, window_bounds = array<i64: 2, 1>}, {pipeline_mode = #tpu.pipeline_mode<synchronous>, transform_indices = @transform_2, window_bounds = array<i64: 2, 1>}, {transform_indices = @transform_3, window_bounds = array<i64: 2, 128>}]} {
    %c0 = arith.constant 0 : index
    %c0_0 = arith.constant 0 : index
    %0 = vector.load %arg1[%c0, %c0_0] : memref<2x128xf32, #tpu.memory_space<vmem>>, vector<2x128xf32>
    %c0_1 = arith.constant 0 : index
    %c0_2 = arith.constant 0 : index
    %1 = vector.load %arg2[%c0_1, %c0_2] : memref<2x1xf32, #tpu.memory_space<vmem>>, vector<2x1xf32>
    %2 = vector.broadcast %1 : vector<2x1xf32> to vector<2x128xf32>
    %3 = arith.mulf %0, %2 : vector<2x128xf32>
    %c0_3 = arith.constant 0 : index
    %c0_4 = arith.constant 0 : index
    %4 = vector.load %arg3[%c0_3, %c0_4] : memref<2x1xf32, #tpu.memory_space<vmem>>, vector<2x1xf32>
    %5 = vector.broadcast %4 : vector<2x1xf32> to vector<2x128xf32>
    %6 = arith.addf %3, %5 : vector<2x128xf32>
    %cst = arith.constant 0.000000e+00 : f32
    %7 = vector.broadcast %cst : f32 to vector<2x128xf32>
    %8 = arith.maximumf %6, %7 : vector<2x128xf32>
    %cst_5 = arith.constant dense<0xFF800000> : vector<128xf32>
    %9 = vector.multi_reduction <maximumf>, %8, %cst_5 [0] : vector<2x128xf32> to vector<128xf32>
    %10 = vector.shape_cast %9 : vector<128xf32> to vector<1x128xf32>
    %11 = vector.broadcast %10 : vector<1x128xf32> to vector<2x128xf32>
    %12 = arith.subf %8, %11 : vector<2x128xf32>
    %13 = math.exp %12 : vector<2x128xf32>
    %cst_6 = arith.constant dense<0.000000e+00> : vector<128xf32>
    %14 = vector.multi_reduction <add>, %13, %cst_6 [0] : vector<2x128xf32> to vector<128xf32>
    %15 = vector.shape_cast %14 : vector<128xf32> to vector<1x128xf32>
    %16 = vector.broadcast %15 : vector<1x128xf32> to vector<2x128xf32>
    %17 = arith.divf %13, %16 : vector<2x128xf32>
    %c0_7 = arith.constant 0 : index
    %c0_8 = arith.constant 0 : index
    %18 = vector.load %arg4[%c0_7, %c0_8] : memref<2x128xf32, #tpu.memory_space<vmem>>, vector<2x128xf32>
    tpu.vector_store %arg4[%c0_7, %c0_8], %17 {strides = array<i32>} : memref<2x128xf32, #tpu.memory_space<vmem>>, vector<2x128xf32>,
    return
  }
  func.func @transform_0(%arg0: i32) -> (i32, i32) {
    %c0_i32 = arith.constant 0 : i32
    %c0_i32_0 = arith.constant 0 : i32
    return %c0_i32, %arg0 : i32, i32
  }
  func.func @transform_1(%arg0: i32) -> (i32, i32) {
    %c0_i32 = arith.constant 0 : i32
    %c0_i32_0 = arith.constant 0 : i32
    %c0_i32_1 = arith.constant 0 : i32
    return %c0_i32, %c0_i32_0 : i32, i32
  }
  func.func @transform_2(%arg0: i32) -> (i32, i32) {
    %c0_i32 = arith.constant 0 : i32
    %c0_i32_0 = arith.constant 0 : i32
    %c0_i32_1 = arith.constant 0 : i32
    return %c0_i32, %c0_i32_0 : i32, i32
  }
  func.func @transform_3(%arg0: i32) -> (i32, i32) {
    %c0_i32 = arith.constant 0 : i32
    %c0_i32_0 = arith.constant 0 : i32
    return %c0_i32, %arg0 : i32, i32
  }
}

</mosaic_0001>

<bundles_post_ra>
// kernel: smokenet_no_conv.4
= control target key start
LH: loop header
LB: loop body
LE: loop exit
PB: predicated region body
PF: predicated region fallthrough
CT: control target
= control target key end

     0   :  { %7 = vsyncpa [#allocation3], 0  ;;  %s1174_s0 = inlined_call_operand.hbm [shape: f32[8,8,512], index: 0, kind: input, shape index: {}]   ;;  %s1175_s1 = inlined_call_operand.vmem [shape: f32[8,8], index: 1, kind: input, shape index: {}]   ;;  %s1176_s2 = inlined_call_operand.vmem [shape: f32[4,8,2], index: 2, kind: output, shape index: {}]  }
   0x1   :  { %9 = vsyncpa [#allocation3 + $0x1], 0  ;;  %s1046_s9 = smov 0   ;;  %s1048_s10 = smov 0  }
   0x2   :  { %s1050_s11 = smov 0   ;;  %s1052_s12 = smov 0  }
   0x3 LB: > { %s1065_s13 = sadd.s32 4294967295, %s1023_s12   ;;  %s1068_s14 = sadd.s32 1, %s1023_s12   ;;  %s1023_s12 = sphi %s1052_s12, %s1184_s12   ;;  %s1019_s11 = sphi %s1050_s11, %s1183_s11   ;;  %s1015_s10 = sphi %s1048_s10, %s1182_s10   ;;  %s1011_s9 = sphi %s1046_s9, %s1181_s9  }
   0x4   : > { %s19_s15 = ssub.s32 %s1023_s12, %s1068_s14  ;;  %s22_s16 = sadd.s32 1, %s1019_s11 }
   0x5   : > { %p20_p0 = scmp.eq.s32.totalorder %s19_s15, 0  ;;  %p29_p1 = scmp.ne.s32.totalorder %s1019_s11, %s1015_s10 }
   0x6   : > { %p30_p2 = scmp.eq.s32.totalorder %s1023_s12, 0  ;;  %p35_p3 = scmp.ne.s32.totalorder %s1015_s10, %s1011_s9 }
   0x7   : > { %s1078_s17 = scalar_select %p20_p0, %s1019_s11, %s22_s16  }
   0x8   : > { %p31_p4 = por %p30_p2, %p29_p1  ;;  %p36_p5 = scmp.eq.s32.totalorder %s1065_s13, 0 }
   0x9   : > { %p923_p6 = scmp.lt.s32.totalorder %s1023_s12, 4  ;;  %s109_s19 = sand.u32 1, %s1019_s11  }
   0xa   : > { %p1082_p7 = por %p36_p5, %p35_p3  ;;  %s839_s20 = sshll.u32 %s109_s19, 6 }
   0xb   : > { %s840_s21 = sshll.u32 %s1023_s12, 7  ;;  %s113_s25 = scalar_lea.vmem [#allocation2], %s839_s20 }
   0xc   : > { %s1178_s18 = scalar_select %p1082_p7, 1, 0 }
   0xd   : > { %s1091_s24 = scalar_lea.hbm %s1174_s0, %s840_s21  ;;  %s119_s26 = sshll.u32 %s113_s25, 4  ;;  %s1093_s26 = int_to_ptr.vmem [resolvable:$true] %s119_s26 }
   0xe   : > { %p1095_p8 = pnand %p923_p6, %p31_p4  ;;  %s1099_s28 = scalar_lea.sflag [#allocation3], %s109_s19 }
   0xf   : > { %s961_s29 = scalar_lea.hbm %s1091_s24, 1024  ;;  %s966_s4 = scalar_lea.hbm %s1174_s0, 4096 }
  0x10   : > { %p962_p9 = scmp.ne.s32.totalorder %s1091_s24, %s961_s29  ;;  %p963_p10 = pneg %p1095_p8 }
  0x11   : > { %p967_p13 = scmp.lt.s32.totalorder %s1091_s24, %s1174_s0  ;;  %p968_p0 = scmp.lt.s32.totalorder %s966_s4, %s961_s29 }
  0x12   : > { %p964_p11 = pnand %p963_p10, %p962_p9 }
  0x13   : > { %p969_p1 = por %p968_p0, %p967_p13 }
  0x14   : > { %p965_p12 = pneg %p964_p11 }
  0x16   : > { %p970_p2 = pnand %p969_p1, %p965_p12 }
  0x18   : > { %973 = shalt.err (!%p970_p2)
}
  0x19   : > { %s974_s7 = scalar_lea.vmem %s1093_s26, 1024  ;;  %s1025_s8 = smov [#allocation2]  }
  0x1a   : > { %p975_p3 = scmp.ne.s32.totalorder %s1093_s26, %s974_s7  ;;  %s979_s9 = sshll.u32 %s1025_s8, 4  ;;  %s980_s9 = int_to_ptr.vmem [resolvable:$false] %s979_s9 }
  0x1b   : > { %s981_s15 = scalar_lea.vmem %s980_s9, 2048  ;;  %p982_p6 = scmp.lt.s32.totalorder %s1093_s26, %s980_s9 }
  0x1c   : > { %p977_p4 = pnand %p975_p3, %p963_p10  ;;  %p983_p9 = scmp.lt.s32.totalorder %s981_s15, %s974_s7 }
  0x1e   : > { %p978_p5 = pneg %p977_p4  ;;  %p984_p11 = por %p983_p9, %p982_p6 }
  0x20   : > { %p985_p7 = pnand %p984_p11, %p978_p5 }
  0x22   : > { %988 = shalt.err (!%p985_p7)
}
  0x23   : > { %s1026_s16 = smov 512   ;;  %s1027_s19 = smov 128  }
  0x24   : > { %s1028_s20 = smov 8   ;;  %p841_p10 = scmp.ge.s32.totalorder %s1023_s12, 1 }
  0x25   : > { %922 = dma.hbm_to_vmem [thread:$0]  (!%p1095_p8), %s1091_s24, 1024, %s1093_s26, %s1099_s28, %s1026_s16, %s1027_s19, %s1028_s20  }
  0x26   : > { %p127_p12 = scmp.lt.s32.totalorder %s1023_s12, 5 }
  0x28   : > { %p128_p13 = pnand %p841_p10, %p127_p12 }
  0x29   : > { %s133_s21 = sand.u32 (!%p128_p13), 1, %s1015_s10   ;;  %p1180_p7 = scmp.ne.s32.totalorder (!%p128_p13), %s1178_s18, 0 }
  0x2a   : > { %131 = sbr.rel (%p128_p13) target bundleno = 405 (0x195), region = 28  ;;  %s842_s22 = sshll.u32 (!%p128_p13), %s133_s21, 6 }
  0x2b   : > { %s134_s23 = scalar_lea.sflag (!%p128_p13), [#allocation3], %s133_s21  ;;  %s1123_s25 = scalar_lea.vmem (!%p128_p13), [#allocation2], %s842_s22 }
  0x2f   : > { %1006 = dma.done.wait (%p1180_p7), %s134_s23, 1024  }
  0x30   : > { %1008 = vsyncadd (%p1180_p7), %s134_s23, 4294966272  ;;  %v1029_v0 = vmov 0.0   ;;  %vm1030_vm0 = vmmov 0   ;;  %vm163_vm1 = vcmask 64512   ;;  %v162_v1 = vld [vmem:[%s1123_s25] sm:$0xff]  ;;  %v845_v3 = vld [vmem:[%s1123_s25 + $0x8] sm:$0xff] }
  0x31   : > { %877 = vmatprep.subr.mxu0 %v1029_v0  ;;  %879 = vmatprep.mubr.msk.f32.mxu0 %vm1030_vm0, %v1029_v0  ;;  %v161_v2 = vld [vmem:[%s1175_s1] sm:$0xff]  ;;  %v847_v4 = vld [vmem:[%s1123_s25 + $0x10] sm:$0xff]  ;;  %v849_v5 = vld [vmem:[%s1123_s25 + $0x18] sm:$0xff]  ;;  %p157_p8 = scmp.lt.s32.totalorder %s1065_s13, 3  ;;  %vm767_vm2 = vcmask 7168   ;;  %vm769_vm3 = vcmask 15360  }
  0x32   : > { %882 = vmatprep.subr.mxu1 %v1029_v0  ;;  %884 = vmatprep.mubr.msk.f32.mxu1 %vm1030_vm0, %v1029_v0  ;;  %v851_v6 = vld [vmem:[%s1123_s25 + $0x20] sm:$0xff]  ;;  %v853_v7 = vld [vmem:[%s1123_s25 + $0x28] sm:$0xff]  ;;  %v855_v8 = vld [vmem:[%s1123_s25 + $0x30] sm:$0xff] }
  0x33   : > { %878 = vmatpush3.msra.mxu0 %v162_v1  ;;  %883 = vmatpush3.msra.mxu1 %v845_v3  ;;  %v857_v9 = vld [vmem:[%s1123_s25 + $0x38] sm:$0xff]  ;;  %s1186_s13 = smov (!%p157_p8, %s1065_s13), 3 }
  0x34   : > { %880 = vmatmul.mubr.msk.f32.vlgmr.msra.gmra.mxu0 %vm163_vm1, %v161_v2  ;;  %887 = vmatprep.subr.mxu0 %v1029_v0  ;;  %s843_s18 = sshll.u32 %s1186_s13, 3 }
  0x35   : > { %885 = vmatmul.mubr.msk.f32.vlgmr.msra.gmra.mxu1 %vm163_vm1, %v161_v2  ;;  %888 = vmatpush3.msra.mxu0 %v847_v4  ;;  %s160_s28 = scalar_lea.vmem %s1176_s2, %s843_s18 }
  0x36   : > { %892 = vmatprep.subr.mxu1 %v1029_v0  ;;  %889 = vmatprep.mubr.msk.f32.mxu0 %vm1030_vm0, %v1029_v0 }
  0x37   : > { %893 = vmatpush3.msra.mxu1 %v849_v5  ;;  %894 = vmatprep.mubr.msk.f32.mxu1 %vm1030_vm0, %v1029_v0 }
  0x38   : > { %890 = vmatmul.mubr.msk.f32.vlgmr.msra.gmra.mxu0 %vm163_vm1, %v161_v2  ;;  %897 = vmatprep.subr.mxu0 %v1029_v0 }
  0x39   : > { %895 = vmatmul.mubr.msk.f32.vlgmr.msra.gmra.mxu1 %vm163_vm1, %v161_v2  ;;  %898 = vmatpush3.msra.mxu0 %v851_v6 }
  0x3a   : > { %902 = vmatprep.subr.mxu1 %v1029_v0  ;;  %899 = vmatprep.mubr.msk.f32.mxu0 %vm1030_vm0, %v1029_v0 }
  0x3b   : > { %903 = vmatpush3.msra.mxu1 %v853_v7  ;;  %904 = vmatprep.mubr.msk.f32.mxu1 %vm1030_vm0, %v1029_v0 }
  0x3c   : > { %900 = vmatmul.mubr.msk.f32.vlgmr.msra.gmra.mxu0 %vm163_vm1, %v161_v2  ;;  %907 = vmatprep.subr.mxu0 %v1029_v0 }
  0x3d   : > { %905 = vmatmul.mubr.msk.f32.vlgmr.msra.gmra.mxu1 %vm163_vm1, %v161_v2  ;;  %908 = vmatpush3.msra.mxu0 %v855_v8 }
  0x3e   : > { %912 = vmatprep.subr.mxu1 %v1029_v0  ;;  %909 = vmatprep.mubr.msk.f32.mxu0 %vm1030_vm0, %v1029_v0 }
  0x3f   : > { %913 = vmatpush3.msra.mxu1 %v857_v9  ;;  %914 = vmatprep.mubr.msk.f32.mxu1 %vm1030_vm0, %v1029_v0 }
  0x40   : > { %910 = vmatmul.mubr.msk.f32.vlgmr.msra.gmra.mxu0 %vm163_vm1, %v161_v2 }
  0x41   : > { %915 = vmatmul.mubr.msk.f32.vlgmr.msra.gmra.mxu1 %vm163_vm1, %v161_v2 }
  0xf4   : > { %v233_v10 = vpop.f32.mrf.mxu0 }
  0xf5   : > { %v741_v11 = vmul.f32 %v233_v10, %v233_v10  ;;  %v305_v12 = vpop.f32.mrf.mxu1 }
  0xf6   : > { %v743_v13 = vmul.f32 %v305_v12, %v305_v12  ;;  %v881_v14 = vpop.f32.mrf.mxu0  ;;  %v742_v15 = vadd.f32 %v305_v12, %v233_v10 }
  0xf7   : > { %v886_v16 = vpop.f32.mrf.mxu1 }
  0xf8   : > { %v377_v17 = vpop.f32.mrf.mxu0  ;;  %v744_v18 = vadd.f32 %v743_v13, %v741_v11 }
  0xf9   : > { %v745_v19 = vadd.f32 %v742_v15, %v377_v17  ;;  %v746_v20 = vmul.f32 %v377_v17, %v377_v17  ;;  %v449_v21 = vpop.f32.mrf.mxu1 }
  0xfa   : > { %v749_v22 = vmul.f32 %v449_v21, %v449_v21  ;;  %v891_v23 = vpop.f32.mrf.mxu0 }
  0xfb   : > { %v747_v24 = vadd.f32 %v746_v20, %v744_v18  ;;  %v748_v25 = vadd.f32 %v745_v19, %v449_v21  ;;  %v896_v26 = vpop.f32.mrf.mxu1 }
  0xfc   : > { %v521_v27 = vpop.f32.mrf.mxu0 }
  0xfd   : > { %v750_v28 = vadd.f32 %v749_v22, %v747_v24  ;;  %v751_v29 = vadd.f32 %v748_v25, %v521_v27  ;;  %v752_v30 = vmul.f32 %v521_v27, %v521_v27  ;;  %v593_v31 = vpop.f32.mrf.mxu1 }
  0xfe   : > { %v755_v32 = vmul.f32 %v593_v31, %v593_v31  ;;  %v901_v33 = vpop.f32.mrf.mxu0 }
  0xff   : > { %v753_v34 = vadd.f32 %v752_v30, %v750_v28  ;;  %v754_v35 = vadd.f32 %v751_v29, %v593_v31  ;;  %v906_v36 = vpop.f32.mrf.mxu1 }
 0x100   : > { %v665_v37 = vpop.f32.mrf.mxu0 }
 0x101   : > { %v756_v38 = vadd.f32 %v755_v32, %v753_v34  ;;  %v757_v39 = vadd.f32 %v754_v35, %v665_v37  ;;  %v758_v40 = vmul.f32 %v665_v37, %v665_v37  ;;  %v737_v41 = vpop.f32.mrf.mxu1 }
 0x102   : > { %v911_v42 = vpop.f32.mrf.mxu0  ;;  %v761_v43 = vmul.f32 %v737_v41, %v737_v41 }
 0x103   : > { %v916_v44 = vpop.f32.mrf.mxu1  ;;  %v760_v45 = vadd.f32 %v757_v39, %v737_v41  ;;  %v759_v46 = vadd.f32 %v758_v40, %v756_v38 }
 0x105   : > { %763 = vadd.xlane.f32.xlu0 %v760_v45  ;;  %v762_v47 = vadd.f32 %v761_v43, %v759_v46 }
 0x109   : > { %765 = vadd.xlane.f32.xlu0 %v762_v47 }
 0x18e   : > { %v764_v48 = vpop.xlane.xlu0 %763 }
 0x192   : > { %v766_v49 = vpop.xlane.xlu0 %765 }
 0x193   : > { %v768_v50 = vsel %vm767_vm2, %v764_v48, %v766_v49 }
 0x194   : > { %770 = vst.msk [vmem:[%s160_s28] sm:$0xff] %vm769_vm3, %v768_v50 }
 0x195 PF: > { %p12_p0 = scmp.ge.s32.totalorder %s1068_s14, 6   ;;  %s1181_s9 = smov %s1015_s10 }
 0x196   : > { %s1182_s10 = smov %s1019_s11  ;;  %s1183_s11 = smov %s1078_s17 }
 0x197   : > { %s1184_s12 = smov %s1068_s14  ;;  %14 = sbr.rel (!%p12_p0) target bundleno = 3 (0x3), region = 75 }
 0x19c   :  { %790 = vsyncpa [#allocation3], 1 }
 0x19d   :  { %792 = vsyncpa [#allocation3 + $0x1], 1 }

// kernel: smokenet_no_conv.7
= control target key start
LH: loop header
LB: loop body
LE: loop exit
PB: predicated region body
PF: predicated region fallthrough
CT: control target
= control target key end

     0   :  { %8 = vsyncpa [#allocation3], 0  ;;  %s508_s0 = inlined_call_operand.vmem [shape: f32[2,512], index: 0, kind: input, shape index: {}]   ;;  %s509_s1 = inlined_call_operand.vmem [shape: f32[2,1], index: 1, kind: input, shape index: {}]   ;;  %s510_s2 = inlined_call_operand.vmem [shape: f32[2,1], index: 2, kind: input, shape index: {}]   ;;  %s511_s3 = inlined_call_operand.hbm [shape: f32[2,512], index: 3, kind: output, shape index: {}]  }
   0x1   :  { %10 = vsyncpa [#allocation3 + $0x1], 0  ;;  %s415_s12 = smov 0   ;;  %s417_s13 = smov 0  }
   0x2   :  { %s419_s14 = smov 0   ;;  %s421_s15 = smov 0  }
   0x3 LB: > { %s436_s16 = sadd.s32 4294967295, %s391_s15   ;;  %s276_s17 = sadd.s32 4294967294, %s391_s15   ;;  %s391_s15 = sphi %s421_s15, %s517_s15   ;;  %s387_s14 = sphi %s419_s14, %s516_s14   ;;  %s383_s13 = sphi %s417_s13, %s515_s13   ;;  %s379_s12 = sphi %s415_s12, %s514_s12  }
   0x4   : > { %s440_s18 = sadd.s32 1, %s391_s15   ;;  %s91_s19 = sadd.s32 1, %s387_s14 }
   0x5   : > { %s88_s20 = ssub.s32 %s391_s15, %s440_s18  ;;  %p101_p0 = scmp.ne.s32.totalorder %s387_s14, %s383_s13 }
   0x6   : > { %p89_p1 = scmp.eq.s32.totalorder %s88_s20, 0  ;;  %p102_p2 = scmp.eq.s32.totalorder %s436_s16, 3 }
   0x7   : > { %p107_p3 = scmp.ne.s32.totalorder %s383_s13, %s379_s12  ;;  %p108_p4 = scmp.eq.s32.totalorder %s276_s17, 3 }
   0x8   : > { %s451_s21 = scalar_select %p89_p1, %s387_s14, %s91_s19  }
   0x9   : > { %p453_p5 = por %p102_p2, %p101_p0  ;;  %p457_p6 = por %p108_p4, %p107_p3 }
   0xa   : > { %p279_p7 = scmp.ge.s32.totalorder %s391_s15, 1  ;;  %p139_p8 = scmp.lt.s32.totalorder %s391_s15, 5 }
   0xc   : > { %p140_p9 = pnand %p279_p7, %p139_p8 }
   0xd   : > { %p162_p10 = scmp.lt.s32.totalorder (!%p140_p9), %s436_s16, 3  ;;  %s159_s6 = sand.u32 (!%p140_p9), 1, %s383_s13  }
   0xe   : > { %143 = sbr.rel (%p140_p9) target bundleno = 226 (0xe2), region = 32  ;;  %s280_s7 = sshll.u32 (!%p140_p9), %s159_s6, 1 }
   0xf   : > { %s283_s8 = sshll.u32 (!%p140_p9), %s436_s16, 5  ;;  %s161_s9 = scalar_lea.vmem (!%p140_p9), [#allocation2], %s280_s7 }
  0x10   : > { %s217_s10 = sshll.u32 (!%p140_p9), %s161_s9, 4  ;;  %s215_s19 = scalar_lea.hbm (!%p140_p9), %s511_s3, %s283_s8  ;;  %s218_s10 = int_to_ptr.vmem [resolvable:$true] %s217_s10 }
  0x11   : > { %s204_s20 = scalar_lea.sflag (!%p140_p9), [#allocation3], %s159_s6  ;;  %s331_s24 = scalar_lea.vmem (!%p140_p9), %s218_s10, 32 }
  0x12   : > { %p332_p11 = scmp.ne.s32.totalorder (!%p140_p9), %s218_s10, %s331_s24  ;;  %s394_s25 = smov (!%p140_p9), [#allocation2]  }
  0x13   : > { %v167_v0 = vld [vmem:[%s509_s1] sm:$0x3]  ;;  %v393_v1 = vmov 0   ;;  %s163_s28 = scalar_select %p162_p10, %s436_s16, 3  ;;  %vm182_vm0 = vcmask 1041408  }
  0x14   : > { %326 = vset.pattern.permute.xlu0 %v393_v1  ;;  %v174_v2 = vld [vmem:[%s510_s2] sm:$0x3]  ;;  %p333_p12 = pnand %p332_p11, %p453_p5  ;;  %s335_s26 = sshll.u32 %s394_s25, 4  ;;  %s336_s26 = int_to_ptr.vmem [resolvable:$false] %s335_s26 }
  0x15   : > { %170 = vperm.xlu0 %326, %v167_v0   ;;  %s281_s29 = sshll.u32 %s163_s28, 1  ;;  %s337_s16 = scalar_lea.vmem %s336_s26, 64 }
  0x16   : > { %s165_s5 = scalar_lea.vmem %s508_s0, %s281_s29  ;;  %p334_p13 = pneg %p333_p12 }
  0x17   : > { %v166_v4 = vld [vmem:[%s165_s5] sm:$0x3]  ;;  %p338_p0 = scmp.lt.s32.totalorder %s218_s10, %s336_s26  ;;  %p339_p1 = scmp.lt.s32.totalorder %s337_s16, %s331_s24 }
  0x19   : > { %177 = vperm.xlu0 %326, %v174_v2   ;;  %p340_p2 = por %p339_p1, %p338_p0 }
  0x1b   : > { %p341_p3 = pnand %p340_p2, %p334_p13 }
  0x90   : > { %v171_v3 = vpop.permute.xlu0 %170 }
  0x91   : > { %v173_v5 = vmul.f32 %v171_v3, %v166_v4 }
  0x94   : > { %v178_v6 = vpop.permute.xlu0 %177 }
  0x95   : > { %v180_v7 = vadd.f32 %v178_v6, %v173_v5 }
  0x97   : > { %v181_v8 = vmax.f32 %v180_v7, 0.0 }
  0x99   : > { %v183_v9 = vsel %vm182_vm0, %v181_v8, -inf }
  0x9a   : > { %v184_v10 = vrot.slane %v183_v9, 4 }
  0x9c   : > { %v185_v11 = vmax.f32 %v183_v9, %v184_v10 }
  0x9e   : > { %v186_v12 = vrot.slane %v185_v11, 2 }
  0xa0   : > { %v187_v13 = vmax.f32 %v185_v11, %v186_v12 }
  0xa2   : > { %v188_v14 = vrot.slane %v187_v13, 1 }
  0xa4   : > { %v189_v15 = vmax.f32 %v187_v13, %v188_v14 }
  0xa6   : > { %v190_v16 = vsub.f32 %v181_v8, %v189_v15 }
  0xa8   : > { %v191_v17 = vmul.f32 1.442695, %v190_v16 }
  0xaa   : > { %327 = vpow2.f32 %v191_v17 }
  0xb7   : > { %v328_v18 = vpop.eup %327 }
  0xb8   : > { %v193_v19 = vsel %vm182_vm0, %v328_v18, 0.0 }
  0xb9   : > { %v194_v20 = vrot.slane %v193_v19, 4 }
  0xbb   : > { %v195_v21 = vadd.f32 %v194_v20, %v193_v19 }
  0xbd   : > { %v196_v22 = vrot.slane %v195_v21, 2 }
  0xbf   : > { %v197_v23 = vadd.f32 %v196_v22, %v195_v21 }
  0xc1   : > { %v198_v24 = vrot.slane %v197_v23, 1 }
  0xc3   : > { %v199_v25 = vadd.f32 %v198_v24, %v197_v23 }
  0xc5   : > { %329 = vrcp.f32 %v199_v25 }
  0xd2   : > { %v330_v26 = vpop.eup %329 }
  0xd3   : > { %v201_v27 = vmul.f32 %v330_v26, %v328_v18 }
  0xd5   : > { %202 = vst [vmem:[%s161_s9] sm:$0x3] %v201_v27 }
  0xd6   : > { %344 = shalt.err (!%p341_p3)
}
  0xd7   : > { %s345_s27 = scalar_lea.hbm %s215_s19, 32  ;;  %s349_s30 = scalar_lea.hbm %s511_s3, 128 }
  0xd8   : > { %p346_p4 = scmp.ne.s32.totalorder %s215_s19, %s345_s27  ;;  %p350_p9 = scmp.lt.s32.totalorder %s215_s19, %s511_s3 }
  0xd9   : > { %p351_p10 = scmp.lt.s32.totalorder %s349_s30, %s345_s27 }
  0xda   : > { %p347_p7 = pnand %p346_p4, %p453_p5 }
  0xdb   : > { %p352_p11 = por %p351_p10, %p350_p9 }
  0xdc   : > { %p348_p8 = pneg %p347_p7 }
  0xde   : > { %p353_p12 = pnand %p352_p11, %p348_p8 }
  0xe0   : > { %356 = shalt.err (!%p353_p12)
}
  0xe1   : > { %286 = dma.vmem_to_hbm [thread:$0]  (%p453_p5), %s218_s10, 32, %s215_s19, %s204_s20  }
  0xe2 PF: > { %p292_p13 = scmp.ge.s32.totalorder %s391_s15, 2  ;;  %s229_s6 = sand.u32 1, %s379_s12  }
  0xe3   : > { %s230_s7 = scalar_lea.sflag [#allocation3], %s229_s6 }
  0xe4   : > { %p289_p0 = pnand %p292_p13, %p457_p6 }
  0xe6   : > { %p290_p1 = pneg %p289_p0 }
  0xe8   : > { %374 = dma.done.wait (%p290_p1), %s230_s7, 32  }
  0xe9   : > { %376 = vsyncadd (%p290_p1), %s230_s7, 4294967264  ;;  %p13_p2 = scmp.ge.s32.totalorder %s440_s18, 6   ;;  %s514_s12 = smov %s383_s13 }
  0xea   : > { %s515_s13 = smov %s387_s14  ;;  %s516_s14 = smov %s451_s21 }
  0xeb   : > { %s517_s15 = smov %s440_s18  ;;  %15 = sbr.rel (!%p13_p2) target bundleno = 3 (0x3), region = 67 }
  0xf0   :  { %235 = vsyncpa [#allocation3], 1 }
  0xf1   :  { %237 = vsyncpa [#allocation3 + $0x1], 1 }

// kernel: smokenet_no_conv.5
= control target key start
LH: loop header
LB: loop body
LE: loop exit
PB: predicated region body
PF: predicated region fallthrough
CT: control target
= control target key end

     0   :  { %s2116_s21 = smov 0   ;;  %s2118_s22 = smov 0   ;;  %s2354_s0 = inlined_call_operand.vmem [shape: f32[8,8,512], index: 0, kind: input, shape index: {}]   ;;  %s2355_s1 = inlined_call_operand.vmem [shape: f32[8,8], index: 1, kind: input, shape index: {}]   ;;  %s2356_s2 = inlined_call_operand.vmem [shape: f32[8,1], index: 2, kind: input, shape index: {}]   ;;  %s2357_s3 = inlined_call_operand.vmem [shape: f32[8,1], index: 3, kind: input, shape index: {}]   ;;  %s2358_s4 = inlined_call_operand.vmem [shape: f32[16,8], index: 4, kind: input, shape index: {}]   ;;  %s2359_s5 = inlined_call_operand.vmem [shape: f32[16,8], index: 5, kind: input, shape index: {}]   ;;  %s2360_s6 = inlined_call_operand.vmem [shape: f32[4,16,2], index: 6, kind: output, shape index: {}]  }
   0x1   :  { %s2120_s23 = smov 0  }
   0x2 LB: > { %s1844_s24 = sadd.s32 4294967295, %s2076_s23   ;;  %s2133_s25 = sadd.s32 1, %s2076_s23   ;;  %s2076_s23 = sphi %s2120_s23, %s2363_s23   ;;  %s2072_s22 = sphi %s2118_s22, %s2362_s22   ;;  %s2068_s21 = sphi %s2116_s21, %s2361_s21  }
   0x3   : > { %s20_s26 = ssub.s32 %s2076_s23, %s2133_s25  ;;  %s23_s27 = sadd.s32 1, %s2072_s22 }
   0x4   : > { %p21_p0 = scmp.eq.s32.totalorder %s20_s26, 0  ;;  %p30_p1 = scmp.ne.s32.totalorder %s2072_s22, %s2068_s21 }
   0x5   : > { %p31_p2 = scmp.eq.s32.totalorder %s2076_s23, 0  ;;  %p1847_p4 = scmp.ge.s32.totalorder %s2076_s23, 4 }
   0x6   : > { %s2142_s28 = scalar_select %p21_p0, %s2072_s22, %s23_s27  }
   0x7   : > { %p32_p3 = por %p31_p2, %p30_p1  ;;  %202 = sbr.rel (%p1847_p4) target bundleno = 24 (0x18), region = 36 }
   0xc   : > { %205 = sbr.rel (!%p32_p3) target bundleno = 24 (0x18), region = 40  ;;  %s207_s29 = sand.u32 (%p32_p3), 1, %s2072_s22  }
   0xd   : > { %s1849_s30 = sshll.u32 (%p32_p3), %s2076_s23, 3  ;;  %s1848_s7 = sshll.u32 (%p32_p3), %s207_s29, 6 }
   0xe   : > { %s211_s10 = scalar_lea.vmem (%p32_p3), %s2354_s0, %s1849_s30  ;;  %s209_s11 = scalar_lea.vmem (%p32_p3), [#allocation2], %s1848_s7 }
   0xf   : > { %v254_v0 = vld [vmem:[%s211_s10] sm:$0xff] (%p32_p3) }
  0x10   : > { %v256_v1 = vld [vmem:[%s211_s10 + $0x20] sm:$0xff] (%p32_p3)  ;;  %255 = vst [vmem:[%s209_s11] sm:$0xff] (%p32_p3), %v254_v0 }
  0x11   : > { %v258_v2 = vld [vmem:[%s211_s10 + $0x40] sm:$0xff]  ;;  %257 = vst [vmem:[%s209_s11 + $0x8] sm:$0xff] %v256_v1 }
  0x12   : > { %259 = vst [vmem:[%s209_s11 + $0x10] sm:$0xff] %v258_v2  ;;  %v260_v3 = vld [vmem:[%s211_s10 + $0x60] sm:$0xff] }
  0x13   : > { %v262_v4 = vld [vmem:[%s211_s10 + $0x80] sm:$0xff]  ;;  %261 = vst [vmem:[%s209_s11 + $0x18] sm:$0xff] %v260_v3 }
  0x14   : > { %v264_v5 = vld [vmem:[%s211_s10 + $0xa0] sm:$0xff]  ;;  %263 = vst [vmem:[%s209_s11 + $0x20] sm:$0xff] %v262_v4 }
  0x15   : > { %265 = vst [vmem:[%s209_s11 + $0x28] sm:$0xff] %v264_v5  ;;  %v266_v6 = vld [vmem:[%s211_s10 + $0xc0] sm:$0xff] }
  0x16   : > { %v268_v7 = vld [vmem:[%s211_s10 + $0xe0] sm:$0xff]  ;;  %267 = vst [vmem:[%s209_s11 + $0x30] sm:$0xff] %v266_v6 }
  0x17   : > { %269 = vst [vmem:[%s209_s11 + $0x38] sm:$0xff] %v268_v7 }
  0x18 PF: > { %p1850_p5 = scmp.ge.s32.totalorder %s2076_s23, 1  ;;  %p274_p6 = scmp.lt.s32.totalorder %s2076_s23, 5 }
  0x1a   : > { %p275_p7 = pnand %p1850_p5, %p274_p6 }
  0x1b   : > { %s281_s12 = sand.u32 (!%p275_p7), 1, %s2068_s21   ;;  %p310_p8 = scmp.lt.s32.totalorder (!%p275_p7), %s1844_s24, 3 }
  0x1c   : > { %278 = sbr.rel (%p275_p7) target bundleno = 616 (0x268), region = 78  ;;  %s1851_s13 = sshll.u32 (!%p275_p7), %s281_s12, 6 }
  0x1d   : > { %s283_s16 = scalar_lea.vmem (!%p275_p7), [#allocation2], %s1851_s13 }
  0x21   : > { %v2078_v8 = vmov 0.0   ;;  %vm2079_vm0 = vmmov 0   ;;  %v315_v9 = vld [vmem:[%s2355_s1] sm:$0xff]  ;;  %vm317_vm1 = vcmask 64512   ;;  %v1855_v11 = vld [vmem:[%s283_s16 + $0x8] sm:$0xff]  ;;  %v2080_v12 = vmov 0  }
  0x22   : > { %1941 = vmatprep.subr.mxu0 %v2078_v8  ;;  %1946 = vmatprep.subr.mxu1 %v2078_v8  ;;  %v316_v10 = vld [vmem:[%s283_s16] sm:$0xff]  ;;  %v1857_v13 = vld [vmem:[%s283_s16 + $0x10] sm:$0xff]  ;;  %v1859_v14 = vld [vmem:[%s283_s16 + $0x18] sm:$0xff]  ;;  %v904_v33 = vrot.slane %v1855_v11, 4  ;;  %s2365_s24 = smov (!%p310_p8, %s1844_s24), 3  ;;  %vm1777_vm10 = vcmask 7168  }
  0x23   : > { %1943 = vmatprep.mubr.msk.f32.mxu0 %vm2079_vm0, %v2078_v8  ;;  %1948 = vmatprep.mubr.msk.f32.mxu1 %vm2079_vm0, %v2078_v8  ;;  %v1861_v15 = vld [vmem:[%s283_s16 + $0x20] sm:$0xff]  ;;  %v1863_v16 = vld [vmem:[%s283_s16 + $0x28] sm:$0xff]  ;;  %v1865_v17 = vld [vmem:[%s283_s16 + $0x30] sm:$0xff]  ;;  %v895_v23 = vrot.slane %v316_v10, 4  ;;  %v913_v24 = vrot.slane %v1857_v13, 4  ;;  %v922_v38 = vrot.slane %v1859_v14, 4 }
  0x24   : > { %2053 = vset.pattern.permute.xlu0 %v2080_v12  ;;  %1942 = vmatpush3.msra.mxu0 %v316_v10  ;;  %v2180_v18 = vld [vmem:[%s283_s16 + $0x38] sm:$0xff]  ;;  %v967_v19 = vld [vmem:[%s2356_s2] sm:$0xff]  ;;  %v931_v27 = vrot.slane %v1861_v15, 4  ;;  %v949_v31 = vrot.slane %v1865_v17, 4  ;;  %v905_v39 = vmax.f32 %v1855_v11, %v904_v33  ;;  %v940_v46 = vrot.slane %v1863_v16, 4  ;;  %s1897_s10 = sshll.u32 %s2365_s24, 4 }
  0x25   : > { %1947 = vmatpush3.msra.mxu1 %v1855_v11  ;;  %1944 = vmatmul.mubr.msk.f32.vlgmr.msra.gmra.mxu0 %vm317_vm1, %v315_v9  ;;  %v968_v20 = vld [vmem:[%s2357_s3] sm:$0xff]  ;;  %v896_v25 = vmax.f32 %v316_v10, %v895_v23  ;;  %v914_v26 = vmax.f32 %v1857_v13, %v913_v24  ;;  %v923_v45 = vmax.f32 %v1859_v14, %v922_v38  ;;  %v958_v58 = vrot.slane %v2180_v18, 4  ;;  %s314_s13 = scalar_lea.vmem %s2360_s6, %s1897_s10 }
  0x26   : > { %1949 = vmatmul.mubr.msk.f32.vlgmr.msra.gmra.mxu1 %vm317_vm1, %v315_v9  ;;  %1951 = vmatprep.subr.mxu0 %v2078_v8  ;;  %v2200_v21 = vld [vmem:[%s2358_s4] sm:$0xff]  ;;  %v932_v30 = vmax.f32 %v1861_v15, %v931_v27  ;;  %v950_v36 = vmax.f32 %v1865_v17, %v949_v31  ;;  %v906_v47 = vrot.slane %v905_v39, 2  ;;  %v941_v57 = vmax.f32 %v1863_v16, %v940_v46 }
  0x27   : > { %1956 = vmatprep.subr.mxu1 %v2078_v8  ;;  %1952 = vmatpush3.msra.mxu0 %v1857_v13  ;;  %v1012_v22 = vld [vmem:[%s2359_s5] sm:$0xff]  ;;  %v897_v28 = vrot.slane %v896_v25, 2  ;;  %v915_v29 = vrot.slane %v914_v26, 2  ;;  %v924_v56 = vrot.slane %v923_v45, 2  ;;  %v959_v12 = vmax.f32 %v2180_v18, %v958_v58 }
  0x28   : > { %1953 = vmatprep.mubr.msk.f32.mxu0 %vm2079_vm0, %v2078_v8  ;;  %1957 = vmatpush3.msra.mxu1 %v1859_v14  ;;  %v933_v35 = vrot.slane %v932_v30, 2  ;;  %v951_v42 = vrot.slane %v950_v36, 2  ;;  %v907_v61 = vmax.f32 %v905_v39, %v906_v47  ;;  %v942_v11 = vrot.slane %v941_v57, 2 }
  0x29   : > { %1958 = vmatprep.mubr.msk.f32.mxu1 %vm2079_vm0, %v2078_v8  ;;  %1954 = vmatmul.mubr.msk.f32.vlgmr.msra.gmra.mxu0 %vm317_vm1, %v315_v9  ;;  %v898_v32 = vmax.f32 %v896_v25, %v897_v28  ;;  %v916_v34 = vmax.f32 %v914_v26, %v915_v29  ;;  %v925_v10 = vmax.f32 %v923_v45, %v924_v56  ;;  %vm1780_vm11 = vcmask 15360  }
  0x2a   : > { %1959 = vmatmul.mubr.msk.f32.vlgmr.msra.gmra.mxu1 %vm317_vm1, %v315_v9  ;;  %1961 = vmatprep.subr.mxu0 %v2078_v8  ;;  %v934_v41 = vmax.f32 %v932_v30, %v933_v35  ;;  %v952_v48 = vmax.f32 %v950_v36, %v951_v42  ;;  %v943_v29 = vmax.f32 %v941_v57, %v942_v11  ;;  %v960_v30 = vrot.slane %v959_v12, 2 }
  0x2b   : > { %1966 = vmatprep.subr.mxu1 %v2078_v8  ;;  %1962 = vmatpush3.msra.mxu0 %v1861_v15  ;;  %v899_v37 = vrot.slane %v898_v32, 1  ;;  %v917_v43 = vrot.slane %v916_v34, 1 }
  0x2c   : > { %1963 = vmatprep.mubr.msk.f32.mxu0 %vm2079_vm0, %v2078_v8  ;;  %1967 = vmatpush3.msra.mxu1 %v1863_v16  ;;  %v935_v52 = vrot.slane %v934_v41, 1  ;;  %v953_v4 = vrot.slane %v952_v48, 1  ;;  %v961_v47 = vmax.f32 %v959_v12, %v960_v30 }
  0x2d   : > { %1968 = vmatprep.mubr.msk.f32.mxu1 %vm2079_vm0, %v2078_v8  ;;  %1964 = vmatmul.mubr.msk.f32.vlgmr.msra.gmra.mxu0 %vm317_vm1, %v315_v9  ;;  %v900_v44 = vmax.f32 %v898_v32, %v899_v37  ;;  %v918_v51 = vmax.f32 %v916_v34, %v917_v43  ;;  %v926_v34 = vrot.slane %v925_v10, 1 }
  0x2e   : > { %1969 = vmatmul.mubr.msk.f32.vlgmr.msra.gmra.mxu1 %vm317_vm1, %v315_v9  ;;  %1971 = vmatprep.subr.mxu0 %v2078_v8  ;;  %v936_v3 = vmax.f32 %v934_v41, %v935_v52  ;;  %v954_v24 = vmax.f32 %v952_v48, %v953_v4  ;;  %v944_v52 = vrot.slane %v943_v29, 1 }
  0x2f   : > { %1976 = vmatprep.subr.mxu1 %v2078_v8  ;;  %1972 = vmatpush3.msra.mxu0 %v1865_v17  ;;  %vm901_vm2 = vcmp.ne.f32.partialorder %v900_v44, 0.0  ;;  %vm919_vm3 = vcmp.ne.f32.partialorder %v918_v51, 0.0  ;;  %v927_v51 = vmax.f32 %v925_v10, %v926_v34 }
  0x30   : > { %1973 = vmatprep.mubr.msk.f32.mxu0 %vm2079_vm0, %v2078_v8  ;;  %1977 = vmatpush3.msra.mxu1 %v2180_v18  ;;  %v2220_v2 = vsel %vm901_vm2, 1.0, %v2078_v8  ;;  %v2233_v23 = vsel %vm919_vm3, 1.0, %v2078_v8  ;;  %v2238_v18 = vld [vmem:[%s2358_s4 + $0x8] sm:$0xff]  ;;  %vm937_vm4 = vcmp.ne.f32.partialorder %v936_v3, 0.0  ;;  %vm955_vm5 = vcmp.ne.f32.partialorder %v954_v24, 0.0 }
  0x31   : > { %1978 = vmatprep.mubr.msk.f32.mxu1 %vm2079_vm0, %v2078_v8  ;;  %1974 = vmatmul.mubr.msk.f32.vlgmr.msra.gmra.mxu0 %vm317_vm1, %v315_v9  ;;  %v2256_v42 = vsel %vm937_vm4, 1.0, %v2078_v8  ;;  %vm928_vm7 = vcmp.ne.f32.partialorder %v927_v51, 0.0 }
  0x32   : > { %1979 = vmatmul.mubr.msk.f32.vlgmr.msra.gmra.mxu1 %vm317_vm1, %v315_v9  ;;  %971 = vperm.xlu0 %2053, %v967_v19   ;;  %v908_v19 = vrot.slane %v907_v61, 1 }
  0x33   : > { %1988 = vmatprep.mubr.msk.f32.mxu1 %vm317_vm1, %v2200_v21  ;;  %1983 = vmatprep.mubr.msk.f32.mxu0 %vm317_vm1, %v1012_v22 }
  0x34   : > { %v909_v43 = vmax.f32 %v907_v61, %v908_v19  ;;  %v945_v61 = vmax.f32 %v943_v29, %v944_v52 }
  0x36   : > { %977 = vperm.xlu0 %2053, %v968_v20   ;;  %vm910_vm6 = vcmp.ne.f32.partialorder %v909_v43, 0.0  ;;  %vm946_vm8 = vcmp.ne.f32.partialorder %v945_v61, 0.0 }
  0x37   : > { %v1870_v3 = vsel %vm910_vm6, 1.0, %v2078_v8  ;;  %v2292_v12 = vsel %vm946_vm8, 1.0, %v2078_v8 }
  0xad   : > { %v2208_v40 = vpop.permute.xlu0 %971 }
  0xb1   : > { %v2210_v53 = vpop.permute.xlu0 %977 }
  0xe5   : > { %v387_v49 = vpop.f32.mrf.mxu0 }
  0xe6   : > { %v459_v50 = vpop.f32.mrf.mxu1  ;;  %v974_v54 = vmul.f32 %v2208_v40, %v387_v49 }
  0xe7   : > { %v982_v55 = vmul.f32 %v2208_v40, %v459_v50  ;;  %v1945_v59 = vpop.f32.mrf.mxu0 }
  0xe8   : > { %v1950_v60 = vpop.f32.mrf.mxu1  ;;  %v980_v62 = vadd.f32 %v2210_v53, %v974_v54 }
  0xe9   : > { %v2217_v63 = vadd.f32 %v982_v55, %v2210_v53  ;;  %v531_v0 = vpop.f32.mrf.mxu0 }
  0xea   : > { %v603_v1 = vpop.f32.mrf.mxu1  ;;  %v981_v5 = vmax.f32 %v980_v62, 0.0  ;;  %v985_v7 = vmul.f32 %v2208_v40, %v531_v0 }
  0xeb   : > { %v984_v6 = vmax.f32 %v2217_v63, 0.0  ;;  %v988_v9 = vmul.f32 %v2208_v40, %v603_v1  ;;  %v1955_v13 = vpop.f32.mrf.mxu0 }
  0xec   : > { %v1960_v14 = vpop.f32.mrf.mxu1  ;;  %v986_v15 = vadd.f32 %v985_v7, %v2210_v53  ;;  %v1095_v17 = vmul.f32 %v2220_v2, %v981_v5  ;;  %v2281_v7 = vsel %vm928_vm7, 1.0, %v2078_v8 }
  0xed   : > { %v2228_v16 = vadd.f32 %v988_v9, %v2210_v53  ;;  %v675_v20 = vpop.f32.mrf.mxu0  ;;  %v1003_v25 = vmax.f32 %v981_v5, %v984_v6  ;;  %v1013_v5 = vld [vmem:[%s2359_s5 + $0x8] sm:$0xff]  ;;  %v1179_v9 = vmul.f32 %v1870_v3, %v984_v6 }
  0xee   : > { %v747_v22 = vpop.f32.mrf.mxu1  ;;  %v987_v26 = vmax.f32 %v986_v15, 0.0  ;;  %v991_v27 = vmul.f32 %v2208_v40, %v675_v20  ;;  %1986 = vmatprep.subr.mxu1 %v1095_v17 }
  0xef   : > { %v994_v28 = vmul.f32 %v2208_v40, %v747_v22  ;;  %v990_v31 = vmax.f32 %v2228_v16, 0.0  ;;  %v1965_v32 = vpop.f32.mrf.mxu0  ;;  %1987 = vmatpush3.msra.mxu1 %v1095_v17 }
  0xf0   : > { %v1970_v33 = vpop.f32.mrf.mxu1  ;;  %v1004_v35 = vmax.f32 %v1003_v25, %v987_v26  ;;  %v992_v36 = vadd.f32 %v991_v27, %v2210_v53  ;;  %v1257_v38 = vmul.f32 %v2233_v23, %v987_v26  ;;  %1989 = vmatmul.mubr.msk.f32.vlgmr.msra.gmra.mxu1 %vm317_vm1, %v2238_v18 }
  0xf1   : > { %v2247_v37 = vadd.f32 %v994_v28, %v2210_v53  ;;  %v819_v39 = vpop.f32.mrf.mxu0  ;;  %1998 = vmatprep.mubr.msk.f32.mxu1 %vm317_vm1, %v2200_v21  ;;  %v1335_v11 = vmul.f32 %v2281_v7, %v990_v31 }
  0xf2   : > { %v891_v41 = vpop.f32.mrf.mxu1  ;;  %v1005_v44 = vmax.f32 %v1004_v35, %v990_v31  ;;  %v993_v45 = vmax.f32 %v992_v36, 0.0  ;;  %v997_v46 = vmul.f32 %v2208_v40, %v819_v39  ;;  %1996 = vmatprep.subr.mxu1 %v1257_v38 }
  0xf3   : > { %v1000_v48 = vmul.f32 %v2208_v40, %v891_v41  ;;  %v1975_v49 = vpop.f32.mrf.mxu0  ;;  %1997 = vmatpush3.msra.mxu1 %v1257_v38  ;;  %v996_v55 = vmax.f32 %v2247_v37, 0.0  ;;  %v2269_v40 = vsel %vm955_vm5, 1.0, %v2078_v8 }
  0xf4   : > { %v1980_v50 = vpop.f32.mrf.mxu1  ;;  %v1006_v54 = vmax.f32 %v1005_v44, %v993_v45  ;;  %v998_v56 = vadd.f32 %v997_v46, %v2210_v53  ;;  %v1413_v57 = vmul.f32 %v2256_v42, %v993_v45  ;;  %1999 = vmatmul.mubr.msk.f32.vlgmr.msra.gmra.mxu1 %vm317_vm1, %v2238_v18 }
  0xf5   : > { %v1001_v58 = vadd.f32 %v1000_v48, %v2210_v53  ;;  %2008 = vmatprep.mubr.msk.f32.mxu1 %vm317_vm1, %v2200_v21  ;;  %v962_v53 = vrot.slane %v961_v47, 1  ;;  %v1491_v63 = vmul.f32 %v2292_v12, %v996_v55 }
  0xf6   : > { %v1007_v59 = vmax.f32 %v1006_v54, %v996_v55  ;;  %v999_v60 = vmax.f32 %v998_v56, 0.0  ;;  %2006 = vmatprep.subr.mxu1 %v1413_v57 }
  0xf7   : > { %2007 = vmatpush3.msra.mxu1 %v1413_v57  ;;  %v1002_v0 = vmax.f32 %v1001_v58, 0.0  ;;  %v963_v10 = vmax.f32 %v961_v47, %v962_v53 }
  0xf8   : > { %v1008_v62 = vmax.f32 %v1007_v59, %v999_v60  ;;  %v1569_v1 = vmul.f32 %v2269_v40, %v999_v60  ;;  %2009 = vmatmul.mubr.msk.f32.vlgmr.msra.gmra.mxu1 %vm317_vm1, %v2238_v18 }
  0xf9   : > { %2018 = vmatprep.mubr.msk.f32.mxu1 %vm317_vm1, %v2200_v21  ;;  %vm964_vm9 = vcmp.ne.f32.partialorder %v963_v10, 0.0 }
  0xfa   : > { %2016 = vmatprep.subr.mxu1 %v1569_v1  ;;  %v1009_v4 = vmax.f32 %v1008_v62, %v1002_v0  ;;  %v2300_v6 = vsel %vm964_vm9, 1.0, %v2078_v8 }
  0xfb   : > { %2017 = vmatpush3.msra.mxu1 %v1569_v1  ;;  %v1647_v13 = vmul.f32 %v2300_v6, %v1002_v0 }
  0xfc   : > { %1981 = vmatprep.subr.mxu0 %v1009_v4  ;;  %2019 = vmatmul.mubr.msk.f32.vlgmr.msra.gmra.mxu1 %vm317_vm1, %v2238_v18 }
  0xfd   : > { %1982 = vmatpush3.msra.mxu0 %v1009_v4 }
  0xfe   : > { %1984 = vmatmul.mubr.msk.f32.vlgmr.msra.gmra.mxu0 %vm317_vm1, %v1013_v5  ;;  %1991 = vmatprep.subr.mxu0 %v1179_v9 }
  0xff   : > { %1992 = vmatpush3.msra.mxu0 %v1179_v9  ;;  %1993 = vmatprep.mubr.msk.f32.mxu0 %vm317_vm1, %v2200_v21 }
 0x100   : > { %2001 = vmatprep.subr.mxu0 %v1335_v11 }
 0x102   : > { %1994 = vmatmul.mubr.msk.f32.vlgmr.msra.gmra.mxu0 %vm317_vm1, %v2238_v18 }
 0x103   : > { %2002 = vmatpush3.msra.mxu0 %v1335_v11  ;;  %2003 = vmatprep.mubr.msk.f32.mxu0 %vm317_vm1, %v2200_v21 }
 0x104   : > { %2011 = vmatprep.subr.mxu0 %v1491_v63 }
 0x106   : > { %2004 = vmatmul.mubr.msk.f32.vlgmr.msra.gmra.mxu0 %vm317_vm1, %v2238_v18 }
 0x107   : > { %2012 = vmatpush3.msra.mxu0 %v1491_v63  ;;  %2013 = vmatprep.mubr.msk.f32.mxu0 %vm317_vm1, %v2200_v21 }
 0x108   : > { %2021 = vmatprep.subr.mxu0 %v1647_v13 }
 0x10a   : > { %2014 = vmatmul.mubr.msk.f32.vlgmr.msra.gmra.mxu0 %vm317_vm1, %v2238_v18 }
 0x10b   : > { %2022 = vmatpush3.msra.mxu0 %v1647_v13  ;;  %2023 = vmatprep.mubr.msk.f32.mxu0 %vm317_vm1, %v2200_v21 }
 0x10e   : > { %2024 = vmatmul.mubr.msk.f32.vlgmr.msra.gmra.mxu0 %vm317_vm1, %v2238_v18 }
 0x1b0   : > { %v1990_v8 = vpop.f32.mrf.mxu1 }
 0x1b2   : > { %v1170_v14 = vpop.f32.mrf.mxu1 }
 0x1b4   : > { %v2000_v15 = vpop.f32.mrf.mxu1 }
 0x1b6   : > { %v1326_v16 = vpop.f32.mrf.mxu1 }
 0x1b8   : > { %v2010_v17 = vpop.f32.mrf.mxu1 }
 0x1ba   : > { %v1482_v27 = vpop.f32.mrf.mxu1 }
 0x1be   : > { %v1985_v19 = vpop.f32.mrf.mxu0 }
 0x1bf   : > { %v1097_v20 = vmul.f32 %v1985_v19, %v2220_v2  ;;  %v1259_v22 = vmul.f32 %v1985_v19, %v2233_v23  ;;  %v1181_v26 = vmul.f32 %v1985_v19, %v1870_v3  ;;  %v1571_v18 = vmul.f32 %v1985_v19, %v2269_v40 }
 0x1c0   : > { %v2315_v24 = vpop.f32.mrf.mxu0  ;;  %v1337_v33 = vmul.f32 %v1985_v19, %v2281_v7  ;;  %v1415_v34 = vmul.f32 %v1985_v19, %v2256_v42  ;;  %v1493_v38 = vmul.f32 %v1985_v19, %v2292_v12  ;;  %v1649_v4 = vmul.f32 %v1985_v19, %v2300_v6 }
 0x1c1   : > { %v1176_v25 = vadd.f32 %v1990_v8, %v1097_v20  ;;  %v1096_v21 = vmul.f32 %v2220_v2, %v2315_v24  ;;  %v1332_v29 = vadd.f32 %v2000_v15, %v1259_v22  ;;  %v1258_v30 = vmul.f32 %v2233_v23, %v2315_v24  ;;  %v2020_v23 = vpop.f32.mrf.mxu1 }
 0x1c2   : > { %v1995_v28 = vpop.f32.mrf.mxu0  ;;  %v1180_v32 = vmul.f32 %v1870_v3, %v2315_v24  ;;  %v1570_v35 = vmul.f32 %v2269_v40, %v2315_v24  ;;  %v1336_v48 = vmul.f32 %v2281_v7, %v2315_v24  ;;  %v1414_v49 = vmul.f32 %v2256_v42, %v2315_v24 }
 0x1c3   : > { %v1254_v31 = vadd.f32 %v1995_v28, %v1181_v26  ;;  %v1171_v36 = vadd.f32 %v1170_v14, %v1096_v21  ;;  %v1327_v37 = vadd.f32 %v1326_v16, %v1258_v30  ;;  %v1726_v39 = vmul.f32 %v1176_v25, %v1176_v25  ;;  %v1638_v0 = vpop.f32.mrf.mxu1 }
 0x1c4   : > { %v1248_v2 = vpop.f32.mrf.mxu0  ;;  %v1736_v47 = vmul.f32 %v1332_v29, %v1332_v29  ;;  %v1488_v58 = vadd.f32 %v2010_v17, %v1415_v34  ;;  %v1483_v40 = vadd.f32 %v1482_v27, %v1414_v49  ;;  %v1492_v42 = vmul.f32 %v2292_v12, %v2315_v24 }
 0x1c5   : > { %v1728_v41 = vadd.f32 %v1254_v31, %v1176_v25  ;;  %v1730_v43 = vmul.f32 %v1254_v31, %v1254_v31  ;;  %v1249_v44 = vadd.f32 %v1248_v2, %v1180_v32  ;;  %v1725_v45 = vmul.f32 %v1171_v36, %v1171_v36 }
 0x1c6   : > { %v2005_v46 = vpop.f32.mrf.mxu0  ;;  %v1735_v57 = vmul.f32 %v1327_v37, %v1327_v37  ;;  %v1644_v11 = vadd.f32 %v2020_v23, %v1571_v18  ;;  %v1748_v8 = vmul.f32 %v1488_v58, %v1488_v58  ;;  %v1639_v15 = vadd.f32 %v1638_v0, %v1570_v35 }
 0x1c7   : > { %v1732_v50 = vadd.f32 %v1730_v43, %v1726_v39  ;;  %v1727_v51 = vadd.f32 %v1249_v44, %v1171_v36  ;;  %v1729_v52 = vmul.f32 %v1249_v44, %v1249_v44  ;;  %v1410_v54 = vadd.f32 %v2005_v46, %v1337_v33 }
 0x1c8   : > { %v1734_v55 = vadd.f32 %v1728_v41, %v1332_v29  ;;  %v1404_v56 = vpop.f32.mrf.mxu0  ;;  %v1747_v20 = vmul.f32 %v1483_v40, %v1483_v40  ;;  %v1648_v29 = vmul.f32 %v2300_v6, %v2315_v24  ;;  %v1759_v32 = vmul.f32 %v1639_v15, %v1639_v15 }
 0x1c9   : > { %v1731_v59 = vadd.f32 %v1729_v52, %v1725_v45  ;;  %v1738_v60 = vadd.f32 %v1736_v47, %v1732_v50  ;;  %v1742_v61 = vmul.f32 %v1410_v54, %v1410_v54  ;;  %v1405_v62 = vadd.f32 %v1404_v56, %v1336_v48 }
 0x1ca   : > { %v1740_v1 = vadd.f32 %v1734_v55, %v1410_v54  ;;  %v1733_v53 = vadd.f32 %v1727_v51, %v1327_v37  ;;  %v2015_v3 = vpop.f32.mrf.mxu0  ;;  %v1760_v39 = vmul.f32 %v1644_v11, %v1644_v11 }
 0x1cb   : > { %v1744_v5 = vadd.f32 %v1742_v61, %v1738_v60  ;;  %v1737_v7 = vadd.f32 %v1735_v57, %v1731_v59  ;;  %v1741_v9 = vmul.f32 %v1405_v62, %v1405_v62  ;;  %v1566_v10 = vadd.f32 %v2015_v3, %v1493_v38 }
 0x1cc   : > { %v1739_v63 = vadd.f32 %v1733_v53, %v1405_v62  ;;  %v1746_v13 = vadd.f32 %v1740_v1, %v1488_v58  ;;  %v1560_v14 = vpop.f32.mrf.mxu0 }
 0x1cd   : > { %v1743_v16 = vadd.f32 %v1741_v9, %v1737_v7  ;;  %v1561_v17 = vadd.f32 %v1560_v14, %v1492_v42  ;;  %v1750_v22 = vadd.f32 %v1748_v8, %v1744_v5  ;;  %v1754_v26 = vmul.f32 %v1566_v10, %v1566_v10 }
 0x1ce   : > { %v1752_v25 = vadd.f32 %v1746_v13, %v1566_v10  ;;  %v1745_v21 = vadd.f32 %v1739_v63, %v1483_v40  ;;  %v2025_v12 = vpop.f32.mrf.mxu0 }
 0x1cf   : > { %v1749_v27 = vadd.f32 %v1747_v20, %v1743_v16  ;;  %v1753_v19 = vmul.f32 %v1561_v17, %v1561_v17  ;;  %v1722_v28 = vadd.f32 %v2025_v12, %v1649_v4  ;;  %v1756_v35 = vadd.f32 %v1754_v26, %v1750_v22 }
 0x1d0   : > { %v1751_v18 = vadd.f32 %v1745_v21, %v1561_v17  ;;  %v1716_v30 = vpop.f32.mrf.mxu0  ;;  %v1758_v31 = vadd.f32 %v1752_v25, %v1644_v11 }
 0x1d1   : > { %v1755_v33 = vadd.f32 %v1753_v19, %v1749_v27  ;;  %v1717_v34 = vadd.f32 %v1716_v30, %v1648_v29  ;;  %v1766_v43 = vmul.f32 %v1722_v28, %v1722_v28  ;;  %v1762_v23 = vadd.f32 %v1760_v39, %v1756_v35 }
 0x1d2   : > { %v1764_v36 = vadd.f32 %v1758_v31, %v1722_v28  ;;  %v1757_v2 = vadd.f32 %v1751_v18, %v1639_v15 }
 0x1d3   : > { %v1765_v37 = vmul.f32 %v1717_v34, %v1717_v34  ;;  %v1761_v38 = vadd.f32 %v1759_v32, %v1755_v33  ;;  %v1768_v6 = vadd.f32 %v1766_v43, %v1762_v23 }
 0x1d4   : > { %1771 = vadd.xlane.f32.xlu1 %v1764_v36  ;;  %v1763_v44 = vadd.f32 %v1757_v2, %v1717_v34 }
 0x1d5   : > { %v1767_v41 = vadd.f32 %v1765_v37, %v1761_v38 }
 0x1d7   : > { %1773 = vadd.xlane.f32.xlu0 %v1767_v41 }
 0x1d8   : > { %1769 = vadd.xlane.f32.xlu1 %v1763_v44 }
 0x1dc   : > { %1775 = vadd.xlane.f32.xlu1 %v1768_v6 }
 0x25d   : > { %v1772_v24 = vpop.xlane.xlu1 %1771 }
 0x260   : > { %v1774_v45 = vpop.xlane.xlu0 %1773 }
 0x261   : > { %v1770_v46 = vpop.xlane.xlu1 %1769 }
 0x262   : > { %v1778_v47 = vsel %vm1777_vm10, %v1770_v46, %v1774_v45 }
 0x263   : > { %1781 = vst.msk [vmem:[%s314_s13] sm:$0xff] %vm1780_vm11, %v1778_v47 }
 0x265   : > { %v1776_v48 = vpop.xlane.xlu1 %1775 }
 0x266   : > { %v1779_v49 = vsel %vm1777_vm10, %v1772_v24, %v1776_v48 }
 0x267   : > { %1782 = vst.msk [vmem:[%s314_s13 + $0x8] sm:$0xff] %vm1780_vm11, %v1779_v49 }
 0x268 PF: > { %p13_p9 = scmp.ge.s32.totalorder %s2133_s25, 6   ;;  %s2361_s21 = smov %s2072_s22 }
 0x269   : > { %s2362_s22 = smov %s2142_s28  ;;  %s2363_s23 = smov %s2133_s25 }
 0x26a   :  { %15 = sbr.rel (!%p13_p9) target bundleno = 2 (0x2), region = 124 }

// kernel: smokenet_no_conv.6
= control target key start
LH: loop header
LB: loop body
LE: loop exit
PB: predicated region body
PF: predicated region fallthrough
CT: control target
= control target key end

     0   :  { %s2565_s17 = smov 0   ;;  %s2567_s18 = smov 0   ;;  %s2937_s0 = inlined_call_operand.vmem [shape: f32[8,8,512], index: 0, kind: input, shape index: {}]   ;;  %s2938_s1 = inlined_call_operand.vmem [shape: f32[8,8], index: 1, kind: input, shape index: {}]   ;;  %s2939_s2 = inlined_call_operand.vmem [shape: f32[8,1], index: 2, kind: input, shape index: {}]   ;;  %s2940_s3 = inlined_call_operand.vmem [shape: f32[8,1], index: 3, kind: input, shape index: {}]   ;;  %s2941_s4 = inlined_call_operand.vmem [shape: f32[16,8], index: 4, kind: input, shape index: {}]   ;;  %s2942_s5 = inlined_call_operand.vmem [shape: f32[16,8], index: 5, kind: input, shape index: {}]   ;;  %s2943_s6 = inlined_call_operand.vmem [shape: f32[16,1], index: 6, kind: input, shape index: {}]   ;;  %s2944_s7 = inlined_call_operand.vmem [shape: f32[16,1], index: 7, kind: input, shape index: {}]   ;;  %s2945_s8 = inlined_call_operand.vmem [shape: f32[2,16], index: 8, kind: input, shape index: {}]   ;;  %s2946_s9 = inlined_call_operand.vmem [shape: f32[2,16], index: 9, kind: input, shape index: {}]   ;;  %s2947_s10 = inlined_call_operand.vmem [shape: f32[2,512], index: 10, kind: output, shape index: {0}]   ;;  %s2948_s11 = inlined_call_operand.vmem [shape: f32[4,2,2], index: 11, kind: output, shape index: {1}]  }
   0x1   :  { %s2569_s19 = smov 0  }
   0x2 LB: > { %s2246_s20 = sadd.s32 4294967295, %s2500_s19   ;;  %s2582_s21 = sadd.s32 1, %s2500_s19   ;;  %s2500_s19 = sphi %s2569_s19, %s2951_s19   ;;  %s2496_s18 = sphi %s2567_s18, %s2950_s18   ;;  %s2492_s17 = sphi %s2565_s17, %s2949_s17  }
   0x3   : > { %s26_s22 = ssub.s32 %s2500_s19, %s2582_s21  ;;  %s29_s23 = sadd.s32 1, %s2496_s18 }
   0x4   : > { %p27_p0 = scmp.eq.s32.totalorder %s26_s22, 0  ;;  %p36_p1 = scmp.ne.s32.totalorder %s2496_s18, %s2492_s17 }
   0x5   : > { %p37_p2 = scmp.eq.s32.totalorder %s2500_s19, 0  ;;  %p2249_p4 = scmp.ge.s32.totalorder %s2500_s19, 4 }
   0x6   : > { %s2591_s24 = scalar_select %p27_p0, %s2496_s18, %s29_s23  }
   0x7   : > { %p38_p3 = por %p37_p2, %p36_p1  ;;  %330 = sbr.rel (%p2249_p4) target bundleno = 24 (0x18), region = 52 }
   0xc   : > { %333 = sbr.rel (!%p38_p3) target bundleno = 24 (0x18), region = 56  ;;  %s335_s25 = sand.u32 (%p38_p3), 1, %s2496_s18  }
   0xd   : > { %s2251_s26 = sshll.u32 (%p38_p3), %s2500_s19, 3  ;;  %s2250_s27 = sshll.u32 (%p38_p3), %s335_s25, 6 }
   0xe   : > { %s339_s30 = scalar_lea.vmem (%p38_p3), %s2937_s0, %s2251_s26  ;;  %s337_s12 = scalar_lea.vmem (%p38_p3), [#allocation2], %s2250_s27 }
   0xf   : > { %v382_v0 = vld [vmem:[%s339_s30] sm:$0xff] (%p38_p3) }
  0x10   : > { %v384_v1 = vld [vmem:[%s339_s30 + $0x20] sm:$0xff] (%p38_p3)  ;;  %383 = vst [vmem:[%s337_s12] sm:$0xff] (%p38_p3), %v382_v0 }
  0x11   : > { %v386_v2 = vld [vmem:[%s339_s30 + $0x40] sm:$0xff]  ;;  %385 = vst [vmem:[%s337_s12 + $0x8] sm:$0xff] %v384_v1 }
  0x12   : > { %387 = vst [vmem:[%s337_s12 + $0x10] sm:$0xff] %v386_v2  ;;  %v388_v3 = vld [vmem:[%s339_s30 + $0x60] sm:$0xff] }
  0x13   : > { %v390_v4 = vld [vmem:[%s339_s30 + $0x80] sm:$0xff]  ;;  %389 = vst [vmem:[%s337_s12 + $0x18] sm:$0xff] %v388_v3 }
  0x14   : > { %v392_v5 = vld [vmem:[%s339_s30 + $0xa0] sm:$0xff]  ;;  %391 = vst [vmem:[%s337_s12 + $0x20] sm:$0xff] %v390_v4 }
  0x15   : > { %393 = vst [vmem:[%s337_s12 + $0x28] sm:$0xff] %v392_v5  ;;  %v394_v6 = vld [vmem:[%s339_s30 + $0xc0] sm:$0xff] }
  0x16   : > { %v396_v7 = vld [vmem:[%s339_s30 + $0xe0] sm:$0xff]  ;;  %395 = vst [vmem:[%s337_s12 + $0x30] sm:$0xff] %v394_v6 }
  0x17   : > { %397 = vst [vmem:[%s337_s12 + $0x38] sm:$0xff] %v396_v7 }
  0x18 PF: > { %p2252_p5 = scmp.ge.s32.totalorder %s2500_s19, 1  ;;  %p402_p6 = scmp.lt.s32.totalorder %s2500_s19, 5 }
  0x1a   : > { %p403_p7 = pnand %p2252_p5, %p402_p6 }
  0x1b   : > { %s409_s13 = sand.u32 (!%p403_p7), 1, %s2492_s17   ;;  %p451_p8 = scmp.lt.s32.totalorder (!%p403_p7), %s2246_s20, 3 }
  0x1c   : > { %406 = sbr.rel (%p403_p7) target bundleno = 825 (0x339), region = 94  ;;  %s2253_s14 = sshll.u32 (!%p403_p7), %s409_s13, 6 }
  0x1d   : > { %s2611_s22 = scalar_lea.vmem (!%p403_p7), [#allocation2], %s2253_s14 }
  0x21   : > { %v2502_v8 = vmov 0.0   ;;  %vm2503_vm0 = vmmov 0   ;;  %v459_v9 = vld [vmem:[%s2938_s1] sm:$0xff]  ;;  %vm461_vm1 = vcmask 64512   ;;  %v2615_v11 = vld [vmem:[%s2611_s22 + $0x8] sm:$0xff]  ;;  %v2504_v12 = vmov 0  }
  0x22   : > { %2350 = vmatprep.subr.mxu0 %v2502_v8  ;;  %2355 = vmatprep.subr.mxu1 %v2502_v8  ;;  %v460_v10 = vld [vmem:[%s2611_s22] sm:$0xff]  ;;  %v2259_v13 = vld [vmem:[%s2611_s22 + $0x10] sm:$0xff]  ;;  %v2622_v14 = vld [vmem:[%s2611_s22 + $0x18] sm:$0xff]  ;;  %v1048_v37 = vrot.slane %v2615_v11, 4  ;;  %vm1996_vm10 = vcmask 130048   ;;  %s2953_s20 = smov (!%p451_p8, %s2246_s20), 3 }
  0x23   : > { %2352 = vmatprep.mubr.msk.f32.mxu0 %vm2503_vm0, %v2502_v8  ;;  %2357 = vmatprep.mubr.msk.f32.mxu1 %vm2503_vm0, %v2502_v8  ;;  %v2263_v15 = vld [vmem:[%s2611_s22 + $0x20] sm:$0xff]  ;;  %v2635_v16 = vld [vmem:[%s2611_s22 + $0x28] sm:$0xff]  ;;  %v2267_v17 = vld [vmem:[%s2611_s22 + $0x30] sm:$0xff]  ;;  %v1039_v27 = vrot.slane %v460_v10, 4  ;;  %v1057_v28 = vrot.slane %v2259_v13, 4  ;;  %v1066_v42 = vrot.slane %v2622_v14, 4 }
  0x24   : > { %2476 = vset.pattern.permute.xlu0 %v2504_v12  ;;  %2477 = vset.pattern.permute.xlu1 %v2504_v12  ;;  %v2648_v18 = vld [vmem:[%s2611_s22 + $0x38] sm:$0xff]  ;;  %v1111_v19 = vld [vmem:[%s2939_s2] sm:$0xff]  ;;  %v1872_v21 = vld [vmem:[%s2944_s7 + $0x8] sm:$0xff]  ;;  %v1075_v31 = vrot.slane %v2263_v15, 4  ;;  %v1093_v35 = vrot.slane %v2267_v17, 4  ;;  %v1049_v43 = vmax.f32 %v2615_v11, %v1048_v37  ;;  %v1084_v50 = vrot.slane %v2635_v16, 4 }
  0x25   : > { %2351 = vmatpush3.msra.mxu0 %v460_v10  ;;  %2356 = vmatpush3.msra.mxu1 %v2615_v11  ;;  %v1112_v20 = vld [vmem:[%s2940_s3] sm:$0xff]  ;;  %v1870_v24 = vld [vmem:[%s2943_s6 + $0x8] sm:$0xff]  ;;  %v1040_v29 = vmax.f32 %v460_v10, %v1039_v27  ;;  %v1058_v30 = vmax.f32 %v2259_v13, %v1057_v28  ;;  %v1067_v49 = vmax.f32 %v2622_v14, %v1066_v42  ;;  %v1102_v62 = vrot.slane %v2648_v18, 4  ;;  %s2254_s14 = sshll.u32 %s2953_s20, 1 }
  0x26   : > { %2353 = vmatmul.mubr.msk.f32.vlgmr.msra.gmra.mxu0 %vm461_vm1, %v459_v9  ;;  %2358 = vmatmul.mubr.msk.f32.vlgmr.msra.gmra.mxu1 %vm461_vm1, %v459_v9  ;;  %v2671_v22 = vld [vmem:[%s2941_s4] sm:$0xff]  ;;  %v1076_v34 = vmax.f32 %v2263_v15, %v1075_v31  ;;  %v1094_v40 = vmax.f32 %v2267_v17, %v1093_v35  ;;  %v1050_v51 = vrot.slane %v1049_v43, 2  ;;  %v1085_v61 = vmax.f32 %v2635_v16, %v1084_v50  ;;  %s454_s22 = scalar_lea.vmem %s2947_s10, %s2254_s14  ;;  %s458_s20 = scalar_lea.vmem %s2948_s11, %s2254_s14 }
  0x27   : > { %2360 = vmatprep.subr.mxu0 %v2502_v8  ;;  %2365 = vmatprep.subr.mxu1 %v2502_v8  ;;  %v1156_v23 = vld [vmem:[%s2942_s5] sm:$0xff]  ;;  %v1041_v32 = vrot.slane %v1040_v29, 2  ;;  %v1059_v33 = vrot.slane %v1058_v30, 2  ;;  %v1068_v60 = vrot.slane %v1067_v49, 2  ;;  %vm2144_vm11 = vcmask 1041408  }
  0x28   : > { %2361 = vmatpush3.msra.mxu0 %v2259_v13  ;;  %2362 = vmatprep.mubr.msk.f32.mxu0 %vm2503_vm0, %v2502_v8  ;;  %v1869_v25 = vld [vmem:[%s2943_s6] sm:$0xff]  ;;  %v1077_v39 = vrot.slane %v1076_v34, 2  ;;  %v1095_v47 = vrot.slane %v1094_v40, 2  ;;  %v1051_v1 = vmax.f32 %v1049_v43, %v1050_v51  ;;  %vm2152_vm12 = vcmask 7168  }
  0x29   : > { %2366 = vmatpush3.msra.mxu1 %v2622_v14  ;;  %2367 = vmatprep.mubr.msk.f32.mxu1 %vm2503_vm0, %v2502_v8  ;;  %v1871_v26 = vld [vmem:[%s2944_s7] sm:$0xff]  ;;  %v1042_v36 = vmax.f32 %v1040_v29, %v1041_v32  ;;  %v1060_v38 = vmax.f32 %v1058_v30, %v1059_v33  ;;  %v1069_v14 = vmax.f32 %v1067_v49, %v1068_v60  ;;  %vm2154_vm13 = vcmask 9216  }
  0x2a   : > { %2363 = vmatmul.mubr.msk.f32.vlgmr.msra.gmra.mxu0 %vm461_vm1, %v459_v9  ;;  %2368 = vmatmul.mubr.msk.f32.vlgmr.msra.gmra.mxu1 %vm461_vm1, %v459_v9  ;;  %v1078_v46 = vmax.f32 %v1076_v34, %v1077_v39  ;;  %v1096_v54 = vmax.f32 %v1094_v40, %v1095_v47 }
  0x2b   : > { %2370 = vmatprep.subr.mxu0 %v2502_v8  ;;  %2375 = vmatprep.subr.mxu1 %v2502_v8  ;;  %v1043_v41 = vrot.slane %v1042_v36, 1  ;;  %v1061_v45 = vrot.slane %v1060_v38, 1  ;;  %v1070_v33 = vrot.slane %v1069_v14, 1 }
  0x2c   : > { %2371 = vmatpush3.msra.mxu0 %v2263_v15  ;;  %2372 = vmatprep.mubr.msk.f32.mxu0 %vm2503_vm0, %v2502_v8  ;;  %v1079_v53 = vrot.slane %v1078_v46, 1  ;;  %v1097_v6 = vrot.slane %v1096_v54, 1  ;;  %v1086_v15 = vrot.slane %v1085_v61, 2 }
  0x2d   : > { %2376 = vmatpush3.msra.mxu1 %v2635_v16  ;;  %2377 = vmatprep.mubr.msk.f32.mxu1 %vm2503_vm0, %v2502_v8  ;;  %v1044_v48 = vmax.f32 %v1042_v36, %v1043_v41  ;;  %v1062_v52 = vmax.f32 %v1060_v38, %v1061_v45  ;;  %v1103_v16 = vmax.f32 %v2648_v18, %v1102_v62 }
  0x2e   : > { %2373 = vmatmul.mubr.msk.f32.vlgmr.msra.gmra.mxu0 %vm461_vm1, %v459_v9  ;;  %2378 = vmatmul.mubr.msk.f32.vlgmr.msra.gmra.mxu1 %vm461_vm1, %v459_v9  ;;  %v1080_v5 = vmax.f32 %v1078_v46, %v1079_v53  ;;  %v1087_v34 = vmax.f32 %v1085_v61, %v1086_v15  ;;  %v1071_v51 = vmax.f32 %v1069_v14, %v1070_v33 }
  0x2f   : > { %2380 = vmatprep.subr.mxu0 %v2502_v8  ;;  %2385 = vmatprep.subr.mxu1 %v2502_v8  ;;  %vm1045_vm2 = vcmp.ne.f32.partialorder %v1044_v48, 0.0  ;;  %vm1063_vm3 = vcmp.ne.f32.partialorder %v1062_v52, 0.0  ;;  %v1104_v35 = vrot.slane %v1103_v16, 2 }
  0x30   : > { %2381 = vmatpush3.msra.mxu0 %v2267_v17  ;;  %2382 = vmatprep.mubr.msk.f32.mxu0 %vm2503_vm0, %v2502_v8  ;;  %v2706_v4 = vsel %vm1045_vm2, 1.0, %v2502_v8  ;;  %vm1081_vm4 = vcmp.ne.f32.partialorder %v1080_v5, 0.0  ;;  %v1088_v52 = vrot.slane %v1087_v34, 1  ;;  %vm1072_vm7 = vcmp.ne.f32.partialorder %v1071_v51, 0.0 }
  0x31   : > { %2386 = vmatpush3.msra.mxu1 %v2648_v18  ;;  %2387 = vmatprep.mubr.msk.f32.mxu1 %vm2503_vm0, %v2502_v8  ;;  %v2724_v18 = vld [vmem:[%s2941_s4 + $0x8] sm:$0xff]  ;;  %v2740_v45 = vsel %vm1081_vm4, 1.0, %v2502_v8  ;;  %v1105_v53 = vmax.f32 %v1103_v16, %v1104_v35 }
  0x32   : > { %2383 = vmatmul.mubr.msk.f32.vlgmr.msra.gmra.mxu0 %vm461_vm1, %v459_v9  ;;  %2388 = vmatmul.mubr.msk.f32.vlgmr.msra.gmra.mxu1 %vm461_vm1, %v459_v9 }
  0x33   : > { %1115 = vperm.xlu0 %2476, %v1111_v19   ;;  %2397 = vmatprep.mubr.msk.f32.mxu1 %vm461_vm1, %v2671_v22 }
  0x34   : > { %2392 = vmatprep.mubr.msk.f32.mxu0 %vm461_vm1, %v1156_v23  ;;  %1880 = vperm.xlu1 %2477, %v1870_v24   ;;  %v1052_v24 = vrot.slane %v1051_v1, 1 }
  0x36   : > { %v1053_v43 = vmax.f32 %v1051_v1, %v1052_v24  ;;  %v1089_v1 = vmax.f32 %v1087_v34, %v1088_v52 }
  0x37   : > { %1121 = vperm.xlu0 %2476, %v1112_v20  }
  0x38   : > { %1875 = vperm.xlu1 %2477, %v1869_v25   ;;  %v2719_v25 = vsel %vm1063_vm3, 1.0, %v2502_v8  ;;  %vm1054_vm6 = vcmp.ne.f32.partialorder %v1053_v43, 0.0  ;;  %vm1090_vm8 = vcmp.ne.f32.partialorder %v1089_v1, 0.0 }
  0x39   : > { %v2781_v16 = vsel %vm1090_vm8, 1.0, %v2502_v8 }
  0x3b   : > { %1892 = vperm.xlu0 %2476, %v1872_v21  }
  0x3c   : > { %1887 = vperm.xlu1 %2477, %v1871_v26   ;;  %v1098_v26 = vmax.f32 %v1096_v54, %v1097_v6 }
  0x3e   : > { %vm1099_vm5 = vcmp.ne.f32.partialorder %v1098_v26, 0.0 }
  0x3f   : > { %v2753_v62 = vsel %vm1099_vm5, 1.0, %v2502_v8 }
  0xae   : > { %v2691_v44 = vpop.permute.xlu0 %1115 }
  0xb2   : > { %v2695_v57 = vpop.permute.xlu0 %1121 }
  0xe6   : > { %v531_v55 = vpop.f32.mrf.mxu0  ;;  %v603_v56 = vpop.f32.mrf.mxu1 }
  0xe7   : > { %v1118_v58 = vmul.f32 %v2691_v44, %v531_v55  ;;  %v1126_v59 = vmul.f32 %v2691_v44, %v603_v56 }
  0xe8   : > { %v2354_v63 = vpop.f32.mrf.mxu0  ;;  %v2359_v0 = vpop.f32.mrf.mxu1 }
  0xe9   : > { %v1124_v2 = vadd.f32 %v2695_v57, %v1118_v58  ;;  %v2703_v3 = vadd.f32 %v1126_v59, %v2695_v57 }
  0xea   : > { %v675_v7 = vpop.f32.mrf.mxu0  ;;  %v747_v9 = vpop.f32.mrf.mxu1 }
  0xeb   : > { %v1125_v10 = vmax.f32 %v1124_v2, 0.0  ;;  %v1128_v11 = vmax.f32 %v2703_v3, 0.0  ;;  %v1129_v12 = vmul.f32 %v2691_v44, %v675_v7  ;;  %v1132_v13 = vmul.f32 %v2691_v44, %v747_v9 }
  0xec   : > { %v2364_v17 = vpop.f32.mrf.mxu0  ;;  %v2369_v19 = vpop.f32.mrf.mxu1  ;;  %v1106_v2 = vrot.slane %v1105_v53, 1 }
  0xed   : > { %v1130_v20 = vadd.f32 %v1129_v12, %v2695_v57  ;;  %v2714_v21 = vadd.f32 %v1132_v13, %v2695_v57  ;;  %v1239_v23 = vmul.f32 %v2706_v4, %v1125_v10  ;;  %v1147_v29 = vmax.f32 %v1125_v10, %v1128_v11  ;;  %v1157_v12 = vld [vmem:[%s2942_s5 + $0x8] sm:$0xff] }
  0xee   : > { %v819_v27 = vpop.f32.mrf.mxu0  ;;  %v891_v28 = vpop.f32.mrf.mxu1  ;;  %v2767_v10 = vsel %vm1072_vm7, 1.0, %v2502_v8  ;;  %v1107_v13 = vmax.f32 %v1105_v53, %v1106_v2 }
  0xef   : > { %v1131_v30 = vmax.f32 %v1130_v20, 0.0  ;;  %v1135_v31 = vmul.f32 %v2691_v44, %v819_v27  ;;  %v1138_v32 = vmul.f32 %v2691_v44, %v891_v28  ;;  %2395 = vmatprep.subr.mxu1 %v1239_v23  ;;  %v1134_v36 = vmax.f32 %v2714_v21, 0.0 }
  0xf0   : > { %v2374_v37 = vpop.f32.mrf.mxu0  ;;  %v2379_v38 = vpop.f32.mrf.mxu1  ;;  %2396 = vmatpush3.msra.mxu1 %v1239_v23  ;;  %vm1108_vm9 = vcmp.ne.f32.partialorder %v1107_v13, 0.0 }
  0xf1   : > { %v1148_v39 = vmax.f32 %v1147_v29, %v1131_v30  ;;  %v1136_v40 = vadd.f32 %v1135_v31, %v2695_v57  ;;  %v2733_v41 = vadd.f32 %v1138_v32, %v2695_v57  ;;  %v1401_v42 = vmul.f32 %v2719_v25, %v1131_v30  ;;  %2398 = vmatmul.mubr.msk.f32.vlgmr.msra.gmra.mxu1 %vm461_vm1, %v2724_v18  ;;  %v2817_v30 = vpop.permute.xlu1 %1880 }
  0xf2   : > { %v963_v46 = vpop.f32.mrf.mxu0  ;;  %v1035_v47 = vpop.f32.mrf.mxu1  ;;  %2407 = vmatprep.mubr.msk.f32.mxu1 %vm461_vm1, %v2671_v22  ;;  %v1479_v15 = vmul.f32 %v2767_v10, %v1134_v36 }
  0xf3   : > { %v1149_v48 = vmax.f32 %v1148_v39, %v1134_v36  ;;  %v1137_v49 = vmax.f32 %v1136_v40, 0.0  ;;  %v1141_v50 = vmul.f32 %v2691_v44, %v963_v46  ;;  %2405 = vmatprep.subr.mxu1 %v1401_v42  ;;  %v1144_v54 = vmul.f32 %v2691_v44, %v1035_v47 }
  0xf4   : > { %v2384_v55 = vpop.f32.mrf.mxu0  ;;  %v2389_v56 = vpop.f32.mrf.mxu1  ;;  %2406 = vmatpush3.msra.mxu1 %v1401_v42  ;;  %v1140_v59 = vmax.f32 %v2733_v41, 0.0 }
  0xf5   : > { %v1150_v58 = vmax.f32 %v1149_v48, %v1137_v49  ;;  %v1142_v60 = vadd.f32 %v1141_v50, %v2695_v57  ;;  %v1557_v61 = vmul.f32 %v2740_v45, %v1137_v49  ;;  %2408 = vmatmul.mubr.msk.f32.vlgmr.msra.gmra.mxu1 %vm461_vm1, %v2724_v18  ;;  %v1145_v63 = vadd.f32 %v1144_v54, %v2695_v57  ;;  %v2825_v38 = vpop.permute.xlu1 %1875  ;;  %v2839_v54 = vpop.permute.xlu0 %1892 }
  0xf6   : > { %2417 = vmatprep.mubr.msk.f32.mxu1 %vm461_vm1, %v2671_v22  ;;  %v2762_v57 = vsel %vm1054_vm6, 1.0, %v2502_v8  ;;  %v1635_v3 = vmul.f32 %v2781_v16, %v1140_v59 }
  0xf7   : > { %v1151_v44 = vmax.f32 %v1150_v58, %v1140_v59  ;;  %v1143_v0 = vmax.f32 %v1142_v60, 0.0  ;;  %2415 = vmatprep.subr.mxu1 %v1557_v61  ;;  %v1146_v6 = vmax.f32 %v1145_v63, 0.0  ;;  %v1323_v14 = vmul.f32 %v2762_v57, %v1128_v11 }
  0xf8   : > { %2416 = vmatpush3.msra.mxu1 %v1557_v61  ;;  %v2791_v11 = vsel %vm1108_vm9, 1.0, %v2502_v8  ;;  %v1961_v19 = vmax.f32 %v2706_v4, %v2762_v57 }
  0xf9   : > { %v1152_v5 = vmax.f32 %v1151_v44, %v1143_v0  ;;  %v1713_v7 = vmul.f32 %v2753_v62, %v1143_v0  ;;  %2418 = vmatmul.mubr.msk.f32.vlgmr.msra.gmra.mxu1 %vm461_vm1, %v2724_v18  ;;  %v1791_v17 = vmul.f32 %v2791_v11, %v1146_v6 }
  0xfa   : > { %2427 = vmatprep.mubr.msk.f32.mxu1 %vm461_vm1, %v2671_v22  ;;  %v1966_v20 = vmax.f32 %v1961_v19, %v2719_v25 }
  0xfb   : > { %2425 = vmatprep.subr.mxu1 %v1713_v7  ;;  %v1153_v9 = vmax.f32 %v1152_v5, %v1146_v6 }
  0xfc   : > { %2426 = vmatpush3.msra.mxu1 %v1713_v7  ;;  %v1971_v24 = vmax.f32 %v1966_v20, %v2767_v10 }
  0xfd   : > { %2390 = vmatprep.subr.mxu0 %v1153_v9  ;;  %2428 = vmatmul.mubr.msk.f32.vlgmr.msra.gmra.mxu1 %vm461_vm1, %v2724_v18 }
  0xfe   : > { %2391 = vmatpush3.msra.mxu0 %v1153_v9  ;;  %2435 = vmatprep.subr.mxu1 %v2502_v8 }
  0xff   : > { %2393 = vmatmul.mubr.msk.f32.vlgmr.msra.gmra.mxu0 %vm461_vm1, %v1157_v12  ;;  %2400 = vmatprep.subr.mxu0 %v1323_v14  ;;  %v2852_v12 = vpop.permute.xlu1 %1887 }
 0x100   : > { %2401 = vmatpush3.msra.mxu0 %v1323_v14  ;;  %2402 = vmatprep.mubr.msk.f32.mxu0 %vm461_vm1, %v2671_v22 }
 0x101   : > { %2410 = vmatprep.subr.mxu0 %v1479_v15  ;;  %2439 = vmatprep.mubr.msk.f32.mxu1 %vm2503_vm0, %v2502_v8 }
 0x103   : > { %2403 = vmatmul.mubr.msk.f32.vlgmr.msra.gmra.mxu0 %vm461_vm1, %v2724_v18 }
 0x104   : > { %2411 = vmatpush3.msra.mxu0 %v1479_v15  ;;  %2412 = vmatprep.mubr.msk.f32.mxu0 %vm461_vm1, %v2671_v22 }
 0x105   : > { %2420 = vmatprep.subr.mxu0 %v1635_v3 }
 0x107   : > { %2413 = vmatmul.mubr.msk.f32.vlgmr.msra.gmra.mxu0 %vm461_vm1, %v2724_v18 }
 0x108   : > { %2421 = vmatpush3.msra.mxu0 %v1635_v3  ;;  %2422 = vmatprep.mubr.msk.f32.mxu0 %vm461_vm1, %v2671_v22 }
 0x109   : > { %2430 = vmatprep.subr.mxu0 %v1791_v17 }
 0x10b   : > { %2423 = vmatmul.mubr.msk.f32.vlgmr.msra.gmra.mxu0 %vm461_vm1, %v2724_v18 }
 0x10c   : > { %2431 = vmatpush3.msra.mxu0 %v1791_v17  ;;  %2432 = vmatprep.mubr.msk.f32.mxu0 %vm461_vm1, %v2671_v22  ;;  %v1976_v22 = vmax.f32 %v1971_v24, %v2740_v45 }
 0x10d   : > { %2442 = vmatprep.subr.mxu0 %v2502_v8 }
 0x10f   : > { %2433 = vmatmul.mubr.msk.f32.vlgmr.msra.gmra.mxu0 %vm461_vm1, %v2724_v18  ;;  %v1981_v18 = vmax.f32 %v1976_v22, %v2781_v16 }
 0x110   : > { %2446 = vmatprep.mubr.msk.f32.mxu0 %vm2503_vm0, %v2502_v8 }
 0x111   : > { %v1986_v33 = vmax.f32 %v1981_v18, %v2753_v62 }
 0x113   : > { %v2834_v49 = vmax.f32 %v1986_v33, %v2791_v11 }
 0x1b1   : > { %v2399_v21 = vpop.f32.mrf.mxu1 }
 0x1b3   : > { %v1314_v23 = vpop.f32.mrf.mxu1 }
 0x1b5   : > { %v2409_v26 = vpop.f32.mrf.mxu1 }
 0x1b7   : > { %v1470_v27 = vpop.f32.mrf.mxu1 }
 0x1b9   : > { %v2419_v28 = vpop.f32.mrf.mxu1 }
 0x1bb   : > { %v2814_v29 = vpop.f32.mrf.mxu1 }
 0x1bd   : > { %v2429_v32 = vpop.f32.mrf.mxu1 }
 0x1bf   : > { %v2394_v31 = vpop.f32.mrf.mxu0  ;;  %v1782_v1 = vpop.f32.mrf.mxu1 }
 0x1c0   : > { %v1715_v34 = vmul.f32 %v2394_v31, %v2753_v62  ;;  %v1241_v35 = vmul.f32 %v2394_v31, %v2706_v4  ;;  %v1403_v36 = vmul.f32 %v2394_v31, %v2719_v25  ;;  %v1325_v41 = vmul.f32 %v2394_v31, %v2762_v57 }
 0x1c1   : > { %v2823_v37 = vpop.f32.mrf.mxu0  ;;  %v1481_v47 = vmul.f32 %v2394_v31, %v2767_v10  ;;  %v1559_v52 = vmul.f32 %v2394_v31, %v2740_v45  ;;  %v1637_v53 = vmul.f32 %v2394_v31, %v2781_v16  ;;  %v1793_v9 = vmul.f32 %v2394_v31, %v2791_v11 }
 0x1c2   : > { %v1788_v39 = vadd.f32 %v2429_v32, %v1715_v34  ;;  %v1320_v40 = vadd.f32 %v2399_v21, %v1241_v35  ;;  %v1240_v42 = vmul.f32 %v2706_v4, %v2823_v37  ;;  %v1476_v46 = vadd.f32 %v2409_v26, %v1403_v36 }
 0x1c3   : > { %v2404_v43 = vpop.f32.mrf.mxu0  ;;  %v1402_v48 = vmul.f32 %v2719_v25, %v2823_v37  ;;  %v1324_v56 = vmul.f32 %v2762_v57, %v2823_v37  ;;  %v1714_v0 = vmul.f32 %v2753_v62, %v2823_v37  ;;  %v1480_v15 = vmul.f32 %v2767_v10, %v2823_v37 }
 0x1c4   : > { %v1398_v50 = vadd.f32 %v2404_v43, %v1325_v41  ;;  %v1884_v51 = vmul.f32 %v2817_v30, %v1320_v40  ;;  %v1315_v55 = vadd.f32 %v1314_v23, %v1240_v42  ;;  %v1906_v59 = vmul.f32 %v2817_v30, %v1476_v46 }
 0x1c5   : > { %v1392_v58 = vpop.f32.mrf.mxu0  ;;  %v1471_v60 = vadd.f32 %v1470_v27, %v1402_v48  ;;  %v1930_v61 = vmul.f32 %v2817_v30, %v1788_v39  ;;  %v1783_v27 = vadd.f32 %v1782_v1, %v1714_v0  ;;  %v1632_v22 = vadd.f32 %v2419_v28, %v1559_v52 }
 0x1c6   : > { %v1896_v63 = vadd.f32 %v2839_v54, %v1884_v51  ;;  %v1900_v44 = vmul.f32 %v2817_v30, %v1398_v50  ;;  %v1393_v2 = vadd.f32 %v1392_v58, %v1324_v56  ;;  %v1883_v5 = vmul.f32 %v2825_v38, %v1315_v55 }
 0x1c7   : > { %v2414_v6 = vpop.f32.mrf.mxu0  ;;  %v1908_v7 = vadd.f32 %v1906_v59, %v2839_v54  ;;  %v1905_v3 = vmul.f32 %v2825_v38, %v1471_v60  ;;  %v2861_v24 = vadd.f32 %v1930_v61, %v2839_v54 }
 0x1c8   : > { %v1898_v13 = vmax.f32 %v1896_v63, 0.0  ;;  %v1902_v14 = vadd.f32 %v1900_v44, %v2839_v54  ;;  %v1895_v17 = vadd.f32 %v2852_v12, %v1883_v5  ;;  %v1899_v19 = vmul.f32 %v2825_v38, %v1393_v2 }
 0x1c9   : > { %v1554_v20 = vadd.f32 %v2414_v6, %v1481_v47  ;;  %v1910_v21 = vmax.f32 %v1908_v7, 0.0  ;;  %v1548_v23 = vpop.f32.mrf.mxu0  ;;  %v1907_v28 = vadd.f32 %v1905_v3, %v2852_v12  ;;  %v1929_v44 = vmul.f32 %v2825_v38, %v1783_v27 }
 0x1ca   : > { %v1904_v26 = vmax.f32 %v1902_v14, 0.0  ;;  %v1956_v18 = vmul.f32 %v2706_v4, %v1898_v13  ;;  %v1897_v31 = vmax.f32 %v1895_v17, 0.0  ;;  %v1901_v32 = vadd.f32 %v1899_v19, %v2852_v12 }
 0x1cb   : > { %v1912_v33 = vmul.f32 %v2817_v30, %v1554_v20  ;;  %v2424_v34 = vpop.f32.mrf.mxu0  ;;  %v1963_v39 = vmul.f32 %v2719_v25, %v1910_v21  ;;  %v1549_v40 = vadd.f32 %v1548_v23, %v1480_v15  ;;  %v1909_v58 = vmax.f32 %v1907_v28, 0.0 }
 0x1cc   : > { %v1942_v35 = vmax.f32 %v1898_v13, %v1904_v26  ;;  %v1958_v36 = vmul.f32 %v2762_v57, %v1904_v26  ;;  %v1903_v41 = vmax.f32 %v1901_v32, 0.0  ;;  %v1955_v42 = vmul.f32 %v2706_v4, %v1897_v31 }
 0x1cd   : > { %v1914_v43 = vadd.f32 %v1912_v33, %v2839_v54  ;;  %v1704_v46 = vpop.f32.mrf.mxu0  ;;  %v1911_v50 = vmul.f32 %v2825_v38, %v1549_v40  ;;  %v1710_v51 = vadd.f32 %v2424_v34, %v1637_v53  ;;  %v1918_v4 = vmul.f32 %v2817_v30, %v1632_v22 }
 0x1ce   : > { %v1960_v47 = vmax.f32 %v1956_v18, %v1958_v36  ;;  %v1944_v48 = vmax.f32 %v1942_v35, %v1910_v21  ;;  %v1941_v52 = vmax.f32 %v1897_v31, %v1903_v41  ;;  %v1957_v55 = vmul.f32 %v2762_v57, %v1903_v41 }
 0x1cf   : > { %v1916_v56 = vmax.f32 %v1914_v43, 0.0  ;;  %v1913_v60 = vadd.f32 %v1911_v50, %v2852_v12  ;;  %v1924_v61 = vmul.f32 %v2817_v30, %v1710_v51  ;;  %v2434_v63 = vpop.f32.mrf.mxu0  ;;  %v1962_v5 = vmul.f32 %v2719_v25, %v1909_v58 }
 0x1d0   : > { %v1965_v59 = vmax.f32 %v1960_v47, %v1963_v39  ;;  %v1959_v0 = vmax.f32 %v1955_v42, %v1957_v55  ;;  %v1920_v57 = vadd.f32 %v1918_v4, %v2839_v54  ;;  %v1934_v7 = vmax.f32 %v2861_v24, 0.0 }
 0x1d1   : > { %v1946_v1 = vmax.f32 %v1944_v48, %v1916_v56  ;;  %v1968_v2 = vmul.f32 %v2767_v10, %v1916_v56  ;;  %v1915_v53 = vmax.f32 %v1913_v60, 0.0  ;;  %v1926_v6 = vadd.f32 %v1924_v61, %v2839_v54  ;;  %v1860_v27 = vpop.f32.mrf.mxu0 }
 0x1d2   : > { %v1558_v13 = vmul.f32 %v2740_v45, %v2823_v37  ;;  %v1636_v14 = vmul.f32 %v2781_v16, %v2823_v37  ;;  %v1866_v15 = vadd.f32 %v2434_v63, %v1793_v9  ;;  %v1943_v17 = vmax.f32 %v1941_v52, %v1909_v58 }
 0x1d3   : > { %v1970_v3 = vmax.f32 %v1965_v59, %v1968_v2  ;;  %v1964_v19 = vmax.f32 %v1959_v0, %v1962_v5  ;;  %v1922_v20 = vmax.f32 %v1920_v57, 0.0  ;;  %v1928_v21 = vmax.f32 %v1926_v6, 0.0  ;;  %v1994_v5 = vld [vmem:[%s2945_s8] sm:$0x3] }
 0x1d4   : > { %v1627_v25 = vadd.f32 %v2814_v29, %v1558_v13  ;;  %v1705_v23 = vadd.f32 %v1704_v46, %v1636_v14  ;;  %v1936_v26 = vmul.f32 %v2817_v30, %v1866_v15  ;;  %v1967_v24 = vmul.f32 %v2767_v10, %v1915_v53 }
 0x1d5   : > { %v1948_v22 = vmax.f32 %v1946_v1, %v1922_v20  ;;  %v1973_v18 = vmul.f32 %v2740_v45, %v1922_v20  ;;  %v1792_v31 = vmul.f32 %v2791_v11, %v2823_v37  ;;  %v1978_v9 = vmul.f32 %v2781_v16, %v1928_v21 }
 0x1d6   : > { %v1917_v32 = vmul.f32 %v2825_v38, %v1627_v25  ;;  %v1923_v33 = vmul.f32 %v2825_v38, %v1705_v23  ;;  %v1938_v29 = vadd.f32 %v1936_v26, %v2839_v54  ;;  %v1931_v34 = vadd.f32 %v1929_v44, %v2852_v12 }
 0x1d7   : > { %v1950_v30 = vmax.f32 %v1948_v22, %v1928_v21  ;;  %v1975_v35 = vmax.f32 %v1970_v3, %v1973_v18  ;;  %v1861_v36 = vadd.f32 %v1860_v27, %v1792_v31  ;;  %v1945_v10 = vmax.f32 %v1943_v17, %v1915_v53 }
 0x1d8   : > { %v1919_v39 = vadd.f32 %v1917_v32, %v2852_v12  ;;  %v1925_v40 = vadd.f32 %v1923_v33, %v2852_v12  ;;  %v1940_v41 = vmax.f32 %v1938_v29, 0.0  ;;  %v1983_v37 = vmul.f32 %v2753_v62, %v1934_v7 }
 0x1d9   : > { %v1980_v42 = vmax.f32 %v1975_v35, %v1978_v9  ;;  %v1952_v43 = vmax.f32 %v1950_v30, %v1934_v7  ;;  %v1935_v28 = vmul.f32 %v2825_v38, %v1861_v36  ;;  %v1969_v46 = vmax.f32 %v1964_v19, %v1967_v24 }
 0x1da   : > { %v1921_v47 = vmax.f32 %v1919_v39, 0.0  ;;  %v1927_v54 = vmax.f32 %v1925_v40, 0.0  ;;  %v1988_v48 = vmul.f32 %v2791_v11, %v1940_v41  ;;  %v1933_v50 = vmax.f32 %v1931_v34, 0.0 }
 0x1db   : > { %v1954_v51 = vmax.f32 %v1952_v43, %v1940_v41  ;;  %v1937_v52 = vadd.f32 %v1935_v28, %v2852_v12  ;;  %v1985_v55 = vmax.f32 %v1980_v42, %v1983_v37 }
 0x1dc   : > { %v1947_v56 = vmax.f32 %v1945_v10, %v1921_v47  ;;  %v1972_v58 = vmul.f32 %v2740_v45, %v1921_v47  ;;  %v1977_v59 = vmul.f32 %v2781_v16, %v1927_v54  ;;  %v1982_v44 = vmul.f32 %v2753_v62, %v1933_v50  ;;  %v1995_v62 = vld [vmem:[%s2946_s9] sm:$0x3] }
 0x1dd   : > { %v1939_v60 = vmax.f32 %v1937_v52, 0.0  ;;  %v1993_v4 = vmul.f32 %v2834_v49, %v1954_v51  ;;  %v1990_v61 = vmax.f32 %v1985_v55, %v1988_v48 }
 0x1de   : > { %v1949_v38 = vmax.f32 %v1947_v56, %v1927_v54  ;;  %v1974_v63 = vmax.f32 %v1969_v46, %v1972_v58 }
 0x1df   : > { %2436 = vmatpush3.msra.mxu1 %v1993_v4  ;;  %2443 = vmatpush3.msra.mxu0 %v1990_v61  ;;  %v1987_v12 = vmul.f32 %v2791_v11, %v1939_v60 }
 0x1e0   : > { %v1979_v0 = vmax.f32 %v1974_v63, %v1977_v59  ;;  %v1951_v1 = vmax.f32 %v1949_v38, %v1933_v50  ;;  %2437 = vmatprep.subr.mxu1 %v2502_v8  ;;  %2444 = vmatprep.subr.mxu0 %v2502_v8 }
 0x1e2   : > { %v1953_v45 = vmax.f32 %v1951_v1, %v1939_v60  ;;  %v1984_v16 = vmax.f32 %v1979_v0, %v1982_v44 }
 0x1e4   : > { %v1992_v2 = vmul.f32 %v2834_v49, %v1953_v45  ;;  %v1989_v53 = vmax.f32 %v1984_v16, %v1987_v12 }
 0x1e6   : > { %2438 = vmatpush3.msra.mxu1 %v1992_v2  ;;  %2445 = vmatpush3.msra.mxu0 %v1989_v53 }
 0x1e7   : > { %2440 = vmatmul.mubr.msk.f32.vlgmr.msra.gmra.mxu1 %vm1996_vm10, %v1995_v62  ;;  %2447 = vmatmul.mubr.msk.f32.vlgmr.msra.gmra.mxu0 %vm1996_vm10, %v1994_v5 }
 0x2a7   : > { %v2066_v8 = vpop.f32.mrf.mxu1  ;;  %v2139_v11 = vpop.f32.mrf.mxu0 }
 0x2a8   : > { %v2140_v49 = vadd.f32 %v2139_v11, %v2066_v8 }
 0x2a9   : > { %v2441_v57 = vpop.f32.mrf.mxu1  ;;  %v2448_v6 = vpop.f32.mrf.mxu0 }
 0x2aa   : > { %2143 = vst [vmem:[%s454_s22] sm:$0x3] %v2140_v49  ;;  %v2148_v7 = vmul.f32 %v2140_v49, %v2140_v49  ;;  %v2145_v13 = vsel %vm2144_vm11, %v2140_v49, 0.0 }
 0x2ab   : > { %2146 = vadd.xlane.f32.xlu0 %v2145_v13 }
 0x2ac   : > { %v2149_v14 = vsel %vm2144_vm11, %v2148_v7, 0.0 }
 0x2ad   : > { %2150 = vadd.xlane.f32.xlu1 %v2149_v14 }
 0x334   : > { %v2147_v3 = vpop.xlane.xlu0 %2146 }
 0x336   : > { %v2151_v15 = vpop.xlane.xlu1 %2150 }
 0x337   : > { %v2153_v17 = vsel %vm2152_vm12, %v2147_v3, %v2151_v15 }
 0x338   : > { %2155 = vst.msk [vmem:[%s458_s20] sm:$0x3] %vm2154_vm13, %v2153_v17 }
 0x339 PF: > { %p19_p9 = scmp.ge.s32.totalorder %s2582_s21, 6   ;;  %s2949_s17 = smov %s2496_s18 }
 0x33a   : > { %s2950_s18 = smov %s2591_s24  ;;  %s2951_s19 = smov %s2582_s21 }
 0x33b   :  { %21 = sbr.rel (!%p19_p9) target bundleno = 2 (0x2), region = 152 }

</bundles_post_ra>
